<compile_context>
chip_gen: v5e
topology: v5e:2x2
jax: 0.10.0
libtpu: 0.0.40
codegen_flags: <defaults>
</compile_context>

<pallas_src>
import math

import jax
import jax.numpy as jnp
import numpy as np
from jax import lax
from jax.experimental import pallas as pl
from jax.experimental.pallas import tpu as pltpu


# ----------------------------------------------------------------------------- kernel
def _make_resnet_kernel(H, W, Cin, Cout, eps, mode, compute_dtype):
    """Fused ResnetBlock kernel for one image, (C, H*W) layout (spatial on lanes)."""
    HW = H * W
    approx_recip = (compute_dtype == jnp.bfloat16)

    def _gn_silu(x, gsum_ref, gbcast_ref, gamma_ref, beta_ref):
        # x: (C, HW) f32.  One-pass GroupNorm (stats in f32) + SiLU.
        inv_n = 1.0 / HW
        mean_c = jnp.sum(x, axis=1, keepdims=True) * inv_n            # (C, 1)
        msq_c = jnp.sum(x * x, axis=1, keepdims=True) * inv_n         # (C, 1)

        def pool(v):
            # per-channel stat -> group average, broadcast back per channel:
            # (G, C) @ (C, 1) -> (G, 1); (C, G) @ (G, 1) -> (C, 1).  Tiny matmuls.
            g = jnp.dot(gsum_ref[...], v, preferred_element_type=jnp.float32)
            return jnp.dot(gbcast_ref[...], g, preferred_element_type=jnp.float32)

        mean_g = pool(mean_c)
        var_g = pool(msq_c) - mean_g * mean_g
        scale = lax.rsqrt(var_g + eps) * gamma_ref[...]
        h = (x - mean_g) * scale + beta_ref[...]
        # SiLU; the reciprocal goes to the (otherwise idle) EUP slot.
        sig = pl.reciprocal(1.0 + jnp.exp(-h), approx=approx_recip)
        return h * sig

    def _conv3x3(h, wpack_ref, b_ref, masks):
        # h: (C, HW) f32.  wpack_ref: (3[dx], Cout, 3*C) with the K axis ordered
        # dy-major (dy=0 block, dy=1 block, dy=2 block).  b_ref: (Cout, 1).
        mask_top, mask_bot, mask_left, mask_right = masks
        # Vertically shifted copies (zero "SAME" padding at the image top/bottom),
        # K-packed into one (3C, HW) RHS -> 3 deep matmuls instead of 9 shallow ones.
        up = pltpu.roll(h, W, axis=1) * mask_top          # source row i0-1 (dy=0)
        dn = pltpu.roll(h, HW - W, axis=1) * mask_bot     # source row i0+1 (dy=2)
        rhs = jnp.concatenate([up, h, dn], axis=0).astype(compute_dtype)   # (3C, HW)

        s0 = jnp.dot(wpack_ref[0], rhs, preferred_element_type=jnp.float32)
        s1 = jnp.dot(wpack_ref[1], rhs, preferred_element_type=jnp.float32)
        s2 = jnp.dot(wpack_ref[2], rhs, preferred_element_type=jnp.float32)
        # Horizontal taps: lane rolls of the f32 results + left/right border masks.
        out = (s1
               + pltpu.roll(s0, 1, axis=1) * mask_left        # dx=0 (source j0-1)
               + pltpu.roll(s2, HW - 1, axis=1) * mask_right)  # dx=2 (source j0+1)
        return out + b_ref[...]

    def kernel(x_ref, gs1, gb1, g1, bt1, w1, b1,
               gs2, gb2, g2, bt2, w2, b2, *rest):
        if mode == "identity":
            (o_ref,) = rest
            ws_ref = bs_ref = None
        else:
            ws_ref, bs_ref, o_ref = rest

        x = x_ref[0].astype(jnp.float32)                  # (Cin, HW)

        # Border masks in destination coordinates (computed once; tiny VPU work).
        lane = lax.broadcasted_iota(jnp.int32, (1, HW), 1)
        col = lane % W
        masks = ((lane >= W).astype(jnp.float32),          # row 0 has no row above
                 (lane < HW - W).astype(jnp.float32),       # last row has none below
                 (col != 0).astype(jnp.float32),            # col 0 has no left column
                 (col != W - 1).astype(jnp.float32))         # last col has no right

        # ---- norm1 -> SiLU -> conv1 ----------------------------------------
        h = _gn_silu(x, gs1, gb1, g1, bt1)
        h = _conv3x3(h, w1, b1, masks)                     # (Cout, HW) f32

        # ---- norm2 -> SiLU -> dropout -> conv2 ------------------------------
        h = _gn_silu(h, gs2, gb2, g2, bt2)
        # TODO(synk): dropout is identity here (inference); training-mode dropout
        # would draw a mask via pltpu.prng_seed / pltpu.prng_random_bits.
        h = _conv3x3(h, w2, b2, masks)

        # ---- shortcut on the ORIGINAL x -------------------------------------
        if mode == "identity":
            s = x
        elif mode == "nin":                                 # 1x1 conv
            s = jnp.dot(ws_ref[...], x.astype(compute_dtype),
                        preferred_element_type=jnp.float32) + bs_ref[...]
        else:                                               # 3x3 conv shortcut
            s = _conv3x3(x, ws_ref, bs_ref, masks)

        o_ref[0] = (h + s).astype(o_ref.dtype)

    return kernel


# ----------------------------------------------------------------------------- wrapper
def _pack_conv3x3(w_oihw, compute_dtype):
    # PyTorch (Cout, Cin, 3, 3) cross-correlation weights ->
    # (3[dx], Cout, 3*Cin) with the contraction axis ordered dy-major.
    cout, cin = w_oihw.shape[0], w_oihw.shape[1]
    return jnp.transpose(w_oihw, (3, 0, 2, 1)).reshape(3, cout, 3 * cin).astype(compute_dtype)


def _group_matrices(C, num_groups):
    # (G, C) group-average matrix and (C, G) broadcast-back matrix (feedback #7).
    cpg = C // num_groups
    grp = np.arange(C) // cpg
    eq = (np.arange(num_groups)[:, None] == grp[None, :])          # (G, C)
    gsum = jnp.asarray(eq.astype(np.float32) / cpg)                 # (G, C)
    gbcast = jnp.asarray(eq.T.astype(np.float32))                   # (C, G)
    return gsum, gbcast


def resnet_block_forward(x_nchw, params, *, num_groups=32, eps=1e-6,
                         conv_shortcut=False, compute_dtype=jnp.bfloat16):
    """Forward pass of ResnetBlock.  x_nchw: (N, Cin, H, W).  Returns NCHW."""
    N, Cin, H, W = x_nchw.shape
    Cout = params["conv1_w"].shape[0]
    HW = H * W
    assert Cin % num_groups == 0 and Cout % num_groups == 0

    if Cin != Cout:
        mode = "conv" if conv_shortcut else "nin"
    else:
        mode = "identity"

    f32 = jnp.float32
    gsum1, gbcast1 = _group_matrices(Cin, num_groups)
    gsum2, gbcast2 = _group_matrices(Cout, num_groups)

    # NCHW -> (N, C, H*W): channels on sublanes, flattened spatial on the 128-lane
    # axis.  This is a free reshape (no transpose) on both input and output.
    x_flat = x_nchw.reshape(N, Cin, HW)

    inputs = [
        x_flat,
        gsum1, gbcast1,
        params["norm1_g"].reshape(Cin, 1).astype(f32),
        params["norm1_b"].reshape(Cin, 1).astype(f32),
        _pack_conv3x3(params["conv1_w"], compute_dtype),
        params["conv1_b"].reshape(Cout, 1).astype(f32),
        gsum2, gbcast2,
        params["norm2_g"].reshape(Cout, 1).astype(f32),
        params["norm2_b"].reshape(Cout, 1).astype(f32),
        _pack_conv3x3(params["conv2_w"], compute_dtype),
        params["conv2_b"].reshape(Cout, 1).astype(f32),
    ]

    def const(shape):
        if len(shape) == 2:
            return pl.BlockSpec(shape, lambda n: (0, 0))
        return pl.BlockSpec(shape, lambda n: (0, 0, 0))

    in_specs = [
        pl.BlockSpec((1, Cin, HW), lambda n: (n, 0, 0)),
        const((num_groups, Cin)), const((Cin, num_groups)),
        const((Cin, 1)), const((Cin, 1)),
        const((3, Cout, 3 * Cin)), const((Cout, 1)),
        const((num_groups, Cout)), const((Cout, num_groups)),
        const((Cout, 1)), const((Cout, 1)),
        const((3, Cout, 3 * Cout)), const((Cout, 1)),
    ]

    short_flops = 0
    if mode == "nin":
        inputs += [params["short_w"][:, :, 0, 0].astype(compute_dtype),
                   params["short_b"].reshape(Cout, 1).astype(f32)]
        in_specs += [const((Cout, Cin)), const((Cout, 1))]
        short_flops = 2 * N * HW * Cin * Cout
    elif mode == "conv":
        inputs += [_pack_conv3x3(params["short_w"], compute_dtype),
                   params["short_b"].reshape(Cout, 1).astype(f32)]
        in_specs += [const((3, Cout, 3 * Cin)), const((Cout, 1))]
        short_flops = 2 * N * HW * 9 * Cin * Cout

    kernel = _make_resnet_kernel(H, W, Cin, Cout, eps, mode, compute_dtype)

    flops = (2 * N * HW * 9 * Cin * Cout + 2 * N * HW * 9 * Cout * Cout
             + short_flops + 12 * N * HW * (Cin + Cout))
    bytes_accessed = (sum(int(np.prod(a.shape)) * a.dtype.itemsize for a in inputs)
                      + N * Cout * HW * x_nchw.dtype.itemsize)
    cost = pl.CostEstimate(flops=int(flops),
                           transcendentals=int(N * HW * (Cin + Cout)),
                           bytes_accessed=int(bytes_accessed))

    # TODO(synk): for large (H, W, C) add an H-tile grid axis with a 1-row halo
    # (second "parallel" axis -> shards across v7x's 2 TensorCores at batch 1) and
    # single-buffer the constant weight specs with pipeline_mode=pl.Buffered(1).
    out_flat = pl.pallas_call(
        kernel,
        out_shape=jax.ShapeDtypeStruct((N, Cout, HW), x_nchw.dtype),
        grid=(N,),
        in_specs=in_specs,
        out_specs=pl.BlockSpec((1, Cout, HW), lambda n: (n, 0, 0)),
        compiler_params=pltpu.CompilerParams(
            dimension_semantics=("parallel",),
            vmem_limit_bytes=64 * 1024 * 1024),
        cost_estimate=cost,
    )(*inputs)

    return out_flat.reshape(N, Cout, H, W)


# ----------------------------------------------------------------------------- reference
def _ref_group_norm(x, gamma, beta, num_groups, eps):
    N, C, H, W = x.shape
    xg = x.reshape(N, num_groups, C // num_groups, H, W)
    mean = jnp.mean(xg, axis=(2, 3, 4), keepdims=True)
    var = jnp.var(xg, axis=(2, 3, 4), keepdims=True)
    xn = ((xg - mean) / jnp.sqrt(var + eps)).reshape(N, C, H, W)
    return xn * gamma[None, :, None, None] + beta[None, :, None, None]


def _ref_conv(x, w_oihw, b, pad):
    y = lax.conv_general_dilated(
        x, w_oihw, window_strides=(1, 1), padding=((pad, pad), (pad, pad)),
        dimension_numbers=("NCHW", "OIHW", "NCHW"))
    return y + b[None, :, None, None]


def _ref_silu(x):
    return x * (1.0 / (1.0 + jnp.exp(-x)))


def _ref_resnet_block(x, params, num_groups, eps, conv_shortcut):
    Cin = x.shape[1]
    Cout = params["conv1_w"].shape[0]
    h = _ref_group_norm(x, params["norm1_g"], params["norm1_b"], num_groups, eps)
    h = _ref_silu(h)
    h = _ref_conv(h, params["conv1_w"], params["conv1_b"], 1)
    h = _ref_group_norm(h, params["norm2_g"], params["norm2_b"], num_groups, eps)
    h = _ref_silu(h)
    h = _ref_conv(h, params["conv2_w"], params["conv2_b"], 1)
    if Cin != Cout:
        if conv_shortcut:
            x = _ref_conv(x, params["short_w"], params["short_b"], 1)
        else:
            x = _ref_conv(x, params["short_w"], params["short_b"], 0)
    return x + h


# ----------------------------------------------------------------------------- test
def _make_params(key, Cin, Cout, conv_shortcut):
    ks = jax.random.split(key, 7)

    def conv_init(k, cout, cin, ksz):
        bound = 1.0 / math.sqrt(cin * ksz * ksz)
        kw, kb = jax.random.split(k)
        w = jax.random.uniform(kw, (cout, cin, ksz, ksz), jnp.float32, -bound, bound)
        b = jax.random.uniform(kb, (cout,), jnp.float32, -bound, bound)
        return w, b

    p = {
        "norm1_g": 1.0 + 0.1 * jax.random.normal(ks[0], (Cin,), jnp.float32),
        "norm1_b": 0.1 * jax.random.normal(ks[1], (Cin,), jnp.float32),
        "norm2_g": 1.0 + 0.1 * jax.random.normal(ks[2], (Cout,), jnp.float32),
        "norm2_b": 0.1 * jax.random.normal(ks[3], (Cout,), jnp.float32),
    }
    p["conv1_w"], p["conv1_b"] = conv_init(ks[4], Cout, Cin, 3)
    p["conv2_w"], p["conv2_b"] = conv_init(ks[5], Cout, Cout, 3)
    if Cin != Cout:
        p["short_w"], p["short_b"] = conv_init(ks[6], Cout, Cin,
                                               3 if conv_shortcut else 1)
    return p


if __name__ == "__main__":
    key = jax.random.PRNGKey(0)
    fwd = jax.jit(resnet_block_forward,
                  static_argnames=("num_groups", "eps", "conv_shortcut",
                                   "compute_dtype"))

    configs = [
        # (N, Cin, Cout, H, W, conv_shortcut)
        (2, 32, 64, 16, 16, False),   # nin_shortcut (1x1 conv)
        (2, 32, 32, 16, 16, False),   # identity shortcut
        (1, 32, 64, 8, 8, True),      # conv_shortcut (3x3 conv)
    ]
    for idx, (N, Cin, Cout, H, W, cs) in enumerate(configs):
        key, kx, kp = jax.random.split(key, 3)
        x = jax.random.normal(kx, (N, Cin, H, W), jnp.float32)
        params = _make_params(kp, Cin, Cout, cs)

        y = jax.block_until_ready(
            fwd(x, params, num_groups=32, eps=1e-6, conv_shortcut=cs))
        y_ref = _ref_resnet_block(x, params, 32, 1e-6, cs)

        assert y.shape == (N, Cout, H, W)
        err = float(jnp.max(jnp.abs(y - y_ref)))
        # Default path feeds the MXU bf16 operands (f32 accumulation and f32
        # GroupNorm statistics) vs. an all-f32 reference: expected rounding is
        # ~1e-2 max-abs through the two GroupNorm/conv stages, so check at 2e-2.
        assert jnp.allclose(y, y_ref, atol=2e-2, rtol=2e-2), (
            f"config {idx}: max abs err {err}")

    print("KERNEL_OK")
</pallas_src>

<mosaic_0001>
module attributes {stable_mosaic.version = 11 : i64} {
  func.func @kernel(%arg0: i32, %arg1: memref<1x32x256xf32, #tpu.memory_space<vmem>>, %arg2: memref<32x32xf32, #tpu.memory_space<vmem>>, %arg3: memref<32x32xf32, #tpu.memory_space<vmem>>, %arg4: memref<32x1xf32, #tpu.memory_space<vmem>>, %arg5: memref<32x1xf32, #tpu.memory_space<vmem>>, %arg6: memref<3x64x96xbf16, #tpu.memory_space<vmem>>, %arg7: memref<64x1xf32, #tpu.memory_space<vmem>>, %arg8: memref<32x64xf32, #tpu.memory_space<vmem>>, %arg9: memref<64x32xf32, #tpu.memory_space<vmem>>, %arg10: memref<64x1xf32, #tpu.memory_space<vmem>>, %arg11: memref<64x1xf32, #tpu.memory_space<vmem>>, %arg12: memref<3x64x192xbf16, #tpu.memory_space<vmem>>, %arg13: memref<64x1xf32, #tpu.memory_space<vmem>>, %arg14: memref<64x32xbf16, #tpu.memory_space<vmem>>, %arg15: memref<64x1xf32, #tpu.memory_space<vmem>>, %arg16: memref<1x64x256xf32, #tpu.memory_space<vmem>>) attributes {dimension_semantics = [#tpu.dimension_semantics<parallel>], iteration_bounds = array<i64: 2>, scalar_prefetch = 0 : i64, scratch_operands = 0 : i64, tpu.core_type = #tpu.core_type<tc>, window_params = [{transform_indices = @transform_0, window_bounds = array<i64: 1, 32, 256>}, {pipeline_mode = #tpu.pipeline_mode<synchronous>, transform_indices = @transform_1, window_bounds = array<i64: 32, 32>}, {pipeline_mode = #tpu.pipeline_mode<synchronous>, transform_indices = @transform_2, window_bounds = array<i64: 32, 32>}, {pipeline_mode = #tpu.pipeline_mode<synchronous>, transform_indices = @transform_3, window_bounds = array<i64: 32, 1>}, {pipeline_mode = #tpu.pipeline_mode<synchronous>, transform_indices = @transform_4, window_bounds = array<i64: 32, 1>}, {pipeline_mode = #tpu.pipeline_mode<synchronous>, transform_indices = @transform_5, window_bounds = array<i64: 3, 64, 96>}, {pipeline_mode = #tpu.pipeline_mode<synchronous>, transform_indices = @transform_6, window_bounds = array<i64: 64, 1>}, {pipeline_mode = #tpu.pipeline_mode<synchronous>, transform_indices = @transform_7, window_bounds = array<i64: 32, 64>}, {pipeline_mode = #tpu.pipeline_mode<synchronous>, transform_indices = @transform_8, window_bounds = array<i64: 64, 32>}, {pipeline_mode = #tpu.pipeline_mode<synchronous>, transform_indices = @transform_9, window_bounds = array<i64: 64, 1>}, {pipeline_mode = #tpu.pipeline_mode<synchronous>, transform_indices = @transform_10, window_bounds = array<i64: 64, 1>}, {pipeline_mode = #tpu.pipeline_mode<synchronous>, transform_indices = @transform_11, window_bounds = array<i64: 3, 64, 192>}, {pipeline_mode = #tpu.pipeline_mode<synchronous>, transform_indices = @transform_12, window_bounds = array<i64: 64, 1>}, {pipeline_mode = #tpu.pipeline_mode<synchronous>, transform_indices = @transform_13, window_bounds = array<i64: 64, 32>}, {pipeline_mode = #tpu.pipeline_mode<synchronous>, transform_indices = @transform_14, window_bounds = array<i64: 64, 1>}, {transform_indices = @transform_15, window_bounds = array<i64: 1, 64, 256>}]} {
    %c0 = arith.constant 0 : index
    %c0_0 = arith.constant 0 : index
    %c0_1 = arith.constant 0 : index
    %0 = vector.load %arg1[%c0, %c0_0, %c0_1] : memref<1x32x256xf32, #tpu.memory_space<vmem>>, vector<1x32x256xf32>
    %1 = vector.shape_cast %0 : vector<1x32x256xf32> to vector<32x256xf32>
    %2 = tpu.iota {dimensions = array<i32: 1>} : vector<1x256xi32>
    %c16_i32 = arith.constant 16 : i32
    %c0_i32 = arith.constant 0 : i32
    %3 = arith.cmpi eq, %c16_i32, %c0_i32 : i32
    %c1_i32 = arith.constant 1 : i32
    %4 = arith.select %3, %c1_i32, %c16_i32 : i32
    %5 = vector.broadcast %4 : i32 to vector<1x256xi32>
    %6 = arith.remsi %2, %5 : vector<1x256xi32>
    %c0_i32_2 = arith.constant 0 : i32
    %7 = vector.broadcast %c0_i32_2 : i32 to vector<1x256xi32>
    %8 = arith.cmpi ne, %6, %7 : vector<1x256xi32>
    %c0_i32_3 = arith.constant 0 : i32
    %9 = vector.broadcast %c0_i32_3 : i32 to vector<1x256xi32>
    %10 = arith.cmpi slt, %6, %9 : vector<1x256xi32>
    %c0_i32_4 = arith.constant 0 : i32
    %11 = arith.cmpi slt, %4, %c0_i32_4 : i32
    %12 = vector.broadcast %11 : i1 to vector<1x256xi1>
    %13 = vector.broadcast %12 : vector<1x256xi1> to vector<1x256xi1>
    %14 = arith.xori %10, %13 : vector<1x256xi1>
    %15 = arith.andi %14, %8 : vector<1x256xi1>
    %16 = vector.broadcast %4 : i32 to vector<1x256xi32>
    %17 = arith.addi %6, %16 : vector<1x256xi32>
    %18 = arith.select %15, %17, %6 : vector<1x256xi1>, vector<1x256xi32>
    %c16_i32_5 = arith.constant 16 : i32
    %19 = vector.broadcast %c16_i32_5 : i32 to vector<1x256xi32>
    %20 = arith.cmpi sge, %2, %19 : vector<1x256xi32>
    %21 = arith.extui %20 : vector<1x256xi1> to vector<1x256xi32>
    %22 = arith.sitofp %21 : vector<1x256xi32> to vector<1x256xf32>
    %c240_i32 = arith.constant 240 : i32
    %23 = vector.broadcast %c240_i32 : i32 to vector<1x256xi32>
    %24 = arith.cmpi slt, %2, %23 : vector<1x256xi32>
    %25 = arith.extui %24 : vector<1x256xi1> to vector<1x256xi32>
    %26 = arith.sitofp %25 : vector<1x256xi32> to vector<1x256xf32>
    %c0_i32_6 = arith.constant 0 : i32
    %27 = vector.broadcast %c0_i32_6 : i32 to vector<1x256xi32>
    %28 = arith.cmpi ne, %18, %27 : vector<1x256xi32>
    %29 = arith.extui %28 : vector<1x256xi1> to vector<1x256xi32>
    %30 = arith.sitofp %29 : vector<1x256xi32> to vector<1x256xf32>
    %c15_i32 = arith.constant 15 : i32
    %31 = vector.broadcast %c15_i32 : i32 to vector<1x256xi32>
    %32 = arith.cmpi ne, %18, %31 : vector<1x256xi32>
    %33 = arith.extui %32 : vector<1x256xi1> to vector<1x256xi32>
    %34 = arith.sitofp %33 : vector<1x256xi32> to vector<1x256xf32>
    %cst = arith.constant dense<0.000000e+00> : vector<32xf32>
    %35 = vector.multi_reduction <add>, %1, %cst [1] : vector<32x256xf32> to vector<32xf32>
    %36 = vector.shape_cast %35 : vector<32xf32> to vector<32x1xf32>
    %cst_7 = arith.constant 3.906250e-03 : f32
    %37 = vector.broadcast %cst_7 : f32 to vector<32x1xf32>
    %38 = arith.mulf %36, %37 : vector<32x1xf32>
    %39 = arith.mulf %1, %1 : vector<32x256xf32>
    %cst_8 = arith.constant dense<0.000000e+00> : vector<32xf32>
    %40 = vector.multi_reduction <add>, %39, %cst_8 [1] : vector<32x256xf32> to vector<32xf32>
    %41 = vector.shape_cast %40 : vector<32xf32> to vector<32x1xf32>
    %cst_9 = arith.constant 3.906250e-03 : f32
    %42 = vector.broadcast %cst_9 : f32 to vector<32x1xf32>
    %43 = arith.mulf %41, %42 : vector<32x1xf32>
    %c0_10 = arith.constant 0 : index
    %c0_11 = arith.constant 0 : index
    %44 = vector.load %arg2[%c0_10, %c0_11] : memref<32x32xf32, #tpu.memory_space<vmem>>, vector<32x32xf32>
    %cst_12 = arith.constant dense<0.000000e+00> : vector<32x1xf32>
    %45 = tpu.matmul %44, %38, %cst_12 {dimension_numbers = #tpu.dot_dimension_numbers<[1], [0], [0], [1], [0, 0, 1, 1], [], []>} : vector<32x32xf32>, vector<32x1xf32>, vector<32x1xf32> -> vector<32x1xf32>
    %c0_13 = arith.constant 0 : index
    %c0_14 = arith.constant 0 : index
    %46 = vector.load %arg3[%c0_13, %c0_14] : memref<32x32xf32, #tpu.memory_space<vmem>>, vector<32x32xf32>
    %cst_15 = arith.constant dense<0.000000e+00> : vector<32x1xf32>
    %47 = tpu.matmul %46, %45, %cst_15 {dimension_numbers = #tpu.dot_dimension_numbers<[1], [0], [0], [1], [0, 0, 1, 1], [], []>} : vector<32x32xf32>, vector<32x1xf32>, vector<32x1xf32> -> vector<32x1xf32>
    %c0_16 = arith.constant 0 : index
    %c0_17 = arith.constant 0 : index
    %48 = vector.load %arg2[%c0_16, %c0_17] : memref<32x32xf32, #tpu.memory_space<vmem>>, vector<32x32xf32>
    %cst_18 = arith.constant dense<0.000000e+00> : vector<32x1xf32>
    %49 = tpu.matmul %48, %43, %cst_18 {dimension_numbers = #tpu.dot_dimension_numbers<[1], [0], [0], [1], [0, 0, 1, 1], [], []>} : vector<32x32xf32>, vector<32x1xf32>, vector<32x1xf32> -> vector<32x1xf32>
    %c0_19 = arith.constant 0 : index
    %c0_20 = arith.constant 0 : index
    %50 = vector.load %arg3[%c0_19, %c0_20] : memref<32x32xf32, #tpu.memory_space<vmem>>, vector<32x32xf32>
    %cst_21 = arith.constant dense<0.000000e+00> : vector<32x1xf32>
    %51 = tpu.matmul %50, %49, %cst_21 {dimension_numbers = #tpu.dot_dimension_numbers<[1], [0], [0], [1], [0, 0, 1, 1], [], []>} : vector<32x32xf32>, vector<32x1xf32>, vector<32x1xf32> -> vector<32x1xf32>
    %52 = arith.mulf %47, %47 : vector<32x1xf32>
    %53 = arith.subf %51, %52 : vector<32x1xf32>
    %cst_22 = arith.constant 9.99999997E-7 : f32
    %54 = vector.broadcast %cst_22 : f32 to vector<32x1xf32>
    %55 = arith.addf %53, %54 : vector<32x1xf32>
    %56 = math.rsqrt %55 : vector<32x1xf32>
    %c0_23 = arith.constant 0 : index
    %c0_24 = arith.constant 0 : index
    %57 = vector.load %arg4[%c0_23, %c0_24] : memref<32x1xf32, #tpu.memory_space<vmem>>, vector<32x1xf32>
    %58 = arith.mulf %56, %57 : vector<32x1xf32>
    %59 = vector.broadcast %47 : vector<32x1xf32> to vector<32x256xf32>
    %60 = arith.subf %1, %59 : vector<32x256xf32>
    %61 = vector.broadcast %58 : vector<32x1xf32> to vector<32x256xf32>
    %62 = arith.mulf %60, %61 : vector<32x256xf32>
    %c0_25 = arith.constant 0 : index
    %c0_26 = arith.constant 0 : index
    %63 = vector.load %arg5[%c0_25, %c0_26] : memref<32x1xf32, #tpu.memory_space<vmem>>, vector<32x1xf32>
    %64 = vector.broadcast %63 : vector<32x1xf32> to vector<32x256xf32>
    %65 = arith.addf %62, %64 : vector<32x256xf32>
    %cst_27 = arith.constant 0.000000e+00 : f32
    %66 = vector.broadcast %cst_27 : f32 to vector<32x256xf32>
    %67 = arith.subf %66, %65 : vector<32x256xf32>
    %68 = math.exp %67 : vector<32x256xf32>
    %cst_28 = arith.constant 1.000000e+00 : f32
    %69 = vector.broadcast %cst_28 : f32 to vector<32x256xf32>
    %70 = arith.addf %69, %68 : vector<32x256xf32>
    %71 = tpu.reciprocal %70 {approx = true} : vector<32x256xf32> -> vector<32x256xf32>
    %72 = arith.mulf %65, %71 : vector<32x256xf32>
    %c16_i32_29 = arith.constant 16 : i32
    %73 = tpu.dynamic_rotate %72 by %c16_i32_29 dim 1 : vector<32x256xf32>, i32 -> vector<32x256xf32>
    %74 = vector.broadcast %22 : vector<1x256xf32> to vector<32x256xf32>
    %75 = arith.mulf %73, %74 : vector<32x256xf32>
    %c240_i32_30 = arith.constant 240 : i32
    %76 = tpu.dynamic_rotate %72 by %c240_i32_30 dim 1 : vector<32x256xf32>, i32 -> vector<32x256xf32>
    %77 = vector.broadcast %26 : vector<1x256xf32> to vector<32x256xf32>
    %78 = arith.mulf %76, %77 : vector<32x256xf32>
    %79 = tpu.concatenate %75, %72, %78 in 0 : vector<32x256xf32>, vector<32x256xf32>, vector<32x256xf32> -> vector<96x256xf32>
    %80 = arith.truncf %79 : vector<96x256xf32> to vector<96x256xbf16>
    %c0_31 = arith.constant 0 : index
    %c0_32 = arith.constant 0 : index
    %c0_33 = arith.constant 0 : index
    %81 = vector.load %arg6[%c0_31, %c0_32, %c0_33] : memref<3x64x96xbf16, #tpu.memory_space<vmem>>, vector<1x64x96xbf16>
    %82 = vector.shape_cast %81 : vector<1x64x96xbf16> to vector<64x96xbf16>
    %cst_34 = arith.constant dense<0.000000e+00> : vector<64x256xf32>
    %83 = tpu.matmul %82, %80, %cst_34 {dimension_numbers = #tpu.dot_dimension_numbers<[1], [0], [0], [1], [0, 0, 1, 1], [], []>} : vector<64x96xbf16>, vector<96x256xbf16>, vector<64x256xf32> -> vector<64x256xf32>
    %c1 = arith.constant 1 : index
    %c0_35 = arith.constant 0 : index
    %c0_36 = arith.constant 0 : index
    %84 = vector.load %arg6[%c1, %c0_35, %c0_36] : memref<3x64x96xbf16, #tpu.memory_space<vmem>>, vector<1x64x96xbf16>
    %85 = vector.shape_cast %84 : vector<1x64x96xbf16> to vector<64x96xbf16>
    %cst_37 = arith.constant dense<0.000000e+00> : vector<64x256xf32>
    %86 = tpu.matmul %85, %80, %cst_37 {dimension_numbers = #tpu.dot_dimension_numbers<[1], [0], [0], [1], [0, 0, 1, 1], [], []>} : vector<64x96xbf16>, vector<96x256xbf16>, vector<64x256xf32> -> vector<64x256xf32>
    %c2 = arith.constant 2 : index
    %c0_38 = arith.constant 0 : index
    %c0_39 = arith.constant 0 : index
    %87 = vector.load %arg6[%c2, %c0_38, %c0_39] : memref<3x64x96xbf16, #tpu.memory_space<vmem>>, vector<1x64x96xbf16>
    %88 = vector.shape_cast %87 : vector<1x64x96xbf16> to vector<64x96xbf16>
    %cst_40 = arith.constant dense<0.000000e+00> : vector<64x256xf32>
    %89 = tpu.matmul %88, %80, %cst_40 {dimension_numbers = #tpu.dot_dimension_numbers<[1], [0], [0], [1], [0, 0, 1, 1], [], []>} : vector<64x96xbf16>, vector<96x256xbf16>, vector<64x256xf32> -> vector<64x256xf32>
    %c1_i32_41 = arith.constant 1 : i32
    %90 = tpu.dynamic_rotate %83 by %c1_i32_41 dim 1 : vector<64x256xf32>, i32 -> vector<64x256xf32>
    %91 = vector.broadcast %30 : vector<1x256xf32> to vector<64x256xf32>
    %92 = arith.mulf %90, %91 : vector<64x256xf32>
    %93 = arith.addf %86, %92 : vector<64x256xf32>
    %c255_i32 = arith.constant 255 : i32
    %94 = tpu.dynamic_rotate %89 by %c255_i32 dim 1 : vector<64x256xf32>, i32 -> vector<64x256xf32>
    %95 = vector.broadcast %34 : vector<1x256xf32> to vector<64x256xf32>
    %96 = arith.mulf %94, %95 : vector<64x256xf32>
    %97 = arith.addf %93, %96 : vector<64x256xf32>
    %c0_42 = arith.constant 0 : index
    %c0_43 = arith.constant 0 : index
    %98 = vector.load %arg7[%c0_42, %c0_43] : memref<64x1xf32, #tpu.memory_space<vmem>>, vector<64x1xf32>
    %99 = vector.broadcast %98 : vector<64x1xf32> to vector<64x256xf32>
    %100 = arith.addf %97, %99 : vector<64x256xf32>
    %cst_44 = arith.constant dense<0.000000e+00> : vector<64xf32>
    %101 = vector.multi_reduction <add>, %100, %cst_44 [1] : vector<64x256xf32> to vector<64xf32>
    %102 = vector.shape_cast %101 : vector<64xf32> to vector<64x1xf32>
    %cst_45 = arith.constant 3.906250e-03 : f32
    %103 = vector.broadcast %cst_45 : f32 to vector<64x1xf32>
    %104 = arith.mulf %102, %103 : vector<64x1xf32>
    %105 = arith.mulf %100, %100 : vector<64x256xf32>
    %cst_46 = arith.constant dense<0.000000e+00> : vector<64xf32>
    %106 = vector.multi_reduction <add>, %105, %cst_46 [1] : vector<64x256xf32> to vector<64xf32>
    %107 = vector.shape_cast %106 : vector<64xf32> to vector<64x1xf32>
    %cst_47 = arith.constant 3.906250e-03 : f32
    %108 = vector.broadcast %cst_47 : f32 to vector<64x1xf32>
    %109 = arith.mulf %107, %108 : vector<64x1xf32>
    %c0_48 = arith.constant 0 : index
    %c0_49 = arith.constant 0 : index
    %110 = vector.load %arg8[%c0_48, %c0_49] : memref<32x64xf32, #tpu.memory_space<vmem>>, vector<32x64xf32>
    %cst_50 = arith.constant dense<0.000000e+00> : vector<32x1xf32>
    %111 = tpu.matmul %110, %104, %cst_50 {dimension_numbers = #tpu.dot_dimension_numbers<[1], [0], [0], [1], [0, 0, 1, 1], [], []>} : vector<32x64xf32>, vector<64x1xf32>, vector<32x1xf32> -> vector<32x1xf32>
    %c0_51 = arith.constant 0 : index
    %c0_52 = arith.constant 0 : index
    %112 = vector.load %arg9[%c0_51, %c0_52] : memref<64x32xf32, #tpu.memory_space<vmem>>, vector<64x32xf32>
    %cst_53 = arith.constant dense<0.000000e+00> : vector<64x1xf32>
    %113 = tpu.matmul %112, %111, %cst_53 {dimension_numbers = #tpu.dot_dimension_numbers<[1], [0], [0], [1], [0, 0, 1, 1], [], []>} : vector<64x32xf32>, vector<32x1xf32>, vector<64x1xf32> -> vector<64x1xf32>
    %c0_54 = arith.constant 0 : index
    %c0_55 = arith.constant 0 : index
    %114 = vector.load %arg8[%c0_54, %c0_55] : memref<32x64xf32, #tpu.memory_space<vmem>>, vector<32x64xf32>
    %cst_56 = arith.constant dense<0.000000e+00> : vector<32x1xf32>
    %115 = tpu.matmul %114, %109, %cst_56 {dimension_numbers = #tpu.dot_dimension_numbers<[1], [0], [0], [1], [0, 0, 1, 1], [], []>} : vector<32x64xf32>, vector<64x1xf32>, vector<32x1xf32> -> vector<32x1xf32>
    %c0_57 = arith.constant 0 : index
    %c0_58 = arith.constant 0 : index
    %116 = vector.load %arg9[%c0_57, %c0_58] : memref<64x32xf32, #tpu.memory_space<vmem>>, vector<64x32xf32>
    %cst_59 = arith.constant dense<0.000000e+00> : vector<64x1xf32>
    %117 = tpu.matmul %116, %115, %cst_59 {dimension_numbers = #tpu.dot_dimension_numbers<[1], [0], [0], [1], [0, 0, 1, 1], [], []>} : vector<64x32xf32>, vector<32x1xf32>, vector<64x1xf32> -> vector<64x1xf32>
    %118 = arith.mulf %113, %113 : vector<64x1xf32>
    %119 = arith.subf %117, %118 : vector<64x1xf32>
    %cst_60 = arith.constant 9.99999997E-7 : f32
    %120 = vector.broadcast %cst_60 : f32 to vector<64x1xf32>
    %121 = arith.addf %119, %120 : vector<64x1xf32>
    %122 = math.rsqrt %121 : vector<64x1xf32>
    %c0_61 = arith.constant 0 : index
    %c0_62 = arith.constant 0 : index
    %123 = vector.load %arg10[%c0_61, %c0_62] : memref<64x1xf32, #tpu.memory_space<vmem>>, vector<64x1xf32>
    %124 = arith.mulf %122, %123 : vector<64x1xf32>
    %125 = vector.broadcast %113 : vector<64x1xf32> to vector<64x256xf32>
    %126 = arith.subf %100, %125 : vector<64x256xf32>
    %127 = vector.broadcast %124 : vector<64x1xf32> to vector<64x256xf32>
    %128 = arith.mulf %126, %127 : vector<64x256xf32>
    %c0_63 = arith.constant 0 : index
    %c0_64 = arith.constant 0 : index
    %129 = vector.load %arg11[%c0_63, %c0_64] : memref<64x1xf32, #tpu.memory_space<vmem>>, vector<64x1xf32>
    %130 = vector.broadcast %129 : vector<64x1xf32> to vector<64x256xf32>
    %131 = arith.addf %128, %130 : vector<64x256xf32>
    %cst_65 = arith.constant 0.000000e+00 : f32
    %132 = vector.broadcast %cst_65 : f32 to vector<64x256xf32>
    %133 = arith.subf %132, %131 : vector<64x256xf32>
    %134 = math.exp %133 : vector<64x256xf32>
    %cst_66 = arith.constant 1.000000e+00 : f32
    %135 = vector.broadcast %cst_66 : f32 to vector<64x256xf32>
    %136 = arith.addf %135, %134 : vector<64x256xf32>
    %137 = tpu.reciprocal %136 {approx = true} : vector<64x256xf32> -> vector<64x256xf32>
    %138 = arith.mulf %131, %137 : vector<64x256xf32>
    %c16_i32_67 = arith.constant 16 : i32
    %139 = tpu.dynamic_rotate %138 by %c16_i32_67 dim 1 : vector<64x256xf32>, i32 -> vector<64x256xf32>
    %140 = vector.broadcast %22 : vector<1x256xf32> to vector<64x256xf32>
    %141 = arith.mulf %139, %140 : vector<64x256xf32>
    %c240_i32_68 = arith.constant 240 : i32
    %142 = tpu.dynamic_rotate %138 by %c240_i32_68 dim 1 : vector<64x256xf32>, i32 -> vector<64x256xf32>
    %143 = vector.broadcast %26 : vector<1x256xf32> to vector<64x256xf32>
    %144 = arith.mulf %142, %143 : vector<64x256xf32>
    %145 = tpu.concatenate %141, %138, %144 in 0 : vector<64x256xf32>, vector<64x256xf32>, vector<64x256xf32> -> vector<192x256xf32>
    %146 = arith.truncf %145 : vector<192x256xf32> to vector<192x256xbf16>
    %c0_69 = arith.constant 0 : index
    %c0_70 = arith.constant 0 : index
    %c0_71 = arith.constant 0 : index
    %147 = vector.load %arg12[%c0_69, %c0_70, %c0_71] : memref<3x64x192xbf16, #tpu.memory_space<vmem>>, vector<1x64x192xbf16>
    %148 = vector.shape_cast %147 : vector<1x64x192xbf16> to vector<64x192xbf16>
    %cst_72 = arith.constant dense<0.000000e+00> : vector<64x256xf32>
    %149 = tpu.matmul %148, %146, %cst_72 {dimension_numbers = #tpu.dot_dimension_numbers<[1], [0], [0], [1], [0, 0, 1, 1], [], []>} : vector<64x192xbf16>, vector<192x256xbf16>, vector<64x256xf32> -> vector<64x256xf32>
    %c1_73 = arith.constant 1 : index
    %c0_74 = arith.constant 0 : index
    %c0_75 = arith.constant 0 : index
    %150 = vector.load %arg12[%c1_73, %c0_74, %c0_75] : memref<3x64x192xbf16, #tpu.memory_space<vmem>>, vector<1x64x192xbf16>
    %151 = vector.shape_cast %150 : vector<1x64x192xbf16> to vector<64x192xbf16>
    %cst_76 = arith.constant dense<0.000000e+00> : vector<64x256xf32>
    %152 = tpu.matmul %151, %146, %cst_76 {dimension_numbers = #tpu.dot_dimension_numbers<[1], [0], [0], [1], [0, 0, 1, 1], [], []>} : vector<64x192xbf16>, vector<192x256xbf16>, vector<64x256xf32> -> vector<64x256xf32>
    %c2_77 = arith.constant 2 : index
    %c0_78 = arith.constant 0 : index
    %c0_79 = arith.constant 0 : index
    %153 = vector.load %arg12[%c2_77, %c0_78, %c0_79] : memref<3x64x192xbf16, #tpu.memory_space<vmem>>, vector<1x64x192xbf16>
    %154 = vector.shape_cast %153 : vector<1x64x192xbf16> to vector<64x192xbf16>
    %cst_80 = arith.constant dense<0.000000e+00> : vector<64x256xf32>
    %155 = tpu.matmul %154, %146, %cst_80 {dimension_numbers = #tpu.dot_dimension_numbers<[1], [0], [0], [1], [0, 0, 1, 1], [], []>} : vector<64x192xbf16>, vector<192x256xbf16>, vector<64x256xf32> -> vector<64x256xf32>
    %c1_i32_81 = arith.constant 1 : i32
    %156 = tpu.dynamic_rotate %149 by %c1_i32_81 dim 1 : vector<64x256xf32>, i32 -> vector<64x256xf32>
    %157 = vector.broadcast %30 : vector<1x256xf32> to vector<64x256xf32>
    %158 = arith.mulf %156, %157 : vector<64x256xf32>
    %159 = arith.addf %152, %158 : vector<64x256xf32>
    %c255_i32_82 = arith.constant 255 : i32
    %160 = tpu.dynamic_rotate %155 by %c255_i32_82 dim 1 : vector<64x256xf32>, i32 -> vector<64x256xf32>
    %161 = vector.broadcast %34 : vector<1x256xf32> to vector<64x256xf32>
    %162 = arith.mulf %160, %161 : vector<64x256xf32>
    %163 = arith.addf %159, %162 : vector<64x256xf32>
    %c0_83 = arith.constant 0 : index
    %c0_84 = arith.constant 0 : index
    %164 = vector.load %arg13[%c0_83, %c0_84] : memref<64x1xf32, #tpu.memory_space<vmem>>, vector<64x1xf32>
    %165 = vector.broadcast %164 : vector<64x1xf32> to vector<64x256xf32>
    %166 = arith.addf %163, %165 : vector<64x256xf32>
    %c0_85 = arith.constant 0 : index
    %c0_86 = arith.constant 0 : index
    %167 = vector.load %arg14[%c0_85, %c0_86] : memref<64x32xbf16, #tpu.memory_space<vmem>>, vector<64x32xbf16>
    %168 = arith.truncf %1 : vector<32x256xf32> to vector<32x256xbf16>
    %cst_87 = arith.constant dense<0.000000e+00> : vector<64x256xf32>
    %169 = tpu.matmul %167, %168, %cst_87 {dimension_numbers = #tpu.dot_dimension_numbers<[1], [0], [0], [1], [0, 0, 1, 1], [], []>} : vector<64x32xbf16>, vector<32x256xbf16>, vector<64x256xf32> -> vector<64x256xf32>
    %c0_88 = arith.constant 0 : index
    %c0_89 = arith.constant 0 : index
    %170 = vector.load %arg15[%c0_88, %c0_89] : memref<64x1xf32, #tpu.memory_space<vmem>>, vector<64x1xf32>
    %171 = vector.broadcast %170 : vector<64x1xf32> to vector<64x256xf32>
    %172 = arith.addf %169, %171 : vector<64x256xf32>
    %173 = arith.addf %166, %172 : vector<64x256xf32>
    %c0_90 = arith.constant 0 : index
    %c0_91 = arith.constant 0 : index
    %c0_92 = arith.constant 0 : index
    %174 = vector.load %arg16[%c0_90, %c0_91, %c0_92] : memref<1x64x256xf32, #tpu.memory_space<vmem>>, vector<1x64x256xf32>
    %175 = vector.shape_cast %174 : vector<1x64x256xf32> to vector<64x256xf32>
    %176 = vector.shape_cast %173 : vector<64x256xf32> to vector<1x64x256xf32>
    tpu.vector_store %arg16[%c0_90, %c0_91, %c0_92], %176 {strides = array<i32>} : memref<1x64x256xf32, #tpu.memory_space<vmem>>, vector<1x64x256xf32>,
    return
  }
  func.func @transform_0(%arg0: i32) -> (i32, i32, i32) {
    %c0_i32 = arith.constant 0 : i32
    %c0_i32_0 = arith.constant 0 : i32
    %c0_i32_1 = arith.constant 0 : i32
    return %arg0, %c0_i32, %c0_i32_0 : i32, i32, i32
  }
  func.func @transform_1(%arg0: i32) -> (i32, i32) {
    %c0_i32 = arith.constant 0 : i32
    %c0_i32_0 = arith.constant 0 : i32
    %c0_i32_1 = arith.constant 0 : i32
    return %c0_i32, %c0_i32_0 : i32, i32
  }
  func.func @transform_2(%arg0: i32) -> (i32, i32) {
    %c0_i32 = arith.constant 0 : i32
    %c0_i32_0 = arith.constant 0 : i32
    %c0_i32_1 = arith.constant 0 : i32
    return %c0_i32, %c0_i32_0 : i32, i32
  }
  func.func @transform_3(%arg0: i32) -> (i32, i32) {
    %c0_i32 = arith.constant 0 : i32
    %c0_i32_0 = arith.constant 0 : i32
    %c0_i32_1 = arith.constant 0 : i32
    return %c0_i32, %c0_i32_0 : i32, i32
  }
  func.func @transform_4(%arg0: i32) -> (i32, i32) {
    %c0_i32 = arith.constant 0 : i32
    %c0_i32_0 = arith.constant 0 : i32
    %c0_i32_1 = arith.constant 0 : i32
    return %c0_i32, %c0_i32_0 : i32, i32
  }
  func.func @transform_5(%arg0: i32) -> (i32, i32, i32) {
    %c0_i32 = arith.constant 0 : i32
    %c0_i32_0 = arith.constant 0 : i32
    %c0_i32_1 = arith.constant 0 : i32
    %c0_i32_2 = arith.constant 0 : i32
    return %c0_i32, %c0_i32_0, %c0_i32_1 : i32, i32, i32
  }
  func.func @transform_6(%arg0: i32) -> (i32, i32) {
    %c0_i32 = arith.constant 0 : i32
    %c0_i32_0 = arith.constant 0 : i32
    %c0_i32_1 = arith.constant 0 : i32
    return %c0_i32, %c0_i32_0 : i32, i32
  }
  func.func @transform_7(%arg0: i32) -> (i32, i32) {
    %c0_i32 = arith.constant 0 : i32
    %c0_i32_0 = arith.constant 0 : i32
    %c0_i32_1 = arith.constant 0 : i32
    return %c0_i32, %c0_i32_0 : i32, i32
  }
  func.func @transform_8(%arg0: i32) -> (i32, i32) {
    %c0_i32 = arith.constant 0 : i32
    %c0_i32_0 = arith.constant 0 : i32
    %c0_i32_1 = arith.constant 0 : i32
    return %c0_i32, %c0_i32_0 : i32, i32
  }
  func.func @transform_9(%arg0: i32) -> (i32, i32) {
    %c0_i32 = arith.constant 0 : i32
    %c0_i32_0 = arith.constant 0 : i32
    %c0_i32_1 = arith.constant 0 : i32
    return %c0_i32, %c0_i32_0 : i32, i32
  }
  func.func @transform_10(%arg0: i32) -> (i32, i32) {
    %c0_i32 = arith.constant 0 : i32
    %c0_i32_0 = arith.constant 0 : i32
    %c0_i32_1 = arith.constant 0 : i32
    return %c0_i32, %c0_i32_0 : i32, i32
  }
  func.func @transform_11(%arg0: i32) -> (i32, i32, i32) {
    %c0_i32 = arith.constant 0 : i32
    %c0_i32_0 = arith.constant 0 : i32
    %c0_i32_1 = arith.constant 0 : i32
    %c0_i32_2 = arith.constant 0 : i32
    return %c0_i32, %c0_i32_0, %c0_i32_1 : i32, i32, i32
  }
  func.func @transform_12(%arg0: i32) -> (i32, i32) {
    %c0_i32 = arith.constant 0 : i32
    %c0_i32_0 = arith.constant 0 : i32
    %c0_i32_1 = arith.constant 0 : i32
    return %c0_i32, %c0_i32_0 : i32, i32
  }
  func.func @transform_13(%arg0: i32) -> (i32, i32) {
    %c0_i32 = arith.constant 0 : i32
    %c0_i32_0 = arith.constant 0 : i32
    %c0_i32_1 = arith.constant 0 : i32
    return %c0_i32, %c0_i32_0 : i32, i32
  }
  func.func @transform_14(%arg0: i32) -> (i32, i32) {
    %c0_i32 = arith.constant 0 : i32
    %c0_i32_0 = arith.constant 0 : i32
    %c0_i32_1 = arith.constant 0 : i32
    return %c0_i32, %c0_i32_0 : i32, i32
  }
  func.func @transform_15(%arg0: i32) -> (i32, i32, i32) {
    %c0_i32 = arith.constant 0 : i32
    %c0_i32_0 = arith.constant 0 : i32
    %c0_i32_1 = arith.constant 0 : i32
    return %arg0, %c0_i32, %c0_i32_0 : i32, i32, i32
  }
}

</mosaic_0001>

<bundles_post_ra>
// kernel: resnet_block_forward.1
= control target key start
LH: loop header
LB: loop body
LE: loop exit
PB: predicated region body
PF: predicated region fallthrough
CT: control target
= control target key end

     0   :  { %s3907_s18 = smov 0   ;;  %s5575_s0 = inlined_call_operand.vmem [shape: f32[2,32,256], index: 0, kind: input, shape index: {}]   ;;  %s5576_s1 = inlined_call_operand.vmem [shape: f32[32,32], index: 1, kind: input, shape index: {}, may-alias: {1,2}]   ;;  %s5577_s2 = inlined_call_operand.vmem [shape: f32[32,32], index: 2, kind: input, shape index: {}, may-alias: {1,2}]   ;;  %s5578_s3 = inlined_call_operand.vmem [shape: f32[32,1], index: 3, kind: input, shape index: {}]   ;;  %s5579_s4 = inlined_call_operand.vmem [shape: f32[32,1], index: 4, kind: input, shape index: {}]   ;;  %s5580_s5 = inlined_call_operand.vmem [shape: bf16[3,64,96], index: 5, kind: input, shape index: {}]   ;;  %s5581_s6 = inlined_call_operand.vmem [shape: f32[64,1], index: 6, kind: input, shape index: {}]   ;;  %s5582_s7 = inlined_call_operand.vmem [shape: f32[32,64], index: 7, kind: input, shape index: {}]   ;;  %s5583_s8 = inlined_call_operand.vmem [shape: f32[64,32], index: 8, kind: input, shape index: {}]   ;;  %s5584_s9 = inlined_call_operand.vmem [shape: f32[64,1], index: 9, kind: input, shape index: {}]   ;;  %s5585_s10 = inlined_call_operand.vmem [shape: f32[64,1], index: 10, kind: input, shape index: {}]   ;;  %s5586_s11 = inlined_call_operand.vmem [shape: bf16[3,64,192], index: 11, kind: input, shape index: {}]   ;;  %s5587_s12 = inlined_call_operand.vmem [shape: f32[64,1], index: 12, kind: input, shape index: {}]   ;;  %s5588_s13 = inlined_call_operand.vmem [shape: bf16[64,32], index: 13, kind: input, shape index: {}]   ;;  %s5589_s14 = inlined_call_operand.vmem [shape: f32[64,1], index: 14, kind: input, shape index: {}]   ;;  %s5590_s15 = inlined_call_operand.vmem [shape: f32[2,64,256], index: 15, kind: output, shape index: {}]  }
   0x1 LB: > { %s3301_s19 = sadd.s32 4294967295, %s3819_s18   ;;  %p3305_p0 = scmp.ge.s32.totalorder %s3819_s18, 1  ;;  %s3819_s18 = sphi %s3907_s18, %s25_s18  }
   0x2   : > { %p437_p1 = scmp.lt.s32.totalorder %s3819_s18, 3 }
   0x4   : > { %p438_p2 = pnand %p3305_p0, %p437_p1 }
   0x6   : > { %441 = sbr.rel (%p438_p2) target bundleno = 2382 (0x94e), region = 80 }
   0xb   : > { %p485_p3 = scmp.lt.s32.totalorder %s3301_s19, 1  ;;  %v595_v36 = vld [vmem:[%s5576_s1] sm:$0xff]  ;;  %vm599_vm0 = vcmask 261120   ;;  %v596_v41 = vld [vmem:[%s5576_s1 + $0x8] sm:$0xff]  ;;  %v597_v42 = vld [vmem:[%s5576_s1 + $0x10] sm:$0xff]  ;;  %v3821_v53 = vmov 0  }
   0xc   : > { %v598_v43 = vld [vmem:[%s5576_s1 + $0x18] sm:$0xff]  ;;  %v862_v52 = vld [vmem:[%s5579_s4 + $0x10] sm:$0xff]  ;;  %3682 = vset.pattern.permute.xlu2 %v3821_v53  ;;  %3683 = vset.pattern.permute.xlu1 %v3821_v53  ;;  %v641_v54 = vld [vmem:[%s5577_s2] sm:$0xff]  ;;  %s3822_s17 = smov 112   ;;  %s5593_s24 = smov 1  }
   0xd   : > { %s5609_s19 = smov (!%p485_p3, %s3301_s19), 1  ;;  %3684 = vset.pattern.permute.xlu0 %v3821_v53  ;;  %v642_v55 = vld [vmem:[%s5577_s2 + $0x8] sm:$0xff]  ;;  %v643_v56 = vld [vmem:[%s5577_s2 + $0x10] sm:$0xff]  ;;  %v644_v57 = vld [vmem:[%s5577_s2 + $0x18] sm:$0xff]  ;;  %s5591_s25 = smov 127  }
   0xe   : > { %s3606_s20 = sshll.u32 %s5609_s19, 6  ;;  %v863_v58 = vld [vmem:[%s5579_s4 + $0x18] sm:$0xff]  ;;  %s3607_s29 = sshll.u32 %s5609_s19, 7 }
   0xf   : > { %s3921_s23 = scalar_lea.vmem %s5575_s0, %s3606_s20  ;;  %v799_v53 = vld [vmem:[%s5578_s3 + $0x18] sm:$0xff]  ;;  %s3823_s20 = smov 16  }
  0x10   : > { %v3924_v0 = vld [vmem:[%s3921_s23 + $0x30] sm:$0xff]  ;;  %v3927_v1 = vld [vmem:[%s3921_s23 + $0x38] sm:$0xff]  ;;  %v3946_v9 = vld [vmem:[%s3921_s23 + $0x20] sm:$0xff] }
  0x11   : > { %v3930_v2 = vld [vmem:[%s3921_s23 + $0x10] sm:$0xff]  ;;  %v577_v3 = vmul.f32 %v3924_v0, %v3924_v0  ;;  %v578_v4 = vmul.f32 %v3927_v1, %v3927_v1  ;;  %v3937_v5 = vld [vmem:[%s3921_s23 + $0x18] sm:$0xff]  ;;  %v564_v7 = vadd.f32 %v3927_v1, %v3924_v0  ;;  %v3949_v10 = vld [vmem:[%s3921_s23 + $0x28] sm:$0xff]  ;;  %v575_v15 = vmul.f32 %v3946_v9, %v3946_v9 }
  0x12   : > { %v573_v6 = vmul.f32 %v3930_v2, %v3930_v2  ;;  %v574_v8 = vmul.f32 %v3937_v5, %v3937_v5  ;;  %v3952_v12 = vld [vmem:[%s3921_s23] sm:$0xff]  ;;  %v3955_v13 = vld [vmem:[%s3921_s23 + $0x8] sm:$0xff]  ;;  %v576_v16 = vmul.f32 %v3949_v10, %v3949_v10  ;;  %v561_v19 = vadd.f32 %v3949_v10, %v3946_v9 }
  0x13   : > { %v588_v11 = vadd.f32 %v578_v4, %v577_v3  ;;  %565 = vadd.xlane.f32.xlu2 %v564_v7  ;;  %v571_v17 = vmul.f32 %v3952_v12, %v3952_v12  ;;  %v572_v18 = vmul.f32 %v3955_v13, %v3955_v13  ;;  %v558_v22 = vadd.f32 %v3937_v5, %v3930_v2 }
  0x14   : > { %v582_v14 = vadd.f32 %v574_v8, %v573_v6  ;;  %v585_v20 = vadd.f32 %v576_v16, %v575_v15  ;;  %v555_v23 = vadd.f32 %v3955_v13, %v3952_v12 }
  0x15   : > { %589 = vadd.xlane.f32.xlu0 %v588_v11  ;;  %v579_v21 = vadd.f32 %v572_v18, %v571_v17 }
  0x16   : > { %583 = vadd.xlane.f32.xlu1 %v582_v14 }
  0x1b   : > { %562 = vadd.xlane.f32.xlu2 %v561_v19 }
  0x1d   : > { %586 = vadd.xlane.f32.xlu0 %v585_v20 }
  0x1e   : > { %580 = vadd.xlane.f32.xlu1 %v579_v21 }
  0x25   : > { %559 = vadd.xlane.f32.xlu0 %v558_v22 }
  0x26   : > { %556 = vadd.xlane.f32.xlu1 %v555_v23 }
  0x33   : > { %876 = vperm.xlu2 %3682, %v862_v52  }
  0x3f   : > { %881 = vperm.xlu1 %3683, %v863_v58  }
  0x86   : > { %v566_v24 = vpop.xlane.xlu2 %565 }
  0x87   : > { %v570_v25 = vmul.f32 0.00390625, %v566_v24 }
  0x88   : > { %v590_v26 = vpop.xlane.xlu0 %589 }
  0x89   : > { %v584_v27 = vpop.xlane.xlu1 %583  ;;  %v594_v28 = vmul.f32 0.00390625, %v590_v26  ;;  %624 = vmatpush.msra.mxu0 %v570_v25 }
  0x8a   : > { %v592_v34 = vmul.f32 0.00390625, %v584_v27  ;;  %v796_v27 = vld [vmem:[%s5578_s3] sm:$0xff] }
  0x8b   : > { %698 = vmatpush.msra.mxu2 %v594_v28 }
  0x8e   : > { %v563_v29 = vpop.xlane.xlu2 %562 }
  0x8f   : > { %v569_v30 = vmul.f32 0.00390625, %v563_v29 }
  0x90   : > { %v587_v31 = vpop.xlane.xlu0 %586 }
  0x91   : > { %v581_v32 = vpop.xlane.xlu1 %580  ;;  %v593_v33 = vmul.f32 0.00390625, %v587_v31  ;;  %625 = vmatpush.msra.mxu0 %v569_v30 }
  0x92   : > { %v591_v35 = vmul.f32 0.00390625, %v581_v32 }
  0x93   : > { %699 = vmatpush.msra.mxu2 %v593_v33 }
  0x95   : > { %700 = vmatpush.msra.mxu2 %v592_v34 }
  0x97   : > { %701 = vmatpush.msra.mxu2 %v591_v35 }
  0x98   : > { %v560_v37 = vpop.xlane.xlu0 %559  ;;  %3324 = vmatmul.msk.f32.vlgmr.msra.gmra.mxu2 %vm599_vm0, %v595_v36 }
  0x99   : > { %v557_v38 = vpop.xlane.xlu1 %556  ;;  %v568_v39 = vmul.f32 0.00390625, %v560_v37 }
  0x9a   : > { %v567_v40 = vmul.f32 0.00390625, %v557_v38  ;;  %v861_v38 = vld [vmem:[%s5579_s4 + $0x8] sm:$0xff] }
  0x9b   : > { %626 = vmatpush.msra.mxu0 %v568_v39 }
  0x9d   : > { %627 = vmatpush.msra.mxu0 %v567_v40 }
  0x9e   : > { %3316 = vmatmul.msk.f32.vlgmr.msra.gmra.mxu0 %vm599_vm0, %v595_v36 }
  0xa0   : > { %3325 = vmatmul.msk.f32.gmra.mxu2 %vm599_vm0, %v596_v41 }
  0xa6   : > { %3317 = vmatmul.msk.f32.gmra.mxu0 %vm599_vm0, %v596_v41 }
  0xa8   : > { %3326 = vmatmul.msk.f32.gmra.mxu2 %vm599_vm0, %v597_v42 }
  0xae   : > { %3318 = vmatmul.msk.f32.gmra.mxu0 %vm599_vm0, %v597_v42 }
  0xb0   : > { %3327 = vmatmul.msk.f32.gmra.mxu2 %vm599_vm0, %v598_v43 }
  0xb6   : > { %3319 = vmatmul.msk.f32.gmra.mxu0 %vm599_vm0, %v598_v43 }
 0x11b   : > { %v629_v44 = vpop.f32.mrf.mxu0  ;;  %v703_v45 = vpop.f32.mrf.mxu2 }
 0x123   : > { %v632_v46 = vpop.f32.mrf.mxu0  ;;  %v706_v47 = vpop.f32.mrf.mxu2 }
 0x12b   : > { %v635_v48 = vpop.f32.mrf.mxu0  ;;  %v709_v49 = vpop.f32.mrf.mxu2 }
 0x133   : > { %v638_v50 = vpop.f32.mrf.mxu0  ;;  %v712_v51 = vpop.f32.mrf.mxu2 }
 0x134   : > { %669 = vmatpush.msra.mxu1 %v638_v50  ;;  %727 = vmatpush.msra.mxu3 %v712_v51 }
 0x136   : > { %670 = vmatpush.msra.mxu1 %v635_v48  ;;  %728 = vmatpush.msra.mxu3 %v709_v49 }
 0x138   : > { %671 = vmatpush.msra.mxu1 %v632_v46  ;;  %729 = vmatpush.msra.mxu3 %v706_v47 }
 0x13a   : > { %672 = vmatpush.msra.mxu1 %v629_v44  ;;  %730 = vmatpush.msra.mxu3 %v703_v45  ;;  %v798_v44 = vld [vmem:[%s5578_s3 + $0x10] sm:$0xff] }
 0x13b   : > { %3320 = vmatmul.msk.f32.vlgmr.msra.gmra.mxu1 %vm599_vm0, %v641_v54  ;;  %3328 = vmatmul.msk.f32.vlgmr.msra.gmra.mxu3 %vm599_vm0, %v641_v54  ;;  %v860_v54 = vld [vmem:[%s5579_s4] sm:$0xff] }
 0x143   : > { %3321 = vmatmul.msk.f32.gmra.mxu1 %vm599_vm0, %v642_v55  ;;  %3329 = vmatmul.msk.f32.gmra.mxu3 %vm599_vm0, %v642_v55 }
 0x14b   : > { %3322 = vmatmul.msk.f32.gmra.mxu1 %vm599_vm0, %v643_v56  ;;  %3330 = vmatmul.msk.f32.gmra.mxu3 %vm599_vm0, %v643_v56 }
 0x153   : > { %3323 = vmatmul.msk.f32.gmra.mxu1 %vm599_vm0, %v644_v57  ;;  %3331 = vmatmul.msk.f32.gmra.mxu3 %vm599_vm0, %v644_v57 }
 0x1b8   : > { %v674_v59 = vpop.f32.mrf.mxu1 }
 0x1b9   : > { %806 = vperm.xlu2 %3682, %v674_v59   ;;  %v744_v60 = vmul.f32 %v674_v59, %v674_v59  ;;  %v797_v59 = vld [vmem:[%s5578_s3 + $0x8] sm:$0xff] }
 0x1be   : > { %v732_v61 = vpop.f32.mrf.mxu3 }
 0x1bf   : > { %v748_v62 = vsub.f32 %v732_v61, %v744_v60  ;;  %v877_v61 = vpop.permute.xlu2 %876 }
 0x1c0   : > { %v677_v63 = vpop.f32.mrf.mxu1 }
 0x1c1   : > { %v752_v3 = vadd.f32 1e-06, %v748_v62  ;;  %811 = vperm.xlu1 %3683, %v677_v63   ;;  %v745_v8 = vmul.f32 %v677_v63, %v677_v63 }
 0x1c3   : > { %3685 = vrsqrt.f32 %v752_v3  ;;  %vm762_vm2 = vweird.f32 %v752_v3 }
 0x1c6   : > { %v735_v4 = vpop.f32.mrf.mxu3 }
 0x1c7   : > { %v749_v16 = vsub.f32 %v735_v4, %v745_v8 }
 0x1c8   : > { %v680_v6 = vpop.f32.mrf.mxu1 }
 0x1c9   : > { %v3686_v7 = vpop.eup %3685  ;;  %816 = vperm.xlu2 %3682, %v680_v6   ;;  %v746_v14 = vmul.f32 %v680_v6, %v680_v6  ;;  %v753_v22 = vadd.f32 1e-06, %v749_v16 }
 0x1ca   : > { %v757_v11 = vmul.f32 %v3686_v7, %v752_v3  ;;  %vm763_vm1 = vweird.f32 %v3686_v7  ;;  %v882_v3 = vpop.permute.xlu1 %881 }
 0x1cb   : > { %vm764_vm3 = vmor %vm762_vm2, %vm763_vm1  ;;  %vm772_vm11 = vweird.f32 %v753_v22 }
 0x1cc   : > { %v758_v15 = vmul.f32 %v3686_v7, %v757_v11 }
 0x1ce   : > { %v759_v17 = vmul.f32 0.5, %v758_v15  ;;  %v738_v18 = vpop.f32.mrf.mxu3 }
 0x1cf   : > { %v750_v19 = vsub.f32 %v738_v18, %v746_v14 }
 0x1d0   : > { %v760_v20 = vsub.f32 1.5, %v759_v17  ;;  %v683_v21 = vpop.f32.mrf.mxu1 }
 0x1d1   : > { %v754_v23 = vadd.f32 1e-06, %v750_v19  ;;  %821 = vperm.xlu0 %3684, %v683_v21   ;;  %v747_v25 = vmul.f32 %v683_v21, %v683_v21 }
 0x1d2   : > { %v761_v24 = vmul.f32 %v3686_v7, %v760_v20 }
 0x1d3   : > { %3687 = vrsqrt.f32 %v754_v23  ;;  %vm782_vm5 = vweird.f32 %v754_v23 }
 0x1d4   : > { %v765_v26 = vsel %vm764_vm3, %v3686_v7, %v761_v24  ;;  %3689 = vrsqrt.f32 %v753_v22 }
 0x1d5   : > { %v800_v30 = vmul.f32 %v796_v27, %v765_v26 }
 0x1d6   : > { %v741_v28 = vpop.f32.mrf.mxu3 }
 0x1d7   : > { %v751_v29 = vsub.f32 %v741_v28, %v747_v25 }
 0x1d9   : > { %v3688_v31 = vpop.eup %3687  ;;  %v755_v32 = vadd.f32 1e-06, %v751_v29  ;;  %834 = vperm.xlu0 %3684, %v800_v30  }
 0x1da   : > { %v777_v33 = vmul.f32 %v3688_v31, %v754_v23  ;;  %v3690_v34 = vpop.eup %3689  ;;  %vm783_vm4 = vweird.f32 %v3688_v31 }
 0x1db   : > { %3691 = vrsqrt.f32 %v755_v32  ;;  %v767_v36 = vmul.f32 %v3690_v34, %v753_v22  ;;  %vm784_vm6 = vmor %vm782_vm5, %vm783_vm4  ;;  %vm792_vm7 = vweird.f32 %v755_v32  ;;  %vm773_vm10 = vweird.f32 %v3690_v34 }
 0x1dc   : > { %v778_v35 = vmul.f32 %v3688_v31, %v777_v33  ;;  %vm774_vm12 = vmor %vm772_vm11, %vm773_vm10 }
 0x1dd   : > { %v768_v41 = vmul.f32 %v3690_v34, %v767_v36 }
 0x1de   : > { %v779_v37 = vmul.f32 0.5, %v778_v35 }
 0x1df   : > { %v769_v48 = vmul.f32 0.5, %v768_v41 }
 0x1e0   : > { %v780_v39 = vsub.f32 1.5, %v779_v37 }
 0x1e1   : > { %v3692_v40 = vpop.eup %3691  ;;  %871 = vperm.xlu0 %3684, %v861_v38   ;;  %v770_v51 = vsub.f32 1.5, %v769_v48 }
 0x1e2   : > { %v787_v42 = vmul.f32 %v3692_v40, %v755_v32  ;;  %v781_v43 = vmul.f32 %v3688_v31, %v780_v39  ;;  %vm793_vm8 = vweird.f32 %v3692_v40 }
 0x1e3   : > { %vm794_vm9 = vmor %vm792_vm7, %vm793_vm8  ;;  %v771_v57 = vmul.f32 %v3690_v34, %v770_v51 }
 0x1e4   : > { %v788_v45 = vmul.f32 %v3692_v40, %v787_v42  ;;  %v785_v46 = vsel %vm784_vm6, %v3688_v31, %v781_v43  ;;  %vm1046_vm6 = vcmask 785408  }
 0x1e5   : > { %v802_v47 = vmul.f32 %v798_v44, %v785_v46  ;;  %v775_v58 = vsel %vm774_vm12, %v3690_v34, %v771_v57 }
 0x1e6   : > { %v789_v49 = vmul.f32 0.5, %v788_v45  ;;  %v801_v60 = vmul.f32 %v797_v59, %v775_v58 }
 0x1e7   : > { %844 = vperm.xlu1 %3683, %v802_v47  }
 0x1e8   : > { %v790_v50 = vsub.f32 1.5, %v789_v49 }
 0x1ea   : > { %v791_v52 = vmul.f32 %v3692_v40, %v790_v50 }
 0x1ec   : > { %v795_v55 = vsel %vm794_vm9, %v3692_v40, %v791_v52  ;;  %vm1609_vm9 = vcmask 523264  }
 0x1ed   : > { %v803_v56 = vmul.f32 %v799_v53, %v795_v55 }
 0x1ef   : > { %866 = vperm.xlu1 %3683, %v860_v54   ;;  %849 = vperm.xlu2 %3682, %v803_v56  }
 0x1f7   : > { %839 = vperm.xlu2 %3682, %v801_v60  }
 0x213   : > { %v807_v62 = vpop.permute.xlu2 %806 }
 0x214   : > { %v824_v38 = vsub.f32 %v3952_v12, %v807_v62  ;;  %v825_v39 = vsub.f32 %v3955_v13, %v807_v62 }
 0x223   : > { %v817_v63 = vpop.permute.xlu2 %816 }
 0x224   : > { %v828_v29 = vsub.f32 %v3946_v9, %v817_v63 }
 0x233   : > { %v812_v15 = vpop.permute.xlu1 %811 }
 0x234   : > { %v826_v18 = vsub.f32 %v3930_v2, %v812_v15  ;;  %v827_v19 = vsub.f32 %v3937_v5, %v812_v15  ;;  %v829_v2 = vsub.f32 %v3949_v10, %v817_v63 }
 0x243   : > { %v822_v4 = vpop.permute.xlu0 %821 }
 0x244   : > { %v830_v6 = vsub.f32 %v3924_v0, %v822_v4  ;;  %v831_v7 = vsub.f32 %v3927_v1, %v822_v4 }
 0x249   : > { %v850_v8 = vpop.permute.xlu2 %849 }
 0x24a   : > { %v858_v11 = vmul.f32 %v850_v8, %v830_v6  ;;  %v859_v16 = vmul.f32 %v850_v8, %v831_v7 }
 0x24b   : > { %v835_v14 = vpop.permute.xlu0 %834 }
 0x24c   : > { %v4037_v17 = vadd.f32 %v882_v3, %v858_v11  ;;  %v4041_v20 = vadd.f32 %v882_v3, %v859_v16  ;;  %v852_v42 = vmul.f32 %v835_v14, %v824_v38  ;;  %v853_v43 = vmul.f32 %v835_v14, %v825_v39 }
 0x24e   : > { %v898_v21 = vsub.f32 0.0, %v4037_v17  ;;  %v899_v25 = vsub.f32 0.0, %v4041_v20 }
 0x250   : > { %v912_v26 = vmul.f32 1.442695, %v898_v21  ;;  %v914_v30 = vmul.f32 1.442695, %v899_v25 }
 0x251   : > { %v840_v22 = vpop.permute.xlu2 %839 }
 0x252   : > { %v854_v23 = vmul.f32 %v840_v22, %v826_v18  ;;  %v855_v0 = vmul.f32 %v840_v22, %v827_v19  ;;  %3693 = vpow2.f32 %v912_v26 }
 0x253   : > { %v872_v24 = vpop.permute.xlu0 %871 }
 0x254   : > { %v886_v1 = vadd.f32 %v872_v24, %v854_v23  ;;  %v4045_v27 = vadd.f32 %v872_v24, %v855_v0 }
 0x256   : > { %v894_v28 = vsub.f32 0.0, %v886_v1  ;;  %v895_v31 = vsub.f32 0.0, %v4045_v27 }
 0x258   : > { %v904_v5 = vmul.f32 1.442695, %v894_v28  ;;  %v906_v37 = vmul.f32 1.442695, %v895_v31  ;;  %v3694_v10 = vpop.eup %3693  ;;  %v1466_v28 = vld [vmem:[%s5581_s6 + $0x28] sm:$0xff] }
 0x259   : > { %v845_v32 = vpop.permute.xlu1 %844  ;;  %v922_v51 = vadd.f32 1.0, %v3694_v10 }
 0x25a   : > { %3695 = vpow2.f32 %v904_v5  ;;  %v856_v33 = vmul.f32 %v845_v32, %v828_v29  ;;  %v857_v34 = vmul.f32 %v845_v32, %v829_v2  ;;  %v1468_v29 = vld [vmem:[%s5581_s6 + $0x38] sm:$0xff]  ;;  %v1465_v2 = vld [vmem:[%s5581_s6 + $0x20] sm:$0xff]  ;;  %v504_v5 = vlaneseq }
 0x25b   : > { %3697 = vpow2.f32 %v914_v30 }
 0x25c   : > { %v888_v35 = vadd.f32 %v877_v61, %v856_v33  ;;  %v889_v36 = vadd.f32 %v877_v61, %v857_v34  ;;  %3699 = vpow2.f32 %v906_v37  ;;  %v4091_v30 = vand.u32 127, %v504_v5  ;;  %v3610_v5 = vld [vmem:[%s5580_s5 + $0x10] sm:$0xff] }
 0x25d   : > { %v3824_v34 = vmov 0.0  }
 0x25e   : > { %v896_v9 = vsub.f32 0.0, %v888_v35  ;;  %v897_v40 = vsub.f32 0.0, %v889_v36  ;;  %v506_v31 = vadd.s32 128, %v4091_v30  ;;  %v511_v32 = vand.u32 15, %v4091_v30 }
 0x25f   : > { %vm989_vm3 = vcmp.lt.s32.totalorder %v4091_v30, 112  ;;  %vm956_vm4 = vcmp.lt.s32.totalorder %v4091_v30, 16  ;;  %vm531_vm5 = vcmp.ge.s32.totalorder %v4091_v30, 16  ;;  %vm1257_vm7 = vcmp.lt.s32.totalorder %v4091_v30, 1 }
 0x260   : > { %v3696_v41 = vpop.eup %3695  ;;  %v908_v44 = vmul.f32 1.442695, %v896_v9  ;;  %v910_v45 = vmul.f32 1.442695, %v897_v40  ;;  %v518_v33 = vand.u32 15, %v506_v31  ;;  %vm543_vm13 = vcmp.ne.s32.totalorder %v511_v32, 0 }
 0x261   : > { %v918_v46 = vadd.f32 1.0, %v3696_v41  ;;  %v867_v47 = vpop.permute.xlu1 %866  ;;  %v3698_v50 = vpop.eup %3697  ;;  %vm549_vm14 = vcmp.ne.s32.totalorder %v511_v32, 15  ;;  %vm538_vm2 = vcmp.lt.s32.totalorder %v506_v31, 240  ;;  %v3608_v31 = vld [vmem:[%s5580_s5] sm:$0xff]  ;;  %vm1412_vm8 = vcmp.lt.s32.totalorder %v4091_v30, 127 }
 0x262   : > { %3701 = vpow2.f32 %v908_v44  ;;  %v884_v48 = vadd.f32 %v867_v47, %v852_v42  ;;  %v885_v49 = vadd.f32 %v867_v47, %v853_v43  ;;  %v923_v52 = vadd.f32 1.0, %v3698_v50  ;;  %v3700_v55 = vpop.eup %3699  ;;  %v3616_v32 = vld [vmem:[%s5580_s5 + $0x40] sm:$0xff] }
 0x263   : > { %3703 = vrcp.f32 %v918_v46  ;;  %v919_v62 = vadd.f32 1.0, %v3700_v55  ;;  %vm544_vm15 = vcmp.ne.s32.totalorder %v518_v33, 0  ;;  %vm550_vm1 = vcmp.ne.s32.totalorder %v518_v33, 15  ;;  %v3611_v33 = vld [vmem:[%s5580_s5 + $0x18] sm:$0xff] }
 0x264   : > { %3705 = vpow2.f32 %v910_v45  ;;  %v892_v12 = vsub.f32 0.0, %v884_v48  ;;  %v893_v13 = vsub.f32 0.0, %v885_v49  ;;  %v4099_v37 = vsel %vm544_vm15, 1.0, %v3824_v34 }
 0x265   : > { %3707 = vrcp.f32 %v922_v51  ;;  %v4101_v38 = vsel %vm550_vm1, 1.0, %v3824_v34  ;;  %v4104_v43 = vsel %vm538_vm2, 1.0, %v3824_v34 }
 0x266   : > { %v900_v53 = vmul.f32 1.442695, %v892_v12  ;;  %v902_v54 = vmul.f32 1.442695, %v893_v13 }
 0x268   : > { %v3702_v56 = vpop.eup %3701  ;;  %3709 = vpow2.f32 %v900_v53 }
 0x269   : > { %v3704_v57 = vpop.eup %3703  ;;  %v920_v58 = vadd.f32 1.0, %v3702_v56  ;;  %3711 = vpow2.f32 %v902_v54 }
 0x26a   : > { %v3706_v59 = vpop.eup %3705  ;;  %3713 = vrcp.f32 %v923_v52  ;;  %v934_v60 = vmul.f32 %v3704_v57, %v886_v1 }
 0x26b   : > { %v921_v61 = vadd.f32 1.0, %v3706_v59  ;;  %3715 = vrcp.f32 %v920_v58  ;;  %v3708_v63 = vpop.eup %3707 }
 0x26c   : > { %975 = vrot.lane.b32.xlu0 %v934_v60, %s3822_s17  ;;  %v938_v15 = vmul.f32 %v3708_v63, %v4037_v17 }
 0x26d   : > { %3717 = vrcp.f32 %v921_v61 }
 0x26e   : > { %v3710_v3 = vpop.eup %3709  ;;  %3719 = vrcp.f32 %v919_v62 }
 0x26f   : > { %v3712_v4 = vpop.eup %3711  ;;  %v916_v6 = vadd.f32 1.0, %v3710_v3 }
 0x270   : > { %v3714_v7 = vpop.eup %3713  ;;  %v917_v8 = vadd.f32 1.0, %v3712_v4  ;;  %v4141_v4 = vsel %vm531_vm5, 1.0, %v3824_v34 }
 0x271   : > { %v3716_v11 = vpop.eup %3715  ;;  %3721 = vrcp.f32 %v916_v6  ;;  %v939_v19 = vmul.f32 %v3714_v7, %v4041_v20 }
 0x272   : > { %3723 = vrcp.f32 %v917_v8  ;;  %v936_v14 = vmul.f32 %v3716_v11, %v888_v35  ;;  %v4095_v35 = vsel %vm543_vm13, 1.0, %v3824_v34 }
 0x273   : > { %v3718_v16 = vpop.eup %3717 }
 0x274   : > { %v937_v18 = vmul.f32 %v3718_v16, %v889_v36  ;;  %v4055_v21 = vpack.c.bf16 %v938_v15, %v936_v14  ;;  %v3720_v22 = vpop.eup %3719  ;;  %v4097_v36 = vsel %vm549_vm14, 1.0, %v3824_v34  ;;  %v3609_v34 = vld [vmem:[%s5580_s5 + $0x8] sm:$0xff] }
 0x275   : > { %v935_v26 = vmul.f32 %v3720_v22, %v4045_v27  ;;  %v1467_v27 = vld [vmem:[%s5581_s6 + $0x30] sm:$0xff] }
 0x276   : > { %985 = vrot.lane.b32.xlu0 %v937_v18, %s3822_s17  ;;  %v4058_v23 = vpack.c.bf16 %v939_v19, %v937_v18 }
 0x277   : > { %v3722_v0 = vpop.eup %3721 }
 0x278   : > { %v3724_v24 = vpop.eup %3723  ;;  %v932_v1 = vmul.f32 %v3722_v0, %v884_v48 }
 0x279   : > { %v933_v25 = vmul.f32 %v3724_v24, %v885_v49 }
 0x27a   : > { %973 = vrot.lane.b32.xlu1 %v932_v1, %s3822_s17  ;;  %v4062_v17 = vpack.c.bf16 %v934_v60, %v932_v1 }
 0x27b   : > { %981 = vrot.lane.b32.xlu2 %v933_v25, %s3822_s17  ;;  %v4065_v20 = vpack.c.bf16 %v935_v26, %v933_v25 }
 0x27e   : > { %944 = vrot.lane.b32.xlu0 %v936_v14, %s3823_s20 }
 0x282   : > { %979 = vrot.lane.b32.xlu1 %v938_v15, %s3822_s17 }
 0x283   : > { %977 = vrot.lane.b32.xlu2 %v936_v14, %s3822_s17 }
 0x286   : > { %954 = vrot.lane.b32.xlu0 %v939_v19, %s3823_s20 }
 0x28a   : > { %983 = vrot.lane.b32.xlu1 %v935_v26, %s3822_s17 }
 0x28b   : > { %987 = vrot.lane.b32.xlu2 %v939_v19, %s3822_s17 }
 0x28e   : > { %948 = vrot.lane.b32.xlu0 %v933_v25, %s3823_s20 }
 0x292   : > { %952 = vrot.lane.b32.xlu1 %v937_v18, %s3823_s20 }
 0x293   : > { %940 = vrot.lane.b32.xlu2 %v932_v1, %s3823_s20 }
 0x296   : > { %1501 = vperm.xlu0 %3684, %v1467_v27  }
 0x29a   : > { %942 = vrot.lane.b32.xlu1 %v934_v60, %s3823_s20 }
 0x29b   : > { %946 = vrot.lane.b32.xlu2 %v938_v15, %s3823_s20 }
 0x2a2   : > { %1496 = vperm.xlu1 %3683, %v1466_v28  }
 0x2a3   : > { %950 = vrot.lane.b32.xlu2 %v935_v26, %s3823_s20 }
 0x2ab   : > { %1506 = vperm.xlu2 %3682, %v1468_v29  }
 0x2b3   : > { %1491 = vperm.xlu2 %3682, %v1465_v2  }
 0x2d5   : > { %v982_v39 = vpop.permute.xlu2 %981 }
 0x2dd   : > { %v978_v40 = vpop.permute.xlu2 %977 }
 0x2de   : > { %v976_v9 = vpop.permute.xlu0 %975 }
 0x2e5   : > { %v988_v42 = vpop.permute.xlu2 %987 }
 0x2e8   : > { %v986_v10 = vpop.permute.xlu0 %985 }
 0x2e9   : > { %v996_v44 = vsel %vm989_vm3, %v986_v10, %v978_v40  ;;  %v992_v47 = vsel %vm989_vm3, %v978_v40, %v986_v10  ;;  %v3615_v40 = vld [vmem:[%s5580_s5 + $0x38] sm:$0xff] }
 0x2ea   : > { %v1003_v50 = vmul.f32 %v4104_v43, %v996_v44 }
 0x2ec   : > { %v974_v41 = vpop.permute.xlu1 %973 }
 0x2ed   : > { %v941_v13 = vpop.permute.xlu2 %940  ;;  %v994_v53 = vsel %vm989_vm3, %v982_v39, %v974_v41  ;;  %v990_v55 = vsel %vm989_vm3, %v974_v41, %v982_v39  ;;  %v3612_v39 = vld [vmem:[%s5580_s5 + $0x20] sm:$0xff] }
 0x2ee   : > { %v999_v58 = vmul.f32 %v4104_v43, %v994_v53 }
 0x2f0   : > { %v945_v45 = vpop.permute.xlu0 %944 }
 0x2f4   : > { %v980_v46 = vpop.permute.xlu1 %979 }
 0x2f5   : > { %v993_v48 = vsel %vm989_vm3, %v980_v46, %v988_v42  ;;  %v997_v49 = vsel %vm989_vm3, %v988_v42, %v980_v46  ;;  %v947_v63 = vpop.permute.xlu2 %946 }
 0x2f6   : > { %v1005_v51 = vmul.f32 %v4104_v43, %v997_v49  ;;  %v4116_v12 = vpack.c.bf16 %v993_v48, %v992_v47 }
 0x2f8   : > { %v4118_v52 = vpack.c.bf16 %v1005_v51, %v1003_v50  ;;  %1061 = vmatpush.bf16.msrb.mxu0 %v4116_v12  ;;  %3648 = vmatpush.bf16.msrb.mxu3 %v4116_v12  ;;  %v955_v59 = vpop.permute.xlu0 %954 }
 0x2f9   : > { %1169 = vmatpush.bf16.msrb.mxu2 %v4116_v12  ;;  %v964_v6 = vsel %vm956_vm4, %v955_v59, %v947_v63  ;;  %v960_v18 = vsel %vm956_vm4, %v947_v63, %v955_v59 }
 0x2fa   : > { %1090 = vmatpush.bf16.msrb.mxu1 %v4118_v52  ;;  %v971_v11 = vmul.f32 %v4141_v4, %v964_v6 }
 0x2fc   : > { %v984_v54 = vpop.permute.xlu1 %983 }
 0x2fd   : > { %v991_v56 = vsel %vm989_vm3, %v976_v9, %v984_v54  ;;  %v995_v57 = vsel %vm989_vm3, %v984_v54, %v976_v9  ;;  %v951_v22 = vpop.permute.xlu2 %950  ;;  %v3613_v9 = vld [vmem:[%s5580_s5 + $0x28] sm:$0xff] }
 0x2fe   : > { %v1001_v60 = vmul.f32 %v4104_v43, %v995_v57  ;;  %v1014_v61 = vpack.c.bf16 %v991_v56, %v990_v55 }
 0x300   : > { %v4134_v62 = vpack.c.bf16 %v1001_v60, %v999_v58  ;;  %1062 = vmatpush.bf16.msrb.mxu0 %v1014_v61  ;;  %3649 = vmatpush.bf16.msrb.mxu3 %v1014_v61  ;;  %v949_v14 = vpop.permute.xlu0 %948 }
 0x301   : > { %1170 = vmatpush.bf16.msrb.mxu2 %v1014_v61  ;;  %v961_v19 = vsel %vm956_vm4, %v949_v14, %v941_v13  ;;  %v957_v28 = vsel %vm956_vm4, %v941_v13, %v949_v14  ;;  %v1464_v14 = vld [vmem:[%s5581_s6 + $0x18] sm:$0xff] }
 0x302   : > { %1091 = vmatpush.bf16.msrb.mxu1 %v4134_v62  ;;  %v965_v25 = vmul.f32 %v4141_v4, %v961_v19 }
 0x304   : > { %1063 = vmatpush.bf16.msrb.mxu0 %v4055_v21  ;;  %3650 = vmatpush.bf16.msrb.mxu3 %v4055_v21  ;;  %v953_v3 = vpop.permute.xlu1 %952 }
 0x305   : > { %1171 = vmatpush.bf16.msrb.mxu2 %v4055_v21  ;;  %v963_v7 = vsel %vm956_vm4, %v953_v3, %v945_v45  ;;  %v959_v15 = vsel %vm956_vm4, %v945_v45, %v953_v3 }
 0x306   : > { %v969_v8 = vmul.f32 %v4141_v4, %v963_v7  ;;  %1092 = vmatpush.bf16.msrb.mxu1 %v4058_v23  ;;  %v1009_v0 = vpack.c.bf16 %v960_v18, %v959_v15  ;;  %v1463_v18 = vld [vmem:[%s5581_s6 + $0x10] sm:$0xff] }
 0x308   : > { %1064 = vmatpush.bf16.msrb.mxu0 %v4062_v17  ;;  %3651 = vmatpush.bf16.msrb.mxu3 %v4062_v17  ;;  %v1008_v16 = vpack.c.bf16 %v971_v11, %v969_v8 }
 0x309   : > { %1172 = vmatpush.bf16.msrb.mxu2 %v4062_v17 }
 0x30a   : > { %1093 = vmatpush.bf16.msrb.mxu1 %v4065_v20 }
 0x30c   : > { %v943_v24 = vpop.permute.xlu1 %942  ;;  %1065 = vmatpush.bf16.msrb.mxu0 %v1008_v16  ;;  %3652 = vmatpush.bf16.msrb.mxu3 %v1008_v16 }
 0x30d   : > { %v962_v1 = vsel %vm956_vm4, %v951_v22, %v943_v24  ;;  %1173 = vmatpush.bf16.msrb.mxu2 %v1008_v16  ;;  %v958_v26 = vsel %vm956_vm4, %v943_v24, %v951_v22  ;;  %v4291_v24 = vpop.permute.xlu0 %1501 }
 0x30e   : > { %v967_v27 = vmul.f32 %v4141_v4, %v962_v1  ;;  %1094 = vmatpush.bf16.msrb.mxu1 %v1009_v0  ;;  %v1007_v2 = vpack.c.bf16 %v958_v26, %v957_v28  ;;  %v1462_v1 = vld [vmem:[%s5581_s6 + $0x8] sm:$0xff] }
 0x310   : > { %v1006_v29 = vpack.c.bf16 %v967_v27, %v965_v25  ;;  %v1461_v25 = vld [vmem:[%s5581_s6] sm:$0xff] }
 0x312   : > { %1066 = vmatpush.bf16.msrb.mxu0 %v1006_v29  ;;  %3653 = vmatpush.bf16.msrb.mxu3 %v1006_v29 }
 0x313   : > { %1095 = vmatpush.bf16.msrb.mxu1 %v1007_v2  ;;  %1174 = vmatpush.bf16.msrb.mxu2 %v1006_v29 }
 0x314   : > { %v4299_v26 = vpop.permute.xlu1 %1496 }
 0x315   : > { %3350 = vmatmul.msk.bf16.vlgmr.msrb.gmra.mxu3 %vm1046_vm6, %v3610_v5  ;;  %3348 = vmatmul.msk.bf16.vlgmr.msrb.gmra.mxu0 %vm1046_vm6, %v3608_v31 }
 0x316   : > { %1198 = vmatpush.bf16.msra.mxu3 %v4118_v52  ;;  %1324 = vmatpush.bf16.msra.mxu0 %v4116_v12 }
 0x317   : > { %3654 = vmatpush.bf16.msra.mxu1 %v4118_v52  ;;  %3388 = vmatmul.msk.bf16.vlgmr.msrb.gmra.mxu2 %vm1046_vm6, %v3616_v32 }
 0x318   : > { %3352 = vmatmul.msk.bf16.vlgmr.msrb.gmra.mxu1 %vm1046_vm6, %v3608_v31 }
 0x31a   : > { %1199 = vmatpush.bf16.msra.mxu3 %v4134_v62  ;;  %1325 = vmatpush.bf16.msra.mxu0 %v1014_v61 }
 0x31b   : > { %3655 = vmatpush.bf16.msra.mxu1 %v4134_v62 }
 0x31e   : > { %1200 = vmatpush.bf16.msra.mxu3 %v4058_v23  ;;  %1326 = vmatpush.bf16.msra.mxu0 %v4055_v21  ;;  %v3617_v21 = vld [vmem:[%s5580_s5 + $0x48] sm:$0xff] }
 0x31f   : > { %3656 = vmatpush.bf16.msra.mxu1 %v4058_v23 }
 0x322   : > { %1201 = vmatpush.bf16.msra.mxu3 %v4065_v20  ;;  %1327 = vmatpush.bf16.msra.mxu0 %v4062_v17  ;;  %v3618_v17 = vld [vmem:[%s5580_s5 + $0x50] sm:$0xff] }
 0x323   : > { %3657 = vmatpush.bf16.msra.mxu1 %v4065_v20 }
 0x325   : > { %3351 = vmatmul.msk.bf16.gmra.mxu3 %vm1046_vm6, %v3611_v33  ;;  %3349 = vmatmul.msk.bf16.gmra.mxu0 %vm1046_vm6, %v3609_v34 }
 0x326   : > { %1202 = vmatpush.bf16.msra.mxu3 %v1009_v0  ;;  %1328 = vmatpush.bf16.msra.mxu0 %v1008_v16  ;;  %v4277_v16 = vpop.permute.xlu2 %1506 }
 0x327   : > { %3658 = vmatpush.bf16.msra.mxu1 %v1009_v0  ;;  %3389 = vmatmul.msk.bf16.gmra.mxu2 %vm1046_vm6, %v3617_v21 }
 0x328   : > { %3353 = vmatmul.msk.bf16.gmra.mxu1 %vm1046_vm6, %v3609_v34 }
 0x32a   : > { %1203 = vmatpush.bf16.msra.mxu3 %v1007_v2  ;;  %1329 = vmatpush.bf16.msra.mxu0 %v1006_v29 }
 0x32b   : > { %3659 = vmatpush.bf16.msra.mxu1 %v1007_v2 }
 0x32e   : > { %1353 = vmatpush.bf16.msrb.mxu0 %v4118_v52  ;;  %v4284_v22 = vpop.permute.xlu2 %1491 }
 0x332   : > { %1354 = vmatpush.bf16.msrb.mxu0 %v4134_v62 }
 0x335   : > { %3392 = vmatmul.msk.bf16.vlgmr.msra.gmra.mxu3 %vm1046_vm6, %v3616_v32  ;;  %3412 = vmatmul.msk.bf16.vlgmr.msra.gmra.mxu0 %vm1046_vm6, %v3612_v39 }
 0x336   : > { %1355 = vmatpush.bf16.msrb.mxu0 %v4058_v23  ;;  %v3619_v23 = vld [vmem:[%s5580_s5 + $0x58] sm:$0xff] }
 0x337   : > { %3390 = vmatmul.msk.bf16.gmra.mxu2 %vm1046_vm6, %v3618_v17 }
 0x338   : > { %3354 = vmatmul.msk.bf16.gmra.mxu1 %vm1046_vm6, %v3610_v5 }
 0x33a   : > { %1356 = vmatpush.bf16.msrb.mxu0 %v4065_v20  ;;  %v3614_v20 = vld [vmem:[%s5580_s5 + $0x30] sm:$0xff] }
 0x33e   : > { %1357 = vmatpush.bf16.msrb.mxu0 %v1009_v0 }
 0x342   : > { %1358 = vmatpush.bf16.msrb.mxu0 %v1007_v2 }
 0x345   : > { %3393 = vmatmul.msk.bf16.gmra.mxu3 %vm1046_vm6, %v3617_v21  ;;  %3413 = vmatmul.msk.bf16.gmra.mxu0 %vm1046_vm6, %v3613_v9 }
 0x347   : > { %3391 = vmatmul.msk.bf16.gmra.mxu2 %vm1046_vm6, %v3619_v23 }
 0x348   : > { %3355 = vmatmul.msk.bf16.gmra.mxu1 %vm1046_vm6, %v3611_v33 }
 0x355   : > { %3394 = vmatmul.msk.bf16.gmra.mxu3 %vm1046_vm6, %v3618_v17  ;;  %3414 = vmatmul.msk.bf16.gmra.mxu0 %vm1046_vm6, %v3614_v20 }
 0x358   : > { %3417 = vmatmul.msk.bf16.vlgmr.msra.gmra.mxu1 %vm1046_vm6, %v3613_v9 }
 0x365   : > { %3395 = vmatmul.msk.bf16.gmra.mxu3 %vm1046_vm6, %v3619_v23  ;;  %3415 = vmatmul.msk.bf16.gmra.mxu0 %vm1046_vm6, %v3615_v40 }
 0x368   : > { %3418 = vmatmul.msk.bf16.gmra.mxu1 %vm1046_vm6, %v3614_v20 }
 0x375   : > { %3416 = vmatmul.msk.bf16.vlgmr.msrb.gmra.mxu0 %vm1046_vm6, %v3612_v39 }
 0x378   : > { %3419 = vmatmul.msk.bf16.gmra.mxu1 %vm1046_vm6, %v3615_v40 }
 0x392   : > { %v1068_v41 = vpop.f32.mrf.mxu0 }
 0x393   : > { %1225 = vrot.lane.b32.xlu1 %v1068_v41, %s5593_s24 }
 0x395   : > { %v1097_v10 = vpop.f32.mrf.mxu1 }
 0x396   : > { %1241 = vrot.lane.b32.xlu0 %v1097_v10, %s5593_s24 }
 0x398   : > { %v1078_v42 = vpop.f32.mrf.mxu3 }
 0x39a   : > { %v4246_v44 = vpop.f32.mrf.mxu2  ;;  %v1070_v47 = vpop.f32.mrf.mxu0 }
 0x39d   : > { %v1099_v45 = vpop.f32.mrf.mxu1 }
 0x39e   : > { %1243 = vrot.lane.b32.xlu2 %v1099_v45, %s5593_s24  ;;  %1233 = vrot.lane.b32.xlu0 %v1078_v42, %s5593_s24 }
 0x3a0   : > { %v1080_v46 = vpop.f32.mrf.mxu3 }
 0x3a1   : > { %1235 = vrot.lane.b32.xlu1 %v1080_v46, %s5593_s24 }
 0x3a2   : > { %v1178_v48 = vpop.f32.mrf.mxu2  ;;  %v1073_v51 = vpop.f32.mrf.mxu0 }
 0x3a5   : > { %v1102_v49 = vpop.f32.mrf.mxu1 }
 0x3a6   : > { %1382 = vrot.lane.b32.xlu2 %v1178_v48, %s5591_s25  ;;  %1227 = vrot.lane.b32.xlu0 %v1070_v47, %s5593_s24 }
 0x3a8   : > { %v1083_v50 = vpop.f32.mrf.mxu3 }
 0x3a9   : > { %1245 = vrot.lane.b32.xlu1 %v1102_v49, %s5593_s24 }
 0x3aa   : > { %v1181_v12 = vpop.f32.mrf.mxu2  ;;  %v1075_v55 = vpop.f32.mrf.mxu0 }
 0x3ad   : > { %v1104_v13 = vpop.f32.mrf.mxu1 }
 0x3ae   : > { %1247 = vrot.lane.b32.xlu0 %v1104_v13, %s5593_s24  ;;  %1229 = vrot.lane.b32.xlu2 %v1073_v51, %s5593_s24 }
 0x3b0   : > { %v1085_v52 = vpop.f32.mrf.mxu3 }
 0x3b1   : > { %1384 = vrot.lane.b32.xlu1 %v1181_v12, %s5591_s25 }
 0x3b2   : > { %v1183_v53 = vpop.f32.mrf.mxu2  ;;  %v4301_v27 = vpop.f32.mrf.mxu0 }
 0x3b5   : > { %v1107_v54 = vpop.f32.mrf.mxu1 }
 0x3b6   : > { %1386 = vrot.lane.b32.xlu0 %v1183_v53, %s5591_s25  ;;  %1237 = vrot.lane.b32.xlu2 %v1083_v50, %s5593_s24 }
 0x3b8   : > { %v1205_v56 = vpop.f32.mrf.mxu3 }
 0x3b9   : > { %1231 = vrot.lane.b32.xlu1 %v1075_v55, %s5593_s24 }
 0x3ba   : > { %v1186_v57 = vpop.f32.mrf.mxu2  ;;  %v4309_v5 = vpop.f32.mrf.mxu0 }
 0x3bd   : > { %v1109_v58 = vpop.f32.mrf.mxu1 }
 0x3be   : > { %1251 = vrot.lane.b32.xlu0 %v1109_v58, %s5593_s24  ;;  %1249 = vrot.lane.b32.xlu2 %v1107_v54, %s5593_s24 }
 0x3c0   : > { %v1207_v59 = vpop.f32.mrf.mxu3 }
 0x3c1   : > { %1239 = vrot.lane.b32.xlu1 %v1085_v52, %s5593_s24 }
 0x3c2   : > { %v1188_v60 = vpop.f32.mrf.mxu2  ;;  %v4315_v21 = vpop.f32.mrf.mxu0 }
 0x3c5   : > { %v1112_v61 = vpop.f32.mrf.mxu1 }
 0x3c6   : > { %1388 = vrot.lane.b32.xlu2 %v1186_v57, %s5591_s25 }
 0x3c8   : > { %v1210_v62 = vpop.f32.mrf.mxu3 }
 0x3c9   : > { %1400 = vrot.lane.b32.xlu0 %v1210_v62, %s5591_s25  ;;  %1390 = vrot.lane.b32.xlu1 %v1188_v60, %s5591_s25 }
 0x3ca   : > { %v1191_v63 = vpop.f32.mrf.mxu2  ;;  %v4323_v20 = vpop.f32.mrf.mxu0 }
 0x3cd   : > { %v1114_v3 = vpop.f32.mrf.mxu1 }
 0x3ce   : > { %1392 = vrot.lane.b32.xlu2 %v1191_v63, %s5591_s25 }
 0x3d0   : > { %v1212_v6 = vpop.f32.mrf.mxu3 }
 0x3d1   : > { %1255 = vrot.lane.b32.xlu0 %v1114_v3, %s5593_s24  ;;  %1253 = vrot.lane.b32.xlu1 %v1112_v61, %s5593_s24 }
 0x3d2   : > { %v1193_v7 = vpop.f32.mrf.mxu2  ;;  %v1341_v45 = vpop.f32.mrf.mxu0 }
 0x3d5   : > { %v4319_v39 = vpop.f32.mrf.mxu1 }
 0x3d6   : > { %1402 = vrot.lane.b32.xlu2 %v1212_v6, %s5591_s25 }
 0x3d8   : > { %v1215_v8 = vpop.f32.mrf.mxu3 }
 0x3d9   : > { %1394 = vrot.lane.b32.xlu0 %v1193_v7, %s5591_s25  ;;  %1404 = vrot.lane.b32.xlu1 %v1215_v8, %s5591_s25 }
 0x3da   : > { %v1343_v50 = vpop.f32.mrf.mxu0 }
 0x3dd   : > { %v4327_v41 = vpop.f32.mrf.mxu1 }
 0x3e0   : > { %v1217_v11 = vpop.f32.mrf.mxu3 }
 0x3e1   : > { %1406 = vrot.lane.b32.xlu0 %v1217_v11, %s5591_s25 }
 0x3e2   : > { %v4335_v54 = vpop.f32.mrf.mxu0 }
 0x3e5   : > { %v1370_v47 = vpop.f32.mrf.mxu1 }
 0x3e8   : > { %v1220_v15 = vpop.f32.mrf.mxu3 }
 0x3e9   : > { %1486 = vperm.xlu0 %3684, %v1464_v14   ;;  %1408 = vrot.lane.b32.xlu1 %v1220_v15, %s5591_s25 }
 0x3ea   : > { %v1348_v8 = vpop.f32.mrf.mxu0 }
 0x3ed   : > { %v1372_v51 = vpop.f32.mrf.mxu1 }
 0x3f0   : > { %v1222_v19 = vpop.f32.mrf.mxu3 }
 0x3f1   : > { %1481 = vperm.xlu0 %3684, %v1463_v18   ;;  %1410 = vrot.lane.b32.xlu2 %v1222_v19, %s5591_s25 }
 0x3f2   : > { %1398 = vrot.lane.b32.xlu1 %v1207_v59, %s5591_s25 }
 0x3f5   : > { %v4333_v53 = vpop.f32.mrf.mxu1 }
 0x3f8   : > { %v4289_v0 = vpop.permute.xlu2 %1243 }
 0x3f9   : > { %1380 = vrot.lane.b32.xlu2 %v4246_v44, %s5591_s25 }
 0x3fa   : > { %1396 = vrot.lane.b32.xlu1 %v1205_v56, %s5591_s25  ;;  %s5599_s25 = smov 127  }
 0x3fd   : > { %v1377_v7 = vpop.f32.mrf.mxu1 }
 0x400   : > { %v4303_v28 = vpop.permute.xlu2 %1382 }
 0x401   : > { %1476 = vperm.xlu2 %3682, %v1462_v1  }
 0x402   : > { %1471 = vperm.xlu1 %3683, %v1461_v25  }
 0x405   : > { %v4307_v2 = vpop.permute.xlu1 %1225 }
 0x408   : > { %v4305_v29 = vpop.permute.xlu0 %1241  ;;  %v4311_v32 = vpop.permute.xlu2 %1229 }
 0x410   : > { %v1234_v31 = vpop.permute.xlu0 %1233  ;;  %v4317_v17 = vpop.permute.xlu2 %1237 }
 0x413   : > { %v1236_v33 = vpop.permute.xlu1 %1235 }
 0x418   : > { %v4313_v34 = vpop.permute.xlu0 %1227  ;;  %v1250_v10 = vpop.permute.xlu2 %1249 }
 0x419   : > { %v1262_v58 = vsel %vm1257_vm7, %v1234_v31, %v1250_v10  ;;  %v1270_v59 = vsel %vm1257_vm7, %v1250_v10, %v1234_v31 }
 0x41a   : > { %v1282_v62 = vmul.f32 %v4095_v35, %v1270_v59  ;;  %v1283_v63 = vmul.f32 %v4099_v37, %v1262_v58 }
 0x41b   : > { %v4321_v23 = vpop.permute.xlu1 %1245 }
 0x41c   : > { %v1342_v11 = vadd.f32 %v1341_v45, %v1282_v62  ;;  %v1371_v14 = vadd.f32 %v1370_v47, %v1283_v63 }
 0x420   : > { %v1248_v9 = vpop.permute.xlu0 %1247  ;;  %v1389_v46 = vpop.permute.xlu2 %1388 }
 0x423   : > { %v4325_v40 = vpop.permute.xlu1 %1384 }
 0x428   : > { %v1387_v42 = vpop.permute.xlu0 %1386  ;;  %v4329_v12 = vpop.permute.xlu2 %1392 }
 0x42b   : > { %v1232_v44 = vpop.permute.xlu1 %1231 }
 0x42c   : > { %v1269_v15 = vsel %vm1257_vm7, %v1248_v9, %v1232_v44  ;;  %v1261_v63 = vsel %vm1257_vm7, %v1232_v44, %v1248_v9 }
 0x430   : > { %v1252_v48 = vpop.permute.xlu0 %1251  ;;  %v1403_v55 = vpop.permute.xlu2 %1402 }
 0x431   : > { %v1263_v59 = vsel %vm1257_vm7, %v1236_v33, %v1252_v48 }
 0x433   : > { %v1240_v49 = vpop.permute.xlu1 %1239 }
 0x43b   : > { %v4331_v13 = vpop.permute.xlu0 %1400  ;;  %v1391_v52 = vpop.permute.xlu1 %1390 }
 0x443   : > { %v1256_v56 = vpop.permute.xlu0 %1255  ;;  %v1254_v57 = vpop.permute.xlu1 %1253 }
 0x444   : > { %v1265_v60 = vsel %vm1257_vm7, %v1240_v49, %v1256_v56  ;;  %v1273_v61 = vsel %vm1257_vm7, %v1256_v56, %v1240_v49 }
 0x445   : > { %v1288_v3 = vmul.f32 %v4095_v35, %v1273_v61  ;;  %v1289_v6 = vmul.f32 %v4099_v37, %v1265_v60  ;;  %v1271_v60 = vsel %vm1257_vm7, %v1252_v48, %v1236_v33  ;;  %v1281_v48 = vmul.f32 %v4099_v37, %v1261_v63 }
 0x447   : > { %v1349_v1 = vadd.f32 %v1348_v8, %v1288_v3  ;;  %v1378_v25 = vadd.f32 %v1377_v7, %v1289_v6  ;;  %v1280_v7 = vmul.f32 %v4095_v35, %v1269_v15 }
 0x44b   : > { %v1395_v18 = vpop.permute.xlu0 %1394  ;;  %v1411_v19 = vpop.permute.xlu2 %1410 }
 0x44c   : > { %v1420_v31 = vsel %vm1412_vm8, %v1395_v18, %v1411_v19  ;;  %v1428_v10 = vsel %vm1412_vm8, %v1411_v19, %v1395_v18  ;;  %v1405_v49 = vpop.permute.xlu1 %1404  ;;  %v1285_v19 = vmul.f32 %v4099_v37, %v1263_v59  ;;  %v1268_v59 = vsel %vm1257_vm7, %v4321_v23, %v4311_v32 }
 0x44d   : > { %v1443_v56 = vmul.f32 %v4097_v36, %v1420_v31  ;;  %v1444_v58 = vmul.f32 %v4101_v38, %v1428_v10  ;;  %v1417_v45 = vsel %vm1412_vm8, %v1389_v46, %v1405_v49  ;;  %v1425_v47 = vsel %vm1412_vm8, %v1405_v49, %v1389_v46 }
 0x44e   : > { %v1437_v61 = vmul.f32 %v4097_v36, %v1417_v45  ;;  %v1438_v62 = vmul.f32 %v4101_v38, %v1425_v47  ;;  %v1284_v46 = vmul.f32 %v4095_v35, %v1271_v60  ;;  %v4419_v60 = vpop.f32.mrf.mxu0 }
 0x44f   : > { %v1459_v3 = vadd.f32 %v1443_v56, %v1349_v1  ;;  %v1460_v6 = vadd.f32 %v1444_v58, %v1378_v25  ;;  %v1373_v56 = vadd.f32 %v1372_v51, %v1285_v19 }
 0x450   : > { %v1453_v8 = vadd.f32 %v1437_v61, %v1342_v11  ;;  %v1454_v18 = vadd.f32 %v1438_v62, %v1371_v14  ;;  %v1416_v11 = vsel %vm1412_vm8, %v1387_v42, %v1403_v55  ;;  %v1424_v14 = vsel %vm1412_vm8, %v1403_v55, %v1387_v42 }
 0x451   : > { %v4375_v31 = vadd.f32 %v4277_v16, %v1459_v3  ;;  %v4378_v33 = vadd.f32 %v4277_v16, %v1460_v6  ;;  %v1339_v16 = vadd.f32 %v4323_v20, %v1280_v7  ;;  %v1344_v49 = vadd.f32 %v1343_v50, %v1284_v46 }
 0x452   : > { %v4382_v9 = vadd.f32 %v4284_v22, %v1453_v8  ;;  %v4385_v44 = vadd.f32 %v4284_v22, %v1454_v18  ;;  %v1368_v55 = vadd.f32 %v4327_v41, %v1281_v48  ;;  %v1435_v20 = vmul.f32 %v4097_v36, %v1416_v11 }
 0x453   : > { %v1407_v15 = vpop.permute.xlu0 %1406  ;;  %v1546_v1 = vadd.f32 %v4378_v33, %v4375_v31  ;;  %v1436_v45 = vmul.f32 %v4101_v38, %v1424_v14  ;;  %v1264_v50 = vsel %vm1257_vm7, %v4317_v17, %v1254_v57  ;;  %v1260_v41 = vsel %vm1257_vm7, %v4311_v32, %v4321_v23 }
 0x454   : > { %v1418_v25 = vsel %vm1412_vm8, %v1391_v52, %v1407_v15  ;;  %v1426_v10 = vsel %vm1412_vm8, %v1407_v15, %v1391_v52  ;;  %v1537_v22 = vadd.f32 %v4385_v44, %v4382_v9  ;;  %v1272_v52 = vsel %vm1257_vm7, %v1254_v57, %v4317_v17 }
 0x455   : > { %v1439_v58 = vmul.f32 %v4097_v36, %v1418_v25  ;;  %v1440_v42 = vmul.f32 %v4101_v38, %v1426_v10  ;;  %1547 = vadd.xlane.f32.xlu0 %v1546_v1  ;;  %v1415_v61 = vsel %vm1412_vm8, %v4325_v40, %v4331_v13  ;;  %v1286_v17 = vmul.f32 %v4095_v35, %v1272_v52  ;;  %v1381_v10 = vpop.permute.xlu2 %1380 }
 0x456   : > { %1538 = vadd.xlane.f32.xlu2 %v1537_v22  ;;  %v1423_v32 = vsel %vm1412_vm8, %v4331_v13, %v4325_v40  ;;  %v1287_v23 = vmul.f32 %v4099_v37, %v1264_v50  ;;  %v1451_v63 = vadd.f32 %v1435_v20, %v1339_v16  ;;  %v1452_v3 = vadd.f32 %v1436_v45, %v1368_v55  ;;  %v1362_v45 = vpop.f32.mrf.mxu0 }
 0x457   : > { %v1455_v51 = vadd.f32 %v1439_v58, %v1344_v49  ;;  %v1456_v47 = vadd.f32 %v1440_v42, %v1373_v56  ;;  %v1259_v6 = vsel %vm1257_vm7, %v4313_v34, %v4289_v0  ;;  %v1278_v7 = vmul.f32 %v4095_v35, %v1268_v59 }
 0x458   : > { %v1279_v13 = vmul.f32 %v4099_v37, %v1260_v41  ;;  %v1433_v18 = vmul.f32 %v4097_v36, %v1415_v61  ;;  %v1434_v11 = vmul.f32 %v4101_v38, %v1423_v32  ;;  %v1347_v14 = vadd.f32 %v4335_v54, %v1286_v17 }
 0x459   : > { %v4427_v57 = vadd.f32 %v4299_v26, %v1455_v51  ;;  %v4430_v62 = vadd.f32 %v4299_v26, %v1456_v47  ;;  %v1267_v26 = vsel %vm1257_vm7, %v4289_v0, %v4313_v34  ;;  %v1376_v15 = vadd.f32 %v4333_v53, %v1287_v23 }
 0x45a   : > { %v1337_v49 = vadd.f32 %v4315_v21, %v1278_v7  ;;  %v1366_v56 = vadd.f32 %v4319_v39, %v1279_v13  ;;  %v1277_v58 = vmul.f32 %v4099_v37, %v1259_v6  ;;  %v1571_v7 = vmul.f32 %v4375_v31, %v4375_v31 }
 0x45b   : > { %v1487_v8 = vpop.permute.xlu0 %1486  ;;  %v1540_v40 = vadd.f32 %v4430_v62, %v4427_v57  ;;  %v1409_v48 = vpop.permute.xlu1 %1408 }
 0x45c   : > { %v4450_v46 = vadd.f32 %v1487_v8, %v1451_v63  ;;  %v4452_v19 = vadd.f32 %v1487_v8, %v1452_v3  ;;  %v1419_v0 = vsel %vm1412_vm8, %v4329_v12, %v1409_v48  ;;  %v1427_v34 = vsel %vm1412_vm8, %v1409_v48, %v4329_v12 }
 0x45d   : > { %1541 = vadd.xlane.f32.xlu1 %v1540_v40  ;;  %v1441_v1 = vmul.f32 %v4097_v36, %v1419_v0  ;;  %v1442_v16 = vmul.f32 %v4101_v38, %v1427_v34  ;;  %v1276_v12 = vmul.f32 %v4095_v35, %v1267_v26  ;;  %v1449_v53 = vadd.f32 %v1433_v18, %v1337_v49  ;;  %v1477_v3 = vpop.permute.xlu2 %1476 }
 0x45e   : > { %v1534_v25 = vadd.f32 %v4452_v19, %v4450_v46  ;;  %v1450_v42 = vadd.f32 %v1434_v11, %v1366_v56  ;;  %v1363_v59 = vadd.f32 %v1362_v45, %v1277_v58  ;;  %v1572_v8 = vmul.f32 %v4378_v33, %v4378_v33 }
 0x45f   : > { %v1457_v54 = vadd.f32 %v1441_v1, %v1347_v14  ;;  %v1458_v22 = vadd.f32 %v1442_v16, %v1376_v15  ;;  %v1334_v47 = vadd.f32 %v4309_v5, %v1276_v12  ;;  %v1266_v5 = vsel %vm1257_vm7, %v4305_v29, %v4307_v2 }
 0x460   : > { %1535 = vadd.xlane.f32.xlu0 %v1534_v25  ;;  %v1274_v18 = vmul.f32 %v4095_v35, %v1266_v5  ;;  %v1594_v11 = vadd.f32 %v1572_v8, %v1571_v7  ;;  %v1565_v25 = vmul.f32 %v4382_v9, %v4382_v9  ;;  %v2033_v5 = vld [vmem:[%s5585_s10 + $0x38] sm:$0xff]  ;;  %v2030_v7 = vld [vmem:[%s5585_s10 + $0x20] sm:$0xff] }
 0x461   : > { %v4472_v55 = vadd.f32 %v4291_v24, %v1457_v54  ;;  %v4475_v20 = vadd.f32 %v4291_v24, %v1458_v22  ;;  %v2029_v8 = vld [vmem:[%s5585_s10 + $0x18] sm:$0xff] }
 0x462   : > { %v1332_v16 = vadd.f32 %v4301_v27, %v1274_v18  ;;  %v1563_v27 = vmul.f32 %v4450_v46, %v4450_v46 }
 0x463   : > { %v1482_v52 = vpop.permute.xlu0 %1481  ;;  %v1543_v39 = vadd.f32 %v4475_v20, %v4472_v55  ;;  %v1569_v34 = vmul.f32 %v4472_v55, %v4472_v55  ;;  %v1570_v15 = vmul.f32 %v4475_v20, %v4475_v20 }
 0x464   : > { %v4477_v50 = vadd.f32 %v1482_v52, %v1449_v53  ;;  %v4479_v51 = vadd.f32 %v1482_v52, %v1450_v42  ;;  %v1399_v21 = vpop.permute.xlu1 %1398  ;;  %v1564_v42 = vmul.f32 %v4452_v19, %v4452_v19 }
 0x465   : > { %v1414_v41 = vsel %vm1412_vm8, %v4303_v28, %v1399_v21  ;;  %v1422_v24 = vsel %vm1412_vm8, %v1399_v21, %v4303_v28  ;;  %1544 = vadd.xlane.f32.xlu2 %v1543_v39  ;;  %v1258_v28 = vsel %vm1257_vm7, %v4307_v2, %v4305_v29  ;;  %v1591_v56 = vadd.f32 %v1570_v15, %v1569_v34 }
 0x466   : > { %v1431_v61 = vmul.f32 %v4097_v36, %v1414_v41  ;;  %v1432_v17 = vmul.f32 %v4101_v38, %v1422_v24  ;;  %v1531_v32 = vadd.f32 %v4479_v51, %v4477_v50  ;;  %v1275_v48 = vmul.f32 %v4099_v37, %v1258_v28  ;;  %v2032_v28 = vld [vmem:[%s5585_s10 + $0x30] sm:$0xff] }
 0x467   : > { %v1567_v21 = vmul.f32 %v4427_v57, %v4427_v57  ;;  %v1568_v39 = vmul.f32 %v4430_v62, %v4430_v62 }
 0x468   : > { %v1447_v23 = vadd.f32 %v1431_v61, %v1334_v47  ;;  %v1448_v63 = vadd.f32 %v1432_v17, %v1363_v59  ;;  %1532 = vadd.xlane.f32.xlu1 %v1531_v32  ;;  %v1361_v1 = vadd.f32 %v4419_v60, %v1275_v48  ;;  %v1582_v47 = vadd.f32 %v1564_v42, %v1563_v27  ;;  %v1605_v42 = vld [vmem:[%s5582_s7] sm:$0xff] }
 0x469   : > { %v1588_v24 = vadd.f32 %v1568_v39, %v1567_v21  ;;  %v1561_v17 = vmul.f32 %v4477_v50, %v4477_v50  ;;  %v1562_v32 = vmul.f32 %v4479_v51, %v4479_v51 }
 0x46a   : > { %v4502_v6 = vadd.f32 %v1477_v3, %v1447_v23  ;;  %v4504_v26 = vadd.f32 %v1477_v3, %v1448_v63  ;;  %v2031_v3 = vld [vmem:[%s5585_s10 + $0x28] sm:$0xff] }
 0x46b   : > { %v1579_v63 = vadd.f32 %v1562_v32, %v1561_v17 }
 0x46c   : > { %v1397_v40 = vpop.permute.xlu1 %1396  ;;  %v1528_v13 = vadd.f32 %v4504_v26, %v4502_v6  ;;  %v1559_v45 = vmul.f32 %v4502_v6, %v4502_v6  ;;  %v1560_v52 = vmul.f32 %v4504_v26, %v4504_v26 }
 0x46d   : > { %v1413_v29 = vsel %vm1412_vm8, %v1381_v10, %v1397_v40  ;;  %v1421_v2 = vsel %vm1412_vm8, %v1397_v40, %v1381_v10  ;;  %v1566_v10 = vmul.f32 %v4385_v44, %v4385_v44  ;;  %v2028_v40 = vld [vmem:[%s5585_s10 + $0x10] sm:$0xff] }
 0x46e   : > { %1529 = vadd.xlane.f32.xlu2 %v1528_v13  ;;  %v1429_v14 = vmul.f32 %v4097_v36, %v1413_v29  ;;  %v1430_v0 = vmul.f32 %v4101_v38, %v1421_v2  ;;  %v1576_v41 = vadd.f32 %v1560_v52, %v1559_v45  ;;  %v2026_v13 = vld [vmem:[%s5585_s10] sm:$0xff] }
 0x46f   : > { %v1585_v53 = vadd.f32 %v1566_v10, %v1565_v25 }
 0x470   : > { %1595 = vadd.xlane.f32.xlu1 %v1594_v11  ;;  %v1445_v54 = vadd.f32 %v1429_v14, %v1332_v16  ;;  %v1446_v22 = vadd.f32 %v1430_v0, %v1361_v1 }
 0x474   : > { %v1472_v49 = vpop.permute.xlu1 %1471 }
 0x475   : > { %v4530_v12 = vadd.f32 %v1472_v49, %v1445_v54  ;;  %v4532_v58 = vadd.f32 %v1472_v49, %v1446_v22 }
 0x476   : > { %1592 = vadd.xlane.f32.xlu2 %v1591_v56 }
 0x477   : > { %v1525_v60 = vadd.f32 %v4532_v58, %v4530_v12  ;;  %v1557_v59 = vmul.f32 %v4530_v12, %v4530_v12  ;;  %v1558_v61 = vmul.f32 %v4532_v58, %v4532_v58 }
 0x478   : > { %1586 = vadd.xlane.f32.xlu1 %v1585_v53 }
 0x479   : > { %1526 = vadd.xlane.f32.xlu0 %v1525_v60  ;;  %v1573_v23 = vadd.f32 %v1558_v61, %v1557_v59  ;;  %v1607_v60 = vld [vmem:[%s5582_s7 + $0x10] sm:$0xff]  ;;  %v1606_v59 = vld [vmem:[%s5582_s7 + $0x8] sm:$0xff] }
 0x47e   : > { %1583 = vadd.xlane.f32.xlu2 %v1582_v47 }
 0x480   : > { %1577 = vadd.xlane.f32.xlu1 %v1576_v41  ;;  %v1608_v41 = vld [vmem:[%s5582_s7 + $0x18] sm:$0xff] }
 0x481   : > { %1589 = vadd.xlane.f32.xlu0 %v1588_v24 }
 0x486   : > { %1574 = vadd.xlane.f32.xlu2 %v1573_v23 }
 0x489   : > { %1580 = vadd.xlane.f32.xlu0 %v1579_v63 }
 0x499   : > { %2071 = vperm.xlu1 %3683, %v2033_v5  }
 0x49e   : > { %2066 = vperm.xlu2 %3682, %v2032_v28  }
 0x4a1   : > { %2061 = vperm.xlu1 %3683, %v2031_v3  }
 0x4a6   : > { %2056 = vperm.xlu2 %3682, %v2030_v7  }
 0x4a9   : > { %2051 = vperm.xlu1 %3683, %v2029_v8  }
 0x4ae   : > { %2046 = vperm.xlu2 %3682, %v2028_v40  }
 0x4b1   : > { %2036 = vperm.xlu1 %3683, %v2026_v13   ;;  %v1651_v13 = vld [vmem:[%s5583_s8] sm:$0xff] }
 0x4c8   : > { %v1548_v18 = vpop.xlane.xlu0 %1547 }
 0x4c9   : > { %v1556_v48 = vmul.f32 0.00390625, %v1548_v18  ;;  %v1539_v29 = vpop.xlane.xlu2 %1538 }
 0x4ca   : > { %v1553_v15 = vmul.f32 0.00390625, %v1539_v29 }
 0x4cb   : > { %1630 = vmatpush.msra.mxu2 %v1556_v48  ;;  %3660 = vmatpush.msrb.mxu3 %v1556_v48  ;;  %v1652_v48 = vld [vmem:[%s5583_s8 + $0x8] sm:$0xff] }
 0x4d0   : > { %v1542_v2 = vpop.xlane.xlu1 %1541 }
 0x4d1   : > { %v1554_v0 = vmul.f32 0.00390625, %v1542_v2  ;;  %v1653_v2 = vld [vmem:[%s5583_s8 + $0x10] sm:$0xff] }
 0x4d3   : > { %v1536_v34 = vpop.xlane.xlu0 %1535 }
 0x4d4   : > { %v1552_v16 = vmul.f32 0.00390625, %v1536_v34  ;;  %v1655_v34 = vld [vmem:[%s5583_s8 + $0x20] sm:$0xff] }
 0x4d8   : > { %v1545_v11 = vpop.xlane.xlu2 %1544 }
 0x4d9   : > { %v1555_v14 = vmul.f32 0.00390625, %v1545_v11 }
 0x4db   : > { %1631 = vmatpush.msra.mxu2 %v1555_v14  ;;  %3661 = vmatpush.msrb.mxu3 %v1555_v14  ;;  %v1533_v1 = vpop.xlane.xlu1 %1532  ;;  %v1654_v14 = vld [vmem:[%s5583_s8 + $0x18] sm:$0xff] }
 0x4dc   : > { %v1551_v10 = vmul.f32 0.00390625, %v1533_v1  ;;  %v1657_v1 = vld [vmem:[%s5583_s8 + $0x30] sm:$0xff] }
 0x4dd   : > { %1632 = vmatpush.msra.mxu2 %v1554_v0  ;;  %3662 = vmatpush.msrb.mxu3 %v1554_v0 }
 0x4df   : > { %1633 = vmatpush.msra.mxu2 %v1553_v15  ;;  %3663 = vmatpush.msrb.mxu3 %v1553_v15  ;;  %v1656_v15 = vld [vmem:[%s5583_s8 + $0x28] sm:$0xff] }
 0x4e1   : > { %v1530_v25 = vpop.xlane.xlu2 %1529  ;;  %1634 = vmatpush.msra.mxu2 %v1552_v16  ;;  %3664 = vmatpush.msrb.mxu3 %v1552_v16  ;;  %v1658_v16 = vld [vmem:[%s5583_s8 + $0x38] sm:$0xff] }
 0x4e2   : > { %v1550_v54 = vmul.f32 0.00390625, %v1530_v25 }
 0x4e3   : > { %1635 = vmatpush.msra.mxu2 %v1551_v10  ;;  %3665 = vmatpush.msrb.mxu3 %v1551_v10  ;;  %v1596_v22 = vpop.xlane.xlu1 %1595 }
 0x4e4   : > { %v1604_v27 = vmul.f32 0.00390625, %v1596_v22 }
 0x4e5   : > { %1636 = vmatpush.msra.mxu2 %v1550_v54  ;;  %3666 = vmatpush.msrb.mxu3 %v1550_v54 }
 0x4e9   : > { %v1593_v49 = vpop.xlane.xlu2 %1592 }
 0x4ea   : > { %v1603_v45 = vmul.f32 0.00390625, %v1593_v49 }
 0x4eb   : > { %v1587_v52 = vpop.xlane.xlu1 %1586 }
 0x4ec   : > { %v1527_v56 = vpop.xlane.xlu0 %1526  ;;  %v1601_v24 = vmul.f32 0.00390625, %v1587_v52 }
 0x4ed   : > { %v1549_v53 = vmul.f32 0.00390625, %v1527_v56 }
 0x4ef   : > { %1637 = vmatpush.msra.mxu2 %v1549_v53  ;;  %3667 = vmatpush.msrb.mxu3 %v1549_v53 }
 0x4f0   : > { %3422 = vmatmul.msk.f32.vlgmr.msrb.gmra.mxu3 %vm1609_vm9, %v1607_v60  ;;  %3420 = vmatmul.msk.f32.vlgmr.msra.gmra.mxu2 %vm1609_vm9, %v1605_v42 }
 0x4f1   : > { %1732 = vmatpush.msrb.mxu2 %v1604_v27  ;;  %v1584_v21 = vpop.xlane.xlu2 %1583 }
 0x4f2   : > { %v1600_v61 = vmul.f32 0.00390625, %v1584_v21 }
 0x4f3   : > { %1733 = vmatpush.msrb.mxu2 %v1603_v45  ;;  %v1578_v17 = vpop.xlane.xlu1 %1577 }
 0x4f4   : > { %v1590_v39 = vpop.xlane.xlu0 %1589  ;;  %v1598_v5 = vmul.f32 0.00390625, %v1578_v17 }
 0x4f5   : > { %v1602_v47 = vmul.f32 0.00390625, %v1590_v39 }
 0x4f7   : > { %1734 = vmatpush.msrb.mxu2 %v1602_v47 }
 0x4f8   : > { %3423 = vmatmul.msk.f32.gmra.mxu3 %vm1609_vm9, %v1608_v41  ;;  %3421 = vmatmul.msk.f32.gmra.mxu2 %vm1609_vm9, %v1606_v59 }
 0x4f9   : > { %1735 = vmatpush.msrb.mxu2 %v1601_v24  ;;  %v1575_v63 = vpop.xlane.xlu2 %1574 }
 0x4fa   : > { %v1597_v28 = vmul.f32 0.00390625, %v1575_v63 }
 0x4fb   : > { %1736 = vmatpush.msrb.mxu2 %v1600_v61 }
 0x4fc   : > { %v1581_v32 = vpop.xlane.xlu0 %1580 }
 0x4fd   : > { %v1599_v23 = vmul.f32 0.00390625, %v1581_v32 }
 0x4ff   : > { %1737 = vmatpush.msrb.mxu2 %v1599_v23 }
 0x501   : > { %1738 = vmatpush.msrb.mxu2 %v1598_v5 }
 0x503   : > { %1739 = vmatpush.msrb.mxu2 %v1597_v28 }
 0x504   : > { %3432 = vmatmul.msk.f32.vlgmr.msrb.gmra.mxu2 %vm1609_vm9, %v1605_v42 }
 0x50c   : > { %3433 = vmatmul.msk.f32.gmra.mxu2 %vm1609_vm9, %v1606_v59 }
 0x514   : > { %3434 = vmatmul.msk.f32.gmra.mxu2 %vm1609_vm9, %v1607_v60 }
 0x51c   : > { %3435 = vmatmul.msk.f32.gmra.mxu2 %vm1609_vm9, %v1608_v41 }
 0x573   : > { %v1645_v3 = vpop.f32.mrf.mxu3  ;;  %v1639_v7 = vpop.f32.mrf.mxu2 }
 0x57b   : > { %v1648_v8 = vpop.f32.mrf.mxu3  ;;  %v1642_v40 = vpop.f32.mrf.mxu2 }
 0x57c   : > { %1695 = vmatpush.msra.mxu3 %v1648_v8 }
 0x57e   : > { %1696 = vmatpush.msra.mxu3 %v1645_v3 }
 0x580   : > { %1697 = vmatpush.msra.mxu3 %v1642_v40 }
 0x582   : > { %1698 = vmatpush.msra.mxu3 %v1639_v7 }
 0x583   : > { %3424 = vmatmul.msk.f32.vlgmr.msra.gmra.mxu3 %vm599_vm0, %v1651_v13 }
 0x587   : > { %v1741_v18 = vpop.f32.mrf.mxu2 }
 0x58b   : > { %3425 = vmatmul.msk.f32.gmra.mxu3 %vm599_vm0, %v1652_v48 }
 0x58f   : > { %v1744_v29 = vpop.f32.mrf.mxu2 }
 0x593   : > { %3426 = vmatmul.msk.f32.gmra.mxu3 %vm599_vm0, %v1653_v2 }
 0x597   : > { %v1747_v11 = vpop.f32.mrf.mxu2 }
 0x59b   : > { %3427 = vmatmul.msk.f32.gmra.mxu3 %vm599_vm0, %v1654_v14 }
 0x59f   : > { %v1750_v0 = vpop.f32.mrf.mxu2 }
 0x5a0   : > { %1765 = vmatpush.msra.mxu0 %v1750_v0 }
 0x5a2   : > { %1766 = vmatpush.msra.mxu0 %v1747_v11 }
 0x5a3   : > { %3428 = vmatmul.msk.f32.gmra.mxu3 %vm599_vm0, %v1655_v34 }
 0x5a4   : > { %1767 = vmatpush.msra.mxu0 %v1744_v29 }
 0x5a6   : > { %1768 = vmatpush.msra.mxu0 %v1741_v18  ;;  %v1898_v18 = vld [vmem:[%s5584_s9] sm:$0xff] }
 0x5a7   : > { %3436 = vmatmul.msk.f32.vlgmr.msra.gmra.mxu0 %vm599_vm0, %v1651_v13 }
 0x5ab   : > { %3429 = vmatmul.msk.f32.gmra.mxu3 %vm599_vm0, %v1656_v15 }
 0x5af   : > { %3437 = vmatmul.msk.f32.gmra.mxu0 %vm599_vm0, %v1652_v48 }
 0x5b3   : > { %3430 = vmatmul.msk.f32.gmra.mxu3 %vm599_vm0, %v1657_v1 }
 0x5b7   : > { %3438 = vmatmul.msk.f32.gmra.mxu0 %vm599_vm0, %v1653_v2 }
 0x5bb   : > { %3431 = vmatmul.msk.f32.gmra.mxu3 %vm599_vm0, %v1658_v16 }
 0x5bf   : > { %3439 = vmatmul.msk.f32.gmra.mxu0 %vm599_vm0, %v1654_v14 }
 0x5c7   : > { %3440 = vmatmul.msk.f32.gmra.mxu0 %vm599_vm0, %v1655_v34 }
 0x5cf   : > { %3441 = vmatmul.msk.f32.gmra.mxu0 %vm599_vm0, %v1656_v15 }
 0x5d7   : > { %3442 = vmatmul.msk.f32.gmra.mxu0 %vm599_vm0, %v1657_v1 }
 0x5df   : > { %3443 = vmatmul.msk.f32.gmra.mxu0 %vm599_vm0, %v1658_v16 }
 0x606   : > { %v1700_v25 = vpop.f32.mrf.mxu3 }
 0x607   : > { %1916 = vperm.xlu1 %3683, %v1700_v25   ;;  %v1794_v49 = vmul.f32 %v1700_v25, %v1700_v25  ;;  %v1899_v25 = vld [vmem:[%s5584_s9 + $0x8] sm:$0xff] }
 0x60e   : > { %v1703_v10 = vpop.f32.mrf.mxu3 }
 0x60f   : > { %1921 = vperm.xlu0 %3684, %v1703_v10   ;;  %v1795_v42 = vmul.f32 %v1703_v10, %v1703_v10 }
 0x616   : > { %v1706_v54 = vpop.f32.mrf.mxu3 }
 0x617   : > { %1926 = vperm.xlu1 %3683, %v1706_v54   ;;  %v1796_v24 = vmul.f32 %v1706_v54, %v1706_v54 }
 0x61e   : > { %v1709_v22 = vpop.f32.mrf.mxu3 }
 0x61f   : > { %1931 = vperm.xlu0 %3684, %v1709_v22   ;;  %v1797_v8 = vmul.f32 %v1709_v22, %v1709_v22 }
 0x624   : > { %v1770_v56 = vpop.f32.mrf.mxu0 }
 0x625   : > { %v1802_v53 = vsub.f32 %v1770_v56, %v1794_v49 }
 0x626   : > { %v1712_v60 = vpop.f32.mrf.mxu3 }
 0x627   : > { %v1810_v27 = vadd.f32 1e-06, %v1802_v53  ;;  %1936 = vperm.xlu1 %3683, %v1712_v60   ;;  %v1798_v10 = vmul.f32 %v1712_v60, %v1712_v60  ;;  %v1900_v60 = vld [vmem:[%s5584_s9 + $0x10] sm:$0xff] }
 0x629   : > { %3725 = vrsqrt.f32 %v1810_v27  ;;  %vm1824_vm11 = vweird.f32 %v1810_v27 }
 0x62c   : > { %v1773_v45 = vpop.f32.mrf.mxu0 }
 0x62d   : > { %v1803_v52 = vsub.f32 %v1773_v45, %v1795_v42 }
 0x62e   : > { %v1715_v21 = vpop.f32.mrf.mxu3 }
 0x62f   : > { %v3726_v39 = vpop.eup %3725  ;;  %v1811_v47 = vadd.f32 1e-06, %v1803_v52  ;;  %1941 = vperm.xlu0 %3684, %v1715_v21  }
 0x630   : > { %v1819_v41 = vmul.f32 %v3726_v39, %v1810_v27  ;;  %vm1825_vm10 = vweird.f32 %v3726_v39 }
 0x631   : > { %3727 = vrsqrt.f32 %v1811_v47  ;;  %vm1826_vm12 = vmor %vm1824_vm11, %vm1825_vm10  ;;  %vm1834_vm14 = vweird.f32 %v1811_v47 }
 0x632   : > { %v1820_v59 = vmul.f32 %v3726_v39, %v1819_v41  ;;  %v1799_v41 = vmul.f32 %v1715_v21, %v1715_v21  ;;  %v1901_v21 = vld [vmem:[%s5584_s9 + $0x18] sm:$0xff] }
 0x634   : > { %v1821_v61 = vmul.f32 0.5, %v1820_v59  ;;  %v1776_v17 = vpop.f32.mrf.mxu0 }
 0x635   : > { %v1804_v32 = vsub.f32 %v1776_v17, %v1796_v24 }
 0x636   : > { %v1822_v23 = vsub.f32 1.5, %v1821_v61  ;;  %v4637_v63 = vpop.f32.mrf.mxu3 }
 0x637   : > { %v3728_v5 = vpop.eup %3727  ;;  %v1812_v28 = vadd.f32 1e-06, %v1804_v32  ;;  %1946 = vperm.xlu0 %3684, %v4637_v63  }
 0x638   : > { %v1829_v3 = vmul.f32 %v3728_v5, %v1811_v47  ;;  %v1823_v7 = vmul.f32 %v3726_v39, %v1822_v23  ;;  %vm1835_vm13 = vweird.f32 %v3728_v5 }
 0x639   : > { %3729 = vrsqrt.f32 %v1812_v28  ;;  %vm1836_vm15 = vmor %vm1834_vm14, %vm1835_vm13  ;;  %vm1844_vm2 = vweird.f32 %v1812_v28 }
 0x63a   : > { %v1830_v40 = vmul.f32 %v3728_v5, %v1829_v3  ;;  %v1827_v13 = vsel %vm1826_vm12, %v3726_v39, %v1823_v7 }
 0x63b   : > { %v1906_v11 = vmul.f32 %v1898_v18, %v1827_v13 }
 0x63c   : > { %v1831_v48 = vmul.f32 0.5, %v1830_v40  ;;  %v1779_v29 = vpop.f32.mrf.mxu0  ;;  %v1800_v40 = vmul.f32 %v4637_v63, %v4637_v63  ;;  %v1902_v63 = vld [vmem:[%s5584_s9 + $0x20] sm:$0xff] }
 0x63d   : > { %v1805_v2 = vsub.f32 %v1779_v29, %v1797_v8 }
 0x63e   : > { %v1832_v14 = vsub.f32 1.5, %v1831_v48  ;;  %v4643_v0 = vpop.f32.mrf.mxu3 }
 0x63f   : > { %v3730_v34 = vpop.eup %3729  ;;  %v1813_v15 = vadd.f32 1e-06, %v1805_v2  ;;  %1951 = vperm.xlu1 %3683, %v4643_v0   ;;  %1972 = vperm.xlu0 %3684, %v1906_v11  }
 0x640   : > { %v1839_v1 = vmul.f32 %v3730_v34, %v1812_v28  ;;  %v1833_v16 = vmul.f32 %v3728_v5, %v1832_v14  ;;  %vm1845_vm1 = vweird.f32 %v3730_v34 }
 0x641   : > { %3731 = vrsqrt.f32 %v1813_v15  ;;  %vm1846_vm5 = vmor %vm1844_vm2, %vm1845_vm1  ;;  %vm1854_vm10 = vweird.f32 %v1813_v15 }
 0x642   : > { %v1840_v54 = vmul.f32 %v3730_v34, %v1839_v1  ;;  %v1837_v22 = vsel %vm1836_vm15, %v3728_v5, %v1833_v16 }
 0x643   : > { %v1907_v49 = vmul.f32 %v1899_v25, %v1837_v22  ;;  %v1801_v25 = vmul.f32 %v4643_v0, %v4643_v0  ;;  %v1903_v0 = vld [vmem:[%s5584_s9 + $0x28] sm:$0xff] }
 0x644   : > { %v1841_v56 = vmul.f32 0.5, %v1840_v54  ;;  %v1782_v53 = vpop.f32.mrf.mxu0 }
 0x645   : > { %v1806_v27 = vsub.f32 %v1782_v53, %v1798_v10  ;;  %1977 = vperm.xlu2 %3682, %v1907_v49  }
 0x646   : > { %v1842_v42 = vsub.f32 1.5, %v1841_v56 }
 0x647   : > { %v3732_v45 = vpop.eup %3731  ;;  %v1814_v52 = vadd.f32 1e-06, %v1806_v27 }
 0x648   : > { %v1849_v39 = vmul.f32 %v3732_v45, %v1813_v15  ;;  %v1843_v47 = vmul.f32 %v3730_v34, %v1842_v42  ;;  %vm1855_vm6 = vweird.f32 %v3732_v45 }
 0x649   : > { %3733 = vrsqrt.f32 %v1814_v52  ;;  %vm1856_vm11 = vmor %vm1854_vm10, %vm1855_vm6  ;;  %vm1864_vm13 = vweird.f32 %v1814_v52 }
 0x64a   : > { %v1850_v24 = vmul.f32 %v3732_v45, %v1849_v39  ;;  %v1847_v59 = vsel %vm1846_vm5, %v3730_v34, %v1843_v47 }
 0x64b   : > { %v1908_v61 = vmul.f32 %v1900_v60, %v1847_v59 }
 0x64c   : > { %v1851_v17 = vmul.f32 0.5, %v1850_v24  ;;  %v1785_v32 = vpop.f32.mrf.mxu0 }
 0x64d   : > { %v1807_v23 = vsub.f32 %v1785_v32, %v1799_v41  ;;  %1982 = vperm.xlu0 %3684, %v1908_v61  }
 0x64e   : > { %v1852_v5 = vsub.f32 1.5, %v1851_v17 }
 0x64f   : > { %v3734_v3 = vpop.eup %3733  ;;  %v1815_v28 = vadd.f32 1e-06, %v1807_v23  ;;  %v1904_v23 = vld [vmem:[%s5584_s9 + $0x30] sm:$0xff] }
 0x650   : > { %v1859_v7 = vmul.f32 %v3734_v3, %v1814_v52  ;;  %v1853_v8 = vmul.f32 %v3732_v45, %v1852_v5  ;;  %vm1865_vm12 = vweird.f32 %v3734_v3 }
 0x651   : > { %3735 = vrsqrt.f32 %v1815_v28  ;;  %vm1866_vm14 = vmor %vm1864_vm13, %vm1865_vm12  ;;  %vm1874_vm1 = vweird.f32 %v1815_v28 }
 0x652   : > { %v1860_v13 = vmul.f32 %v3734_v3, %v1859_v7  ;;  %v1857_v18 = vsel %vm1856_vm11, %v3732_v45, %v1853_v8 }
 0x653   : > { %v1909_v48 = vmul.f32 %v1901_v21, %v1857_v18 }
 0x654   : > { %v1861_v29 = vmul.f32 0.5, %v1860_v13  ;;  %v1788_v2 = vpop.f32.mrf.mxu0 }
 0x655   : > { %v1808_v11 = vsub.f32 %v1788_v2, %v1800_v40  ;;  %1987 = vperm.xlu2 %3682, %v1909_v48   ;;  %v1905_v40 = vld [vmem:[%s5584_s9 + $0x38] sm:$0xff]  ;;  %v2027_v48 = vld [vmem:[%s5585_s10 + $0x8] sm:$0xff] }
 0x656   : > { %v1862_v14 = vsub.f32 1.5, %v1861_v29  ;;  %v4674_v29 = vpop.permute.xlu1 %2071 }
 0x657   : > { %v3736_v34 = vpop.eup %3735  ;;  %v1816_v15 = vadd.f32 1e-06, %v1808_v11 }
 0x658   : > { %v1869_v1 = vmul.f32 %v3736_v34, %v1815_v28  ;;  %v1863_v16 = vmul.f32 %v3734_v3, %v1862_v14  ;;  %vm1875_vm15 = vweird.f32 %v3736_v34  ;;  %v4680_v14 = vpop.permute.xlu2 %2066 }
 0x659   : > { %3737 = vrsqrt.f32 %v1816_v15  ;;  %vm1876_vm2 = vmor %vm1874_vm1, %vm1875_vm15  ;;  %vm1884_vm6 = vweird.f32 %v1816_v15 }
 0x65a   : > { %v1870_v10 = vmul.f32 %v3736_v34, %v1869_v1  ;;  %v1867_v54 = vsel %vm1866_vm14, %v3734_v3, %v1863_v16 }
 0x65b   : > { %v1910_v22 = vmul.f32 %v1902_v63, %v1867_v54 }
 0x65c   : > { %v1871_v49 = vmul.f32 0.5, %v1870_v10  ;;  %v1791_v56 = vpop.f32.mrf.mxu0 }
 0x65d   : > { %v1809_v53 = vsub.f32 %v1791_v56, %v1801_v25  ;;  %1992 = vperm.xlu0 %3684, %v1910_v22  }
 0x65e   : > { %v1872_v27 = vsub.f32 1.5, %v1871_v49  ;;  %v4678_v11 = vpop.permute.xlu1 %2061 }
 0x65f   : > { %v3738_v42 = vpop.eup %3737  ;;  %v1817_v45 = vadd.f32 1e-06, %v1809_v53 }
 0x660   : > { %v1879_v52 = vmul.f32 %v3738_v42, %v1816_v15  ;;  %v1873_v39 = vmul.f32 %v3736_v34, %v1872_v27  ;;  %vm1885_vm5 = vweird.f32 %v3738_v42  ;;  %v4682_v1 = vpop.permute.xlu2 %2056 }
 0x661   : > { %3739 = vrsqrt.f32 %v1817_v45  ;;  %vm1886_vm10 = vmor %vm1884_vm6, %vm1885_vm5  ;;  %vm1894_vm12 = vweird.f32 %v1817_v45 }
 0x662   : > { %v1880_v47 = vmul.f32 %v3738_v42, %v1879_v52  ;;  %v1877_v60 = vsel %vm1876_vm2, %v3736_v34, %v1873_v39 }
 0x663   : > { %v1911_v41 = vmul.f32 %v1903_v0, %v1877_v60 }
 0x664   : > { %v1881_v24 = vmul.f32 0.5, %v1880_v47 }
 0x665   : > { %1997 = vperm.xlu2 %3682, %v1911_v41  }
 0x666   : > { %v1882_v59 = vsub.f32 1.5, %v1881_v24  ;;  %v2052_v15 = vpop.permute.xlu1 %2051 }
 0x667   : > { %v3740_v61 = vpop.eup %3739 }
 0x668   : > { %v1889_v17 = vmul.f32 %v3740_v61, %v1817_v45  ;;  %v1883_v32 = vmul.f32 %v3738_v42, %v1882_v59  ;;  %vm1895_vm11 = vweird.f32 %v3740_v61  ;;  %v2047_v25 = vpop.permute.xlu2 %2046 }
 0x669   : > { %vm1896_vm13 = vmor %vm1894_vm12, %vm1895_vm11 }
 0x66a   : > { %v1890_v5 = vmul.f32 %v3740_v61, %v1889_v17  ;;  %v1887_v3 = vsel %vm1886_vm10, %v3738_v42, %v1883_v32 }
 0x66b   : > { %v1912_v28 = vmul.f32 %v1904_v23, %v1887_v3 }
 0x66c   : > { %v1891_v7 = vmul.f32 0.5, %v1890_v5 }
 0x66d   : > { %2002 = vperm.xlu2 %3682, %v1912_v28  }
 0x66e   : > { %v1892_v8 = vsub.f32 1.5, %v1891_v7  ;;  %v2037_v63 = vpop.permute.xlu1 %2036 }
 0x670   : > { %v1893_v21 = vmul.f32 %v3740_v61, %v1892_v8 }
 0x672   : > { %v1897_v13 = vsel %vm1896_vm13, %v3740_v61, %v1893_v21 }
 0x673   : > { %v1913_v18 = vmul.f32 %v1905_v40, %v1897_v13 }
 0x675   : > { %2007 = vperm.xlu0 %3684, %v1913_v18  }
 0x679   : > { %v1917_v54 = vpop.permute.xlu1 %1916 }
 0x67a   : > { %v1954_v22 = vsub.f32 %v4530_v12, %v1917_v54  ;;  %v1955_v49 = vsub.f32 %v4532_v58, %v1917_v54 }
 0x67d   : > { %2041 = vperm.xlu0 %3684, %v2027_v48  }
 0x681   : > { %v4676_v2 = vpop.permute.xlu0 %1921 }
 0x689   : > { %v1927_v41 = vpop.permute.xlu1 %1926 }
 0x68a   : > { %v1958_v12 = vsub.f32 %v4477_v50, %v1927_v41  ;;  %v1959_v58 = vsub.f32 %v4479_v51, %v1927_v41 }
 0x691   : > { %v1932_v34 = vpop.permute.xlu0 %1931 }
 0x692   : > { %v1960_v60 = vsub.f32 %v4450_v46, %v1932_v34  ;;  %v1961_v61 = vsub.f32 %v4452_v19, %v1932_v34 }
 0x69f   : > { %v4690_v56 = vpop.permute.xlu2 %1977 }
 0x6a1   : > { %v4684_v16 = vpop.permute.xlu0 %1941 }
 0x6a2   : > { %v1964_v54 = vsub.f32 %v4427_v57, %v4684_v16 }
 0x6a9   : > { %v4686_v10 = vpop.permute.xlu0 %1946 }
 0x6af   : > { %v1988_v0 = vpop.permute.xlu2 %1987 }
 0x6b0   : > { %v2016_v24 = vmul.f32 %v1988_v0, %v1960_v60  ;;  %v2017_v3 = vmul.f32 %v1988_v0, %v1961_v61 }
 0x6b1   : > { %v1973_v53 = vpop.permute.xlu0 %1972 }
 0x6b2   : > { %v2010_v27 = vmul.f32 %v1973_v53, %v1954_v22  ;;  %v2011_v42 = vmul.f32 %v1973_v53, %v1955_v49  ;;  %v4698_v17 = vadd.f32 %v2052_v15, %v2016_v24  ;;  %v4701_v50 = vadd.f32 %v2052_v15, %v2017_v3 }
 0x6b4   : > { %v2074_v45 = vadd.f32 %v2037_v63, %v2010_v27  ;;  %v4692_v52 = vadd.f32 %v2037_v63, %v2011_v42  ;;  %v2096_v46 = vsub.f32 0.0, %v4698_v17  ;;  %v2097_v48 = vsub.f32 0.0, %v4701_v50  ;;  %v1937_v63 = vpop.permute.xlu1 %1936 }
 0x6b5   : > { %v1962_v15 = vsub.f32 %v4382_v9, %v1937_v63  ;;  %v1963_v42 = vsub.f32 %v4385_v44, %v1937_v63  ;;  %v1965_v9 = vsub.f32 %v4430_v62, %v4684_v16  ;;  %v1967_v62 = vsub.f32 %v4475_v20, %v4686_v10 }
 0x6b6   : > { %v2090_v39 = vsub.f32 0.0, %v2074_v45  ;;  %v2118_v18 = vmul.f32 1.442695, %v2096_v46  ;;  %v2120_v49 = vmul.f32 1.442695, %v2097_v48 }
 0x6b8   : > { %v2106_v47 = vmul.f32 1.442695, %v2090_v39 }
 0x6ba   : > { %3741 = vpow2.f32 %v2106_v47 }
 0x6bf   : > { %v1983_v59 = vpop.permute.xlu0 %1982  ;;  %v1998_v34 = vpop.permute.xlu2 %1997 }
 0x6c0   : > { %v2014_v32 = vmul.f32 %v1983_v59, %v1958_v12  ;;  %v3742_v23 = vpop.eup %3741  ;;  %v2015_v5 = vmul.f32 %v1983_v59, %v1959_v58  ;;  %v2020_v22 = vmul.f32 %v1998_v34, %v1964_v54  ;;  %v2021_v44 = vmul.f32 %v1998_v34, %v1965_v9 }
 0x6c1   : > { %v2138_v28 = vadd.f32 1.0, %v3742_v23 }
 0x6c2   : > { %v2078_v7 = vadd.f32 %v2047_v25, %v2014_v32  ;;  %v2079_v8 = vadd.f32 %v2047_v25, %v2015_v5  ;;  %v4713_v47 = vadd.f32 %v4678_v11, %v2020_v22  ;;  %v1966_v32 = vsub.f32 %v4472_v55, %v4686_v10 }
 0x6c3   : > { %3743 = vrcp.f32 %v2138_v28  ;;  %v4727_v16 = vadd.f32 %v4678_v11, %v2021_v44  ;;  %v1956_v44 = vsub.f32 %v4502_v6, %v4676_v2 }
 0x6c4   : > { %v2094_v21 = vsub.f32 0.0, %v2078_v7  ;;  %v2095_v40 = vsub.f32 0.0, %v2079_v8  ;;  %v2100_v59 = vsub.f32 0.0, %v4713_v47 }
 0x6c5   : > { %v2101_v20 = vsub.f32 0.0, %v4727_v16 }
 0x6c6   : > { %v2114_v51 = vmul.f32 1.442695, %v2094_v21  ;;  %v2116_v13 = vmul.f32 1.442695, %v2095_v40  ;;  %v2126_v21 = vmul.f32 1.442695, %v2100_v59 }
 0x6c7   : > { %v2003_v61 = vpop.permute.xlu2 %2002  ;;  %v2128_v63 = vmul.f32 1.442695, %v2101_v20 }
 0x6c8   : > { %3745 = vpow2.f32 %v2114_v51  ;;  %v2022_v28 = vmul.f32 %v2003_v61, %v1966_v32 }
 0x6c9   : > { %v3744_v19 = vpop.eup %3743  ;;  %3747 = vpow2.f32 %v2116_v13 }
 0x6ca   : > { %v4706_v25 = vmul.f32 %v3744_v19, %v2074_v45  ;;  %3749 = vpow2.f32 %v2118_v18  ;;  %v4735_v19 = vadd.f32 %v4680_v14, %v2022_v28 }
 0x6cb   : > { %3751 = vpow2.f32 %v2120_v49 }
 0x6cc   : > { %2250 = vrot.lane.b32.xlu2 %v4706_v25, %s3822_s17  ;;  %v2102_v34 = vsub.f32 0.0, %v4735_v19 }
 0x6ce   : > { %v3746_v27 = vpop.eup %3745 }
 0x6cf   : > { %v1993_v53 = vpop.permute.xlu0 %1992  ;;  %v3748_v0 = vpop.eup %3747  ;;  %v2142_v57 = vadd.f32 1.0, %v3746_v27 }
 0x6d0   : > { %v2018_v39 = vmul.f32 %v1993_v53, %v1962_v15  ;;  %v3750_v45 = vpop.eup %3749  ;;  %v2143_v60 = vadd.f32 1.0, %v3748_v0  ;;  %v2019_v41 = vmul.f32 %v1993_v53, %v1963_v42  ;;  %v1952_v15 = vpop.permute.xlu1 %1951  ;;  %v2130_v53 = vmul.f32 1.442695, %v2102_v34 }
 0x6d1   : > { %3753 = vrcp.f32 %v2142_v57  ;;  %v2144_v58 = vadd.f32 1.0, %v3750_v45  ;;  %v3752_v3 = vpop.eup %3751  ;;  %v1968_v27 = vsub.f32 %v4375_v31, %v1952_v15  ;;  %v1969_v42 = vsub.f32 %v4378_v33, %v1952_v15 }
 0x6d2   : > { %v2082_v24 = vadd.f32 %v4682_v1, %v2018_v39  ;;  %3755 = vrcp.f32 %v2143_v60  ;;  %v4722_v23 = vadd.f32 %v4682_v1, %v2019_v41  ;;  %v2023_v1 = vmul.f32 %v2003_v61, %v1967_v62 }
 0x6d3   : > { %v2145_v18 = vadd.f32 1.0, %v3752_v3  ;;  %v2091_v61 = vsub.f32 0.0, %v4692_v52 }
 0x6d4   : > { %v2098_v12 = vsub.f32 0.0, %v2082_v24  ;;  %v2099_v51 = vsub.f32 0.0, %v4722_v23  ;;  %v4743_v48 = vadd.f32 %v4680_v14, %v2023_v1 }
 0x6d5   : > { %v2108_v62 = vmul.f32 1.442695, %v2091_v61 }
 0x6d6   : > { %v2122_v5 = vmul.f32 1.442695, %v2098_v12  ;;  %v2124_v10 = vmul.f32 1.442695, %v2099_v51  ;;  %v2103_v49 = vsub.f32 0.0, %v4743_v48 }
 0x6d7   : > { %v3754_v46 = vpop.eup %3753 }
 0x6d8   : > { %3757 = vpow2.f32 %v2122_v5  ;;  %v3756_v40 = vpop.eup %3755  ;;  %v4730_v55 = vmul.f32 %v3754_v46, %v2078_v7  ;;  %v2132_v0 = vmul.f32 1.442695, %v2103_v49 }
 0x6d9   : > { %3759 = vrcp.f32 %v2144_v58  ;;  %v4732_v13 = vmul.f32 %v3756_v40, %v2079_v8 }
 0x6da   : > { %2190 = vrot.lane.b32.xlu0 %v4730_v55, %s3823_s20  ;;  %3761 = vpow2.f32 %v2126_v21 }
 0x6db   : > { %2270 = vrot.lane.b32.xlu2 %v4732_v13, %s3822_s17  ;;  %3763 = vrcp.f32 %v2145_v18 }
 0x6de   : > { %v3758_v11 = vpop.eup %3757 }
 0x6df   : > { %v3760_v7 = vpop.eup %3759  ;;  %v2146_v8 = vadd.f32 1.0, %v3758_v11 }
 0x6e0   : > { %v4747_v54 = vmul.f32 %v3760_v7, %v4698_v17  ;;  %v3762_v22 = vpop.eup %3761 }
 0x6e1   : > { %3765 = vrcp.f32 %v2146_v8  ;;  %v3764_v14 = vpop.eup %3763  ;;  %v2148_v39 = vadd.f32 1.0, %v3762_v22 }
 0x6e2   : > { %3767 = vpow2.f32 %v2124_v10  ;;  %2256 = vrot.lane.b32.xlu0 %v4747_v54, %s3822_s17  ;;  %v4765_v31 = vmul.f32 %v3764_v14, %v4701_v50 }
 0x6e3   : > { %3769 = vpow2.f32 %v2128_v63  ;;  %2192 = vrot.lane.b32.xlu2 %v4747_v54, %s3823_s20 }
 0x6e4   : > { %3771 = vpow2.f32 %v2130_v53 }
 0x6e5   : > { %3773 = vrcp.f32 %v2148_v39 }
 0x6e6   : > { %3775 = vpow2.f32 %v2132_v0 }
 0x6e7   : > { %v3766_v17 = vpop.eup %3765  ;;  %v2008_v57 = vpop.permute.xlu0 %2007 }
 0x6e8   : > { %v3768_v45 = vpop.eup %3767  ;;  %v2024_v60 = vmul.f32 %v2008_v57, %v1968_v27  ;;  %v2025_v41 = vmul.f32 %v2008_v57, %v1969_v42  ;;  %v4756_v9 = vmul.f32 %v3766_v17, %v2082_v24  ;;  %v1957_v24 = vsub.f32 %v4504_v26, %v4676_v2 }
 0x6e9   : > { %v3770_v33 = vpop.eup %3769  ;;  %v2147_v59 = vadd.f32 1.0, %v3768_v45 }
 0x6ea   : > { %v4759_v12 = vadd.f32 %v4674_v29, %v2024_v60  ;;  %v4762_v58 = vadd.f32 %v4674_v29, %v2025_v41  ;;  %2208 = vrot.lane.b32.xlu0 %v4765_v31, %s3823_s20  ;;  %v2012_v29 = vmul.f32 %v4690_v56, %v1956_v44  ;;  %v3772_v6 = vpop.eup %3771  ;;  %v2013_v50 = vmul.f32 %v4690_v56, %v1957_v24 }
 0x6eb   : > { %2194 = vrot.lane.b32.xlu2 %v4756_v9, %s3823_s20  ;;  %v2149_v3 = vadd.f32 1.0, %v3770_v33  ;;  %3777 = vrcp.f32 %v2147_v59  ;;  %v3774_v46 = vpop.eup %3773  ;;  %v2150_v1 = vadd.f32 1.0, %v3772_v6 }
 0x6ec   : > { %v2104_v32 = vsub.f32 0.0, %v4759_v12  ;;  %v2105_v5 = vsub.f32 0.0, %v4762_v58  ;;  %v3776_v51 = vpop.eup %3775  ;;  %v4784_v56 = vmul.f32 %v3774_v46, %v4713_v47  ;;  %v3000_v46 = vld [vmem:[%s5587_s12] sm:$0xff] }
 0x6ed   : > { %v2151_v11 = vadd.f32 1.0, %v3776_v51 }
 0x6ee   : > { %v2134_v28 = vmul.f32 1.442695, %v2104_v32  ;;  %v2136_v26 = vmul.f32 1.442695, %v2105_v5  ;;  %v4817_v5 = vpack.c.bf16 %v4747_v54, %v4730_v55 }
 0x6ef   : > { %v2042_v2 = vpop.permute.xlu0 %2041 }
 0x6f0   : > { %3779 = vpow2.f32 %v2134_v28  ;;  %v2076_v21 = vadd.f32 %v2042_v2, %v2012_v29  ;;  %v4780_v40 = vadd.f32 %v2042_v2, %v2013_v50  ;;  %v3076_v28 = vld [vmem:[%s5589_s14] sm:$0xff]  ;;  %v3079_v2 = vld [vmem:[%s5589_s14 + $0x18] sm:$0xff] }
 0x6f1   : > { %3781 = vpow2.f32 %v2136_v26  ;;  %v3778_v8 = vpop.eup %3777  ;;  %v3078_v26 = vld [vmem:[%s5589_s14 + $0x10] sm:$0xff] }
 0x6f2   : > { %3783 = vrcp.f32 %v2149_v3  ;;  %v2092_v18 = vsub.f32 0.0, %v2076_v21  ;;  %v2093_v20 = vsub.f32 0.0, %v4780_v40  ;;  %2258 = vrot.lane.b32.xlu0 %v4756_v9, %s3822_s17  ;;  %v2179_v53 = vmul.f32 %v3778_v8, %v4722_v23  ;;  %v3007_v3 = vld [vmem:[%s5587_s12 + $0x38] sm:$0xff] }
 0x6f3   : > { %3785 = vpow2.f32 %v2108_v62  ;;  %2260 = vrot.lane.b32.xlu2 %v4784_v56, %s3822_s17 }
 0x6f4   : > { %v2110_v10 = vmul.f32 1.442695, %v2092_v18  ;;  %v2112_v7 = vmul.f32 1.442695, %v2093_v20  ;;  %3787 = vrcp.f32 %v2150_v1  ;;  %v3077_v18 = vld [vmem:[%s5589_s14 + $0x8] sm:$0xff] }
 0x6f6   : > { %v3780_v34 = vpop.eup %3779  ;;  %3789 = vpow2.f32 %v2110_v10  ;;  %v3080_v10 = vld [vmem:[%s5589_s14 + $0x20] sm:$0xff] }
 0x6f7   : > { %v3782_v63 = vpop.eup %3781  ;;  %v2152_v22 = vadd.f32 1.0, %v3780_v34  ;;  %3791 = vpow2.f32 %v2112_v7 }
 0x6f8   : > { %v3784_v15 = vpop.eup %3783  ;;  %3793 = vrcp.f32 %v2151_v11  ;;  %v2153_v47 = vadd.f32 1.0, %v3782_v63 }
 0x6f9   : > { %3795 = vrcp.f32 %v2152_v22  ;;  %v3786_v49 = vpop.eup %3785  ;;  %v2181_v27 = vmul.f32 %v3784_v15, %v4727_v16 }
 0x6fa   : > { %3797 = vrcp.f32 %v2153_v47  ;;  %v3788_v14 = vpop.eup %3787  ;;  %2210 = vrot.lane.b32.xlu0 %v2179_v53, %s3823_s20  ;;  %v2139_v41 = vadd.f32 1.0, %v3786_v49 }
 0x6fb   : > { %2212 = vrot.lane.b32.xlu2 %v2181_v27, %s3823_s20  ;;  %v2182_v23 = vmul.f32 %v3788_v14, %v4735_v19 }
 0x6fc   : > { %v3790_v42 = vpop.eup %3789 }
 0x6fd   : > { %v3792_v39 = vpop.eup %3791  ;;  %v2140_v17 = vadd.f32 1.0, %v3790_v42 }
 0x6fe   : > { %v3794_v0 = vpop.eup %3793  ;;  %v2141_v57 = vadd.f32 1.0, %v3792_v39 }
 0x6ff   : > { %v3796_v45 = vpop.eup %3795  ;;  %3799 = vrcp.f32 %v2140_v17  ;;  %v2183_v44 = vmul.f32 %v3794_v0, %v4743_v48  ;;  %v4808_v48 = vpack.c.bf16 %v4784_v56, %v4756_v9  ;;  %v4822_v9 = vpack.c.bf16 %v4765_v31, %v4732_v13 }
 0x700   : > { %v3798_v60 = vpop.eup %3797  ;;  %v2184_v33 = vmul.f32 %v3796_v45, %v4759_v12  ;;  %3801 = vrcp.f32 %v2141_v57  ;;  %v4810_v12 = vpack.c.bf16 %v2181_v27, %v2179_v53 }
 0x701   : > { %v2185_v16 = vmul.f32 %v3798_v60, %v4762_v58  ;;  %3803 = vrcp.f32 %v2139_v41 }
 0x702   : > { %v4798_v59 = vpack.c.bf16 %v2184_v33, %v2182_v23  ;;  %2276 = vrot.lane.b32.xlu0 %v2181_v27, %s3822_s17 }
 0x703   : > { %v4800_v24 = vpack.c.bf16 %v2185_v16, %v2183_v44  ;;  %2262 = vrot.lane.b32.xlu2 %v2182_v23, %s3822_s17 }
 0x704   : > { %2394 = vmatpush.bf16.msrb.mxu1 %v4798_v59 }
 0x705   : > { %v3800_v61 = vpop.eup %3799  ;;  %2452 = vmatpush.bf16.msrb.mxu3 %v4800_v24 }
 0x706   : > { %v2172_v19 = vmul.f32 %v3800_v61, %v2076_v21  ;;  %v3802_v58 = vpop.eup %3801  ;;  %v3003_v21 = vld [vmem:[%s5587_s12 + $0x18] sm:$0xff] }
 0x707   : > { %v3804_v32 = vpop.eup %3803  ;;  %v2173_v29 = vmul.f32 %v3802_v58, %v4780_v40 }
 0x708   : > { %2395 = vmatpush.bf16.msrb.mxu1 %v4808_v48  ;;  %2252 = vrot.lane.b32.xlu1 %v2172_v19, %s3822_s17  ;;  %v2171_v6 = vmul.f32 %v3804_v32, %v4692_v52  ;;  %v4830_v50 = vpack.c.bf16 %v2172_v19, %v4706_v25  ;;  %v3001_v52 = vld [vmem:[%s5587_s12 + $0x8] sm:$0xff] }
 0x709   : > { %2453 = vmatpush.bf16.msrb.mxu3 %v4810_v12 }
 0x70a   : > { %2278 = vrot.lane.b32.xlu0 %v2183_v44, %s3822_s17  ;;  %v4832_v54 = vpack.c.bf16 %v2173_v29, %v2171_v6 }
 0x70b   : > { %2214 = vrot.lane.b32.xlu2 %v2183_v44, %s3823_s20 }
 0x70c   : > { %2396 = vmatpush.bf16.msrb.mxu1 %v4817_v5 }
 0x70d   : > { %2454 = vmatpush.bf16.msrb.mxu3 %v4822_v9 }
 0x710   : > { %2254 = vrot.lane.b32.xlu1 %v4730_v55, %s3822_s17  ;;  %2397 = vmatpush.bf16.msrb.mxu1 %v4830_v50  ;;  %v3002_v55 = vld [vmem:[%s5587_s12 + $0x10] sm:$0xff] }
 0x711   : > { %2455 = vmatpush.bf16.msrb.mxu3 %v4832_v54 }
 0x712   : > { %2200 = vrot.lane.b32.xlu0 %v2184_v33, %s3823_s20 }
 0x713   : > { %2280 = vrot.lane.b32.xlu2 %v2185_v16, %s3822_s17 }
 0x718   : > { %2206 = vrot.lane.b32.xlu1 %v4732_v13, %s3823_s20  ;;  %v3004_v13 = vld [vmem:[%s5587_s12 + $0x20] sm:$0xff] }
 0x71a   : > { %2266 = vrot.lane.b32.xlu0 %v2171_v6, %s3822_s17 }
 0x71b   : > { %2268 = vrot.lane.b32.xlu2 %v2173_v29, %s3822_s17 }
 0x720   : > { %2272 = vrot.lane.b32.xlu1 %v4765_v31, %s3822_s17  ;;  %v3005_v31 = vld [vmem:[%s5587_s12 + $0x28] sm:$0xff] }
 0x722   : > { %2188 = vrot.lane.b32.xlu0 %v2172_v19, %s3823_s20 }
 0x723   : > { %2202 = vrot.lane.b32.xlu2 %v2171_v6, %s3823_s20 }
 0x726   : > { %v4884_v62 = vpop.permute.xlu2 %2250 }
 0x728   : > { %2274 = vrot.lane.b32.xlu1 %v2179_v53, %s3822_s17 }
 0x72a   : > { %3015 = vperm.xlu0 %3684, %v3001_v52  }
 0x72b   : > { %3020 = vperm.xlu2 %3682, %v3002_v55  }
 0x730   : > { %2196 = vrot.lane.b32.xlu1 %v4784_v56, %s3823_s20 }
 0x732   : > { %3030 = vperm.xlu0 %3684, %v3004_v13  }
 0x733   : > { %3035 = vperm.xlu2 %3682, %v3005_v31  }
 0x735   : > { %v2271_v51 = vpop.permute.xlu2 %2270 }
 0x738   : > { %2198 = vrot.lane.b32.xlu1 %v2182_v23, %s3823_s20 }
 0x73a   : > { %3045 = vperm.xlu0 %3684, %v3007_v3  }
 0x73b   : > { %3086 = vperm.xlu2 %3682, %v3076_v28  }
 0x73d   : > { %v2193_v20 = vpop.permute.xlu2 %2192 }
 0x740   : > { %2264 = vrot.lane.b32.xlu1 %v2184_v33, %s3822_s17  ;;  %s5598_s17 = smov 1  }
 0x742   : > { %3096 = vperm.xlu0 %3684, %v3078_v26  }
 0x743   : > { %3101 = vperm.xlu2 %3682, %v3079_v2  }
 0x745   : > { %v4900_v7 = vpop.permute.xlu2 %2194 }
 0x748   : > { %2216 = vrot.lane.b32.xlu1 %v2185_v16, %s3823_s20 }
 0x74c   : > { %v2191_v40 = vpop.permute.xlu0 %2190 }
 0x74d   : > { %v2261_v22 = vpop.permute.xlu2 %2260 }
 0x750   : > { %2186 = vrot.lane.b32.xlu1 %v4706_v25, %s3823_s20  ;;  %v3006_v25 = vld [vmem:[%s5587_s12 + $0x30] sm:$0xff] }
 0x754   : > { %v2257_v1 = vpop.permute.xlu0 %2256 }
 0x755   : > { %v2213_v57 = vpop.permute.xlu2 %2212 }
 0x758   : > { %2204 = vrot.lane.b32.xlu1 %v2173_v29, %s3823_s20 }
 0x75c   : > { %v2209_v11 = vpop.permute.xlu0 %2208 }
 0x75d   : > { %v2229_v63 = vsel %vm956_vm4, %v2209_v11, %v2193_v20  ;;  %v2221_v47 = vsel %vm956_vm4, %v2193_v20, %v2209_v11  ;;  %v2263_v41 = vpop.permute.xlu2 %2262 }
 0x75e   : > { %v2240_v14 = vmul.f32 %v4141_v4, %v2229_v63 }
 0x760   : > { %3010 = vperm.xlu1 %3683, %v3000_v46  }
 0x764   : > { %v2259_v34 = vpop.permute.xlu0 %2258 }
 0x765   : > { %v2215_v44 = vpop.permute.xlu2 %2214 }
 0x768   : > { %3025 = vperm.xlu1 %3683, %v3003_v21  }
 0x76c   : > { %v4916_v17 = vpop.permute.xlu0 %2210 }
 0x76d   : > { %v2281_v58 = vpop.permute.xlu2 %2280 }
 0x770   : > { %3040 = vperm.xlu1 %3683, %v3006_v25  }
 0x774   : > { %v2277_v45 = vpop.permute.xlu0 %2276 }
 0x775   : > { %v2295_v28 = vsel %vm989_vm3, %v2277_v45, %v2261_v22  ;;  %v2287_v21 = vsel %vm989_vm3, %v2261_v22, %v2277_v45 }
 0x776   : > { %v2309_v20 = vmul.f32 %v4104_v43, %v2295_v28 }
 0x778   : > { %3091 = vperm.xlu1 %3683, %v3077_v18  }
 0x77a   : > { %v4895_v56 = vpop.permute.xlu1 %2252 }
 0x77c   : > { %v2279_v23 = vpop.permute.xlu0 %2278 }
 0x77d   : > { %v2296_v19 = vsel %vm989_vm3, %v2279_v23, %v2263_v41  ;;  %v2288_v29 = vsel %vm989_vm3, %v2263_v41, %v2279_v23 }
 0x77e   : > { %v2311_v13 = vmul.f32 %v4104_v43, %v2296_v19 }
 0x780   : > { %3106 = vperm.xlu1 %3683, %v3080_v10   ;;  %v2230_v10 = vsel %vm956_vm4, %v4916_v17, %v4900_v7 }
 0x782   : > { %v2255_v8 = vpop.permute.xlu1 %2254 }
 0x784   : > { %v2201_v61 = vpop.permute.xlu0 %2200 }
 0x78a   : > { %v2207_v15 = vpop.permute.xlu1 %2206 }
 0x78b   : > { %v2220_v49 = vsel %vm956_vm4, %v2191_v40, %v2207_v15  ;;  %v2228_v53 = vsel %vm956_vm4, %v2207_v15, %v2191_v40  ;;  %v2292_v40 = vsel %vm989_vm3, %v2271_v51, %v2255_v8 }
 0x78c   : > { %v2238_v27 = vmul.f32 %v4141_v4, %v2228_v53  ;;  %v4912_v42 = vpack.c.bf16 %v2221_v47, %v2220_v49  ;;  %v2267_v25 = vpop.permute.xlu0 %2266  ;;  %v2303_v15 = vmul.f32 %v4104_v43, %v2292_v40  ;;  %v3446_v40 = vld [vmem:[%s5586_s11] sm:$0xf] }
 0x78d   : > { %v2290_v47 = vsel %vm989_vm3, %v2267_v25, %v4884_v62 }
 0x78e   : > { %v4914_v39 = vpack.c.bf16 %v2240_v14, %v2238_v27 }
 0x792   : > { %v2273_v0 = vpop.permute.xlu1 %2272 }
 0x793   : > { %v2293_v18 = vsel %vm989_vm3, %v2273_v0, %v2257_v1  ;;  %v2285_v63 = vsel %vm989_vm3, %v2257_v1, %v2273_v0  ;;  %v2269_v0 = vpop.permute.xlu2 %2268 }
 0x794   : > { %v2305_v49 = vmul.f32 %v4104_v43, %v2293_v18 }
 0x79a   : > { %v2275_v60 = vpop.permute.xlu1 %2274 }
 0x79b   : > { %v2294_v6 = vsel %vm989_vm3, %v2275_v60, %v2259_v34  ;;  %v2286_v26 = vsel %vm989_vm3, %v2259_v34, %v2275_v60  ;;  %v2284_v34 = vsel %vm989_vm3, %v2255_v8, %v2271_v51 }
 0x79c   : > { %v2307_v2 = vmul.f32 %v4104_v43, %v2294_v6  ;;  %v4947_v11 = vpack.c.bf16 %v2287_v21, %v2286_v26  ;;  %v4976_v45 = vpack.c.bf16 %v2285_v63, %v2284_v34  ;;  %v3620_v6 = vld [vmem:[%s5586_s11 + $0x4] sm:$0xf] }
 0x79e   : > { %v4966_v14 = vpack.c.bf16 %v2309_v20, %v2307_v2  ;;  %v2189_v2 = vpop.permute.xlu0 %2188 }
 0x7a2   : > { %v2197_v33 = vpop.permute.xlu1 %2196 }
 0x7a3   : > { %v2231_v51 = vsel %vm956_vm4, %v2213_v57, %v2197_v33  ;;  %v2223_v19 = vsel %vm956_vm4, %v2197_v33, %v2213_v57  ;;  %v2222_v57 = vsel %vm956_vm4, %v4900_v7, %v4916_v17  ;;  %v2242_v33 = vmul.f32 %v4141_v4, %v2230_v10 }
 0x7aa   : > { %v2199_v16 = vpop.permute.xlu1 %2198 }
 0x7ab   : > { %v2232_v22 = vsel %vm956_vm4, %v2215_v44, %v2199_v16  ;;  %v2224_v1 = vsel %vm956_vm4, %v2199_v16, %v2215_v44  ;;  %v2291_v44 = vsel %vm989_vm3, %v2269_v0, %v4895_v56  ;;  %v2282_v16 = vsel %vm989_vm3, %v4884_v62, %v2267_v25  ;;  %v3448_v62 = vld [vmem:[%s5586_s11 + $0x8] sm:$0xf0]  ;;  %v3621_v25 = vld [vmem:[%s5586_s11 + $0x4] sm:$0xf0] }
 0x7ac   : > { %v2246_v60 = vmul.f32 %v4141_v4, %v2232_v22  ;;  %v3451_v28 = vor.u32 %v3620_v6, %v3448_v62  ;;  %v3518_v6 = vld [vmem:[%s5586_s11 + $0xa0] sm:$0xf]  ;;  %v3641_v62 = vld [vmem:[%s5586_s11 + $0xa4] sm:$0xf0] }
 0x7b2   : > { %v2265_v32 = vpop.permute.xlu1 %2264 }
 0x7b3   : > { %v2289_v52 = vsel %vm989_vm3, %v2265_v32, %v2281_v58  ;;  %v2297_v55 = vsel %vm989_vm3, %v2281_v58, %v2265_v32  ;;  %v2244_v58 = vmul.f32 %v4141_v4, %v2231_v51  ;;  %v3464_v51 = vld [vmem:[%s5586_s11 + $0x28] sm:$0xf0] }
 0x7b4   : > { %v2313_v31 = vmul.f32 %v4104_v43, %v2297_v55  ;;  %v4930_v3 = vpack.c.bf16 %v2289_v52, %v2288_v29  ;;  %v4997_v29 = vpack.c.bf16 %v2305_v49, %v2303_v15  ;;  %v2283_v52 = vsel %vm989_vm3, %v4895_v56, %v2269_v0  ;;  %v3622_v49 = vld [vmem:[%s5586_s11 + $0x14] sm:$0xf] }
 0x7b5   : > { %v2301_v55 = vmul.f32 %v4104_v43, %v2291_v44  ;;  %v5019_v7 = vpack.c.bf16 %v2244_v58, %v2242_v33  ;;  %v3447_v15 = vor.u32 %v3621_v25, %v3446_v40  ;;  %v3640_v58 = vld [vmem:[%s5586_s11 + $0xa4] sm:$0xf]  ;;  %v3642_v33 = vld [vmem:[%s5586_s11 + $0xb4] sm:$0xf]  ;;  %v3805_v25 = vld [vmem:[%s3921_s23 + $0x38] sm:$0xff] }
 0x7b6   : > { %v4937_v46 = vpack.c.bf16 %v2313_v31, %v2311_v13  ;;  %2427 = vmatpush.bf16.msra.mxu2 %v4930_v3  ;;  %v2330_v13 = vpack.c.bf16 %v2283_v52, %v2282_v16  ;;  %v5014_v31 = vpack.c.bf16 %v2223_v19, %v2222_v57  ;;  %v3510_v16 = vld [vmem:[%s5586_s11 + $0x90] sm:$0xf]  ;;  %v3519_v57 = vor.u32 %v3641_v62, %v3518_v6  ;;  %v3528_v52 = vld [vmem:[%s5586_s11 + $0xb8] sm:$0xf0] }
 0x7b8   : > { %2485 = vmatpush.bf16.msrb.mxu0 %v4937_v46 }
 0x7ba   : > { %v2217_v53 = vpop.permute.xlu1 %2216  ;;  %2428 = vmatpush.bf16.msra.mxu2 %v4947_v11 }
 0x7bb   : > { %v2225_v8 = vsel %vm956_vm4, %v2201_v61, %v2217_v53  ;;  %v2233_v27 = vsel %vm956_vm4, %v2217_v53, %v2201_v61  ;;  %v2299_v61 = vmul.f32 %v4104_v43, %v2290_v47  ;;  %v2203_v43 = vpop.permute.xlu2 %2202  ;;  %v3456_v53 = vld [vmem:[%s5586_s11 + $0x18] sm:$0xf0] }
 0x7bc   : > { %v2248_v41 = vmul.f32 %v4141_v4, %v2233_v27  ;;  %v4980_v23 = vpack.c.bf16 %v2225_v8, %v2224_v1  ;;  %2486 = vmatpush.bf16.msrb.mxu0 %v4966_v14  ;;  %v3462_v8 = vld [vmem:[%s5586_s11 + $0x20] sm:$0xf]  ;;  %v3625_v27 = vld [vmem:[%s5586_s11 + $0x24] sm:$0xf0] }
 0x7bd   : > { %v2331_v17 = vpack.c.bf16 %v2301_v55, %v2299_v61  ;;  %v3463_v0 = vor.u32 %v3625_v27, %v3462_v8  ;;  %v3639_v61 = vld [vmem:[%s5586_s11 + $0x94] sm:$0xf0]  ;;  %v3531_v55 = vor.u32 %v3642_v33, %v3528_v52  ;;  %v3550_v27 = vld [vmem:[%s5586_s11 + $0x50] sm:$0xf]  ;;  %v3634_v33 = vld [vmem:[%s5586_s11 + $0x74] sm:$0xf] }
 0x7be   : > { %2429 = vmatpush.bf16.msra.mxu2 %v4976_v45  ;;  %2456 = vmatpush.bf16.msrb.mxu3 %v4980_v23  ;;  %v4995_v32 = vpack.c.bf16 %v2248_v41, %v2246_v60  ;;  %v3472_v60 = vld [vmem:[%s5586_s11 + $0x38] sm:$0xf0]  ;;  %v3511_v19 = vor.u32 %v3639_v61, %v3510_v16 }
 0x7bf   : > { %v3568_v52 = vld [vmem:[%s5586_s11 + $0x78] sm:$0xf0] }
 0x7c0   : > { %2398 = vmatpush.bf16.msrb.mxu1 %v4995_v32  ;;  %2487 = vmatpush.bf16.msrb.mxu0 %v4997_v29 }
 0x7c2   : > { %v2187_v26 = vpop.permute.xlu1 %2186  ;;  %2430 = vmatpush.bf16.msra.mxu2 %v2330_v13  ;;  %2457 = vmatpush.bf16.msrb.mxu3 %v5014_v31 }
 0x7c3   : > { %v2226_v56 = vsel %vm956_vm4, %v2203_v43, %v2187_v26  ;;  %v2218_v18 = vsel %vm956_vm4, %v2187_v26, %v2203_v43  ;;  %v3628_v26 = vld [vmem:[%s5586_s11 + $0x44] sm:$0xf] }
 0x7c4   : > { %2399 = vmatpush.bf16.msrb.mxu1 %v5019_v7  ;;  %2488 = vmatpush.bf16.msrb.mxu0 %v2331_v17  ;;  %v2234_v34 = vmul.f32 %v4141_v4, %v2226_v56 }
 0x7c5   : > { %3476 = vmatmul.msk.bf16.vlgmr.msra.gmra.mxu2 %vm1609_vm9, %v3451_v28 }
 0x7c6   : > { %2609 = vmatpush.bf16.msrb.mxu2 %v4930_v3  ;;  %2458 = vmatpush.bf16.msrb.mxu3 %v4912_v42 }
 0x7c7   : > { %3480 = vmatmul.msk.bf16.vlgmr.msrb.gmra.mxu0 %vm1609_vm9, %v3451_v28 }
 0x7c8   : > { %2667 = vmatpush.bf16.msra.mxu0 %v4937_v46  ;;  %2400 = vmatpush.bf16.msrb.mxu1 %v4914_v39 }
 0x7ca   : > { %2610 = vmatpush.bf16.msrb.mxu2 %v4947_v11  ;;  %v2205_v21 = vpop.permute.xlu1 %2204 }
 0x7cb   : > { %v2219_v20 = vsel %vm956_vm4, %v2189_v2, %v2205_v21  ;;  %v2227_v10 = vsel %vm956_vm4, %v2205_v21, %v2189_v2  ;;  %v3542_v2 = vld [vmem:[%s5586_s11 + $0x40] sm:$0xf]  ;;  %v3629_v21 = vld [vmem:[%s5586_s11 + $0x44] sm:$0xf0] }
 0x7cc   : > { %2668 = vmatpush.bf16.msra.mxu0 %v4966_v14  ;;  %v2236_v63 = vmul.f32 %v4141_v4, %v2227_v10  ;;  %v5047_v22 = vpack.c.bf16 %v2219_v20, %v2218_v18  ;;  %v3459_v4 = vor.u32 %v3622_v49, %v3456_v53  ;;  %v3806_v18 = vld [vmem:[%s3921_s23 + $0x28] sm:$0xff]  ;;  %v3543_v10 = vor.u32 %v3629_v21, %v3542_v2  ;;  %v3807_v53 = vld [vmem:[%s3921_s23 + $0x30] sm:$0xff] }
 0x7cd   : > { %v3075_v20 = vpack.c.bf16 %v3805_v25, %v3806_v18 }
 0x7ce   : > { %2611 = vmatpush.bf16.msrb.mxu2 %v4976_v45  ;;  %2459 = vmatpush.bf16.msrb.mxu3 %v5047_v22  ;;  %v5051_v47 = vpack.c.bf16 %v2236_v63, %v2234_v34  ;;  %v3630_v34 = vld [vmem:[%s5586_s11 + $0x54] sm:$0xf]  ;;  %v3552_v63 = vld [vmem:[%s5586_s11 + $0x58] sm:$0xf0] }
 0x7cf   : > { %v3555_v49 = vor.u32 %v3630_v34, %v3552_v63 }
 0x7d0   : > { %2669 = vmatpush.bf16.msra.mxu0 %v4997_v29  ;;  %2401 = vmatpush.bf16.msrb.mxu1 %v5051_v47 }
 0x7d1   : > { %2460 = vmatmul.bf16.vlgmr.msrb.gmra.mxu3 %v3447_v15 }
 0x7d2   : > { %2612 = vmatpush.bf16.msrb.mxu2 %v2330_v13  ;;  %2634 = vmatpush.bf16.msra.mxu3 %v4800_v24 }
 0x7d3   : > { %2402 = vmatmul.bf16.vlgmr.msrb.gmra.mxu1 %v3447_v15 }
 0x7d4   : > { %2576 = vmatpush.bf16.msra.mxu1 %v4798_v59  ;;  %2670 = vmatpush.bf16.msra.mxu0 %v2331_v17 }
 0x7d5   : > { %3477 = vmatmul.msk.bf16.gmra.mxu2 %vm1609_vm9, %v3459_v4 }
 0x7d6   : > { %2837 = vmatpush.bf16.msra.mxu2 %v4930_v3  ;;  %2635 = vmatpush.bf16.msra.mxu3 %v4810_v12  ;;  %v3454_v3 = vld [vmem:[%s5586_s11 + $0x10] sm:$0xf] }
 0x7d7   : > { %3481 = vmatmul.msk.bf16.gmra.mxu0 %vm1609_vm9, %v3459_v4  ;;  %v3808_v4 = vld [vmem:[%s3921_s23 + $0x20] sm:$0xff] }
 0x7d8   : > { %2895 = vmatpush.bf16.msrb.mxu0 %v4937_v46  ;;  %2577 = vmatpush.bf16.msra.mxu1 %v4808_v48  ;;  %v3623_v46 = vld [vmem:[%s5586_s11 + $0x14] sm:$0xf0] }
 0x7da   : > { %2838 = vmatpush.bf16.msra.mxu2 %v4947_v11  ;;  %2636 = vmatpush.bf16.msra.mxu3 %v4822_v9  ;;  %v3455_v11 = vor.u32 %v3623_v46, %v3454_v3  ;;  %v3074_v3 = vpack.c.bf16 %v3807_v53, %v3808_v4  ;;  %v3644_v4 = vld [vmem:[%s5588_s13] sm:$0xff] }
 0x7dc   : > { %2896 = vmatpush.bf16.msrb.mxu0 %v4966_v14  ;;  %2578 = vmatpush.bf16.msra.mxu1 %v4817_v5  ;;  %v3624_v14 = vld [vmem:[%s5586_s11 + $0x24] sm:$0xf] }
 0x7dd   : > { %v3467_v1 = vor.u32 %v3624_v14, %v3464_v51 }
 0x7de   : > { %2839 = vmatpush.bf16.msra.mxu2 %v4976_v45  ;;  %2637 = vmatpush.bf16.msra.mxu3 %v4832_v54  ;;  %v3626_v45 = vld [vmem:[%s5586_s11 + $0x34] sm:$0xf] }
 0x7df   : > { %v3475_v41 = vor.u32 %v3626_v45, %v3472_v60 }
 0x7e0   : > { %2897 = vmatpush.bf16.msrb.mxu0 %v4997_v29  ;;  %2579 = vmatpush.bf16.msra.mxu1 %v4830_v50 }
 0x7e1   : > { %2465 = vmatmul.bf16.gmra.mxu3 %v3455_v11 }
 0x7e2   : > { %2840 = vmatpush.bf16.msra.mxu2 %v2330_v13  ;;  %2638 = vmatpush.bf16.msra.mxu3 %v4980_v23  ;;  %v3526_v13 = vld [vmem:[%s5586_s11 + $0xb0] sm:$0xf] }
 0x7e3   : > { %2407 = vmatmul.bf16.gmra.mxu1 %v3455_v11 }
 0x7e4   : > { %2898 = vmatpush.bf16.msrb.mxu0 %v2331_v17  ;;  %2580 = vmatpush.bf16.msra.mxu1 %v4995_v32 }
 0x7e5   : > { %3478 = vmatmul.msk.bf16.gmra.mxu2 %vm1609_vm9, %v3467_v1 }
 0x7e6   : > { %2639 = vmatpush.bf16.msra.mxu3 %v5014_v31 }
 0x7e7   : > { %3482 = vmatmul.msk.bf16.gmra.mxu0 %vm1609_vm9, %v3467_v1 }
 0x7e8   : > { %2581 = vmatpush.bf16.msra.mxu1 %v5019_v7 }
 0x7ea   : > { %2640 = vmatpush.bf16.msra.mxu3 %v4912_v42 }
 0x7ec   : > { %2582 = vmatpush.bf16.msra.mxu1 %v4914_v39 }
 0x7ee   : > { %2641 = vmatpush.bf16.msra.mxu3 %v5047_v22 }
 0x7f0   : > { %2583 = vmatpush.bf16.msra.mxu1 %v5051_v47 }
 0x7f1   : > { %2470 = vmatmul.bf16.gmra.mxu3 %v3463_v0 }
 0x7f2   : > { %2862 = vmatpush.bf16.msrb.mxu3 %v4800_v24  ;;  %v3627_v24 = vld [vmem:[%s5586_s11 + $0x34] sm:$0xf0] }
 0x7f3   : > { %2412 = vmatmul.bf16.gmra.mxu1 %v3463_v0  ;;  %v3631_v0 = vld [vmem:[%s5586_s11 + $0x54] sm:$0xf0] }
 0x7f4   : > { %2804 = vmatpush.bf16.msrb.mxu1 %v4798_v59  ;;  %v3470_v59 = vld [vmem:[%s5586_s11 + $0x30] sm:$0xf] }
 0x7f5   : > { %3479 = vmatmul.msk.bf16.gmra.mxu2 %vm1609_vm9, %v3475_v41 }
 0x7f6   : > { %2863 = vmatpush.bf16.msrb.mxu3 %v4810_v12  ;;  %v3636_v12 = vld [vmem:[%s5586_s11 + $0x84] sm:$0xf] }
 0x7f7   : > { %3483 = vmatmul.msk.bf16.gmra.mxu0 %vm1609_vm9, %v3475_v41  ;;  %v3551_v41 = vor.u32 %v3631_v0, %v3550_v27 }
 0x7f8   : > { %2805 = vmatpush.bf16.msrb.mxu1 %v4808_v48  ;;  %v3471_v48 = vor.u32 %v3627_v24, %v3470_v59  ;;  %v3632_v59 = vld [vmem:[%s5586_s11 + $0x64] sm:$0xf]  ;;  %v3560_v24 = vld [vmem:[%s5586_s11 + $0x68] sm:$0xf0] }
 0x7fa   : > { %2864 = vmatpush.bf16.msrb.mxu3 %v4822_v9 }
 0x7fc   : > { %2806 = vmatpush.bf16.msrb.mxu1 %v4817_v5  ;;  %v3504_v5 = vld [vmem:[%s5586_s11 + $0x88] sm:$0xf0] }
 0x7fd   : > { %v3507_v9 = vor.u32 %v3636_v12, %v3504_v5 }
 0x7fe   : > { %2865 = vmatpush.bf16.msrb.mxu3 %v4832_v54  ;;  %v3637_v54 = vld [vmem:[%s5586_s11 + $0x84] sm:$0xf0] }
 0x800   : > { %2807 = vmatpush.bf16.msrb.mxu1 %v4830_v50  ;;  %v3502_v50 = vld [vmem:[%s5586_s11 + $0x80] sm:$0xf] }
 0x801   : > { %2475 = vmatmul.bf16.gmra.mxu3 %v3471_v48 }
 0x802   : > { %2866 = vmatpush.bf16.msrb.mxu3 %v4980_v23  ;;  %v3503_v23 = vor.u32 %v3637_v54, %v3502_v50  ;;  %v3563_v50 = vor.u32 %v3632_v59, %v3560_v24  ;;  %v3809_v54 = vld [vmem:[%s3921_s23 + $0x18] sm:$0xff]  ;;  %v3645_v59 = vld [vmem:[%s5588_s13 + $0x8] sm:$0xff] }
 0x803   : > { %2417 = vmatmul.bf16.gmra.mxu1 %v3471_v48 }
 0x804   : > { %2808 = vmatpush.bf16.msrb.mxu1 %v4995_v32  ;;  %v3520_v32 = vld [vmem:[%s5586_s11 + $0xa8] sm:$0xf0] }
 0x805   : > { %3532 = vmatmul.msk.bf16.vlgmr.msrb.gmra.mxu2 %vm1609_vm9, %v3507_v9  ;;  %v3523_v29 = vor.u32 %v3640_v58, %v3520_v32  ;;  %v3558_v32 = vld [vmem:[%s5586_s11 + $0x60] sm:$0xf] }
 0x806   : > { %2867 = vmatpush.bf16.msrb.mxu3 %v5014_v31  ;;  %v3643_v31 = vld [vmem:[%s5586_s11 + $0xb4] sm:$0xf0]  ;;  %3191 = vmatpush.bf16.msrb.mxu2 %v3075_v20  ;;  %v3566_v20 = vld [vmem:[%s5586_s11 + $0x70] sm:$0xf] }
 0x807   : > { %3536 = vmatmul.msk.bf16.vlgmr.msra.gmra.mxu0 %vm1609_vm9, %v3507_v9  ;;  %v3527_v28 = vor.u32 %v3643_v31, %v3526_v13 }
 0x808   : > { %2809 = vmatpush.bf16.msrb.mxu1 %v5019_v7  ;;  %v3544_v7 = vld [vmem:[%s5586_s11 + $0x48] sm:$0xf0] }
 0x809   : > { %v3547_v17 = vor.u32 %v3628_v26, %v3544_v7  ;;  %v3571_v26 = vor.u32 %v3634_v33, %v3568_v52  ;;  %v3811_v7 = vld [vmem:[%s3921_s23 + $0x10] sm:$0xff] }
 0x80a   : > { %2868 = vmatpush.bf16.msrb.mxu3 %v4912_v42  ;;  %v3638_v42 = vld [vmem:[%s5586_s11 + $0x94] sm:$0xf] }
 0x80c   : > { %2810 = vmatpush.bf16.msrb.mxu1 %v4914_v39  ;;  %v3512_v39 = vld [vmem:[%s5586_s11 + $0x98] sm:$0xf0] }
 0x80d   : > { %v3515_v44 = vor.u32 %v3638_v42, %v3512_v39 }
 0x80e   : > { %2869 = vmatpush.bf16.msrb.mxu3 %v5047_v22 }
 0x810   : > { %2811 = vmatpush.bf16.msrb.mxu1 %v5051_v47 }
 0x811   : > { %2642 = vmatmul.bf16.vlgmr.msra.gmra.mxu3 %v3503_v23 }
 0x813   : > { %2584 = vmatmul.bf16.vlgmr.msra.gmra.mxu1 %v3503_v23  ;;  %v3810_v23 = vld [vmem:[%s3921_s23 + $0x8] sm:$0xff] }
 0x814   : > { %3162 = vmatpush.bf16.msra.mxu1 %v3074_v3  ;;  %v3073_v42 = vpack.c.bf16 %v3809_v54, %v3810_v23 }
 0x815   : > { %3533 = vmatmul.msk.bf16.gmra.mxu2 %vm1609_vm9, %v3515_v44 }
 0x816   : > { %3192 = vmatpush.bf16.msrb.mxu2 %v3073_v42 }
 0x817   : > { %3537 = vmatmul.msk.bf16.gmra.mxu0 %vm1609_vm9, %v3515_v44 }
 0x821   : > { %2647 = vmatmul.bf16.gmra.mxu3 %v3511_v19 }
 0x823   : > { %2589 = vmatmul.bf16.gmra.mxu1 %v3511_v19 }
 0x825   : > { %3534 = vmatmul.msk.bf16.gmra.mxu2 %vm1609_vm9, %v3523_v29 }
 0x827   : > { %3538 = vmatmul.msk.bf16.gmra.mxu0 %vm1609_vm9, %v3523_v29  ;;  %v3633_v29 = vld [vmem:[%s5586_s11 + $0x64] sm:$0xf0] }
 0x831   : > { %2652 = vmatmul.bf16.gmra.mxu3 %v3519_v57 }
 0x833   : > { %2594 = vmatmul.bf16.gmra.mxu1 %v3519_v57  ;;  %v3559_v57 = vor.u32 %v3633_v29, %v3558_v32 }
 0x835   : > { %3535 = vmatmul.msk.bf16.gmra.mxu2 %vm1609_vm9, %v3531_v55 }
 0x837   : > { %3539 = vmatmul.msk.bf16.gmra.mxu0 %vm1609_vm9, %v3531_v55 }
 0x841   : > { %2657 = vmatmul.bf16.gmra.mxu3 %v3527_v28 }
 0x843   : > { %2599 = vmatmul.bf16.gmra.mxu1 %v3527_v28 }
 0x844   : > { %v2490_v43 = vpop.f32.mrf.mxu0 }
 0x845   : > { %3572 = vmatmul.msk.bf16.vlgmr.msra.gmra.mxu2 %vm1609_vm9, %v3547_v17 }
 0x847   : > { %3576 = vmatmul.msk.bf16.vlgmr.msrb.gmra.mxu0 %vm1609_vm9, %v3547_v17  ;;  %v3812_v17 = vld [vmem:[%s3921_s23] sm:$0xff] }
 0x848   : > { %v2432_v56 = vpop.f32.mrf.mxu2 }
 0x84c   : > { %v2492_v40 = vpop.f32.mrf.mxu0 }
 0x850   : > { %v2403_v22 = vpop.f32.mrf.mxu1  ;;  %v2434_v15 = vpop.f32.mrf.mxu2 }
 0x851   : > { %v2433_v47 = vadd.f32 %v2432_v56, %v2403_v22  ;;  %2870 = vmatmul.bf16.vlgmr.msrb.gmra.mxu3 %v3543_v10 }
 0x853   : > { %2812 = vmatmul.bf16.vlgmr.msrb.gmra.mxu1 %v3543_v10  ;;  %2692 = vrot.lane.b32.xlu0 %v2433_v47, %s5598_s17  ;;  %v3635_v10 = vld [vmem:[%s5586_s11 + $0x74] sm:$0xf0] }
 0x854   : > { %v2461_v46 = vpop.f32.mrf.mxu3  ;;  %v2495_v14 = vpop.f32.mrf.mxu0  ;;  %v3567_v22 = vor.u32 %v3635_v10, %v3566_v20 }
 0x855   : > { %v2491_v11 = vadd.f32 %v2490_v43, %v2461_v46  ;;  %3573 = vmatmul.msk.bf16.gmra.mxu2 %vm1609_vm9, %v3555_v49  ;;  %v3072_v43 = vpack.c.bf16 %v3811_v7, %v3812_v17  ;;  %v5299_v7 = vpop.permute.xlu0 %3015 }
 0x857   : > { %2708 = vrot.lane.b32.xlu1 %v2491_v11, %s5598_s17  ;;  %3577 = vmatmul.msk.bf16.gmra.mxu0 %vm1609_vm9, %v3555_v49 }
 0x858   : > { %v2405_v51 = vpop.f32.mrf.mxu1  ;;  %v2437_v1 = vpop.f32.mrf.mxu2  ;;  %3163 = vmatpush.bf16.msra.mxu1 %v3072_v43 }
 0x859   : > { %v2435_v8 = vadd.f32 %v2434_v15, %v2405_v51 }
 0x85b   : > { %2694 = vrot.lane.b32.xlu2 %v2435_v8, %s5598_s17 }
 0x85c   : > { %v2463_v45 = vpop.f32.mrf.mxu3  ;;  %v2497_v48 = vpop.f32.mrf.mxu0 }
 0x85d   : > { %v2493_v60 = vadd.f32 %v2492_v40, %v2463_v45  ;;  %v5310_v20 = vpop.permute.xlu0 %3030 }
 0x85f   : > { %2710 = vrot.lane.b32.xlu0 %v2493_v60, %s5598_s17 }
 0x860   : > { %v2408_v12 = vpop.f32.mrf.mxu1  ;;  %v2439_v5 = vpop.f32.mrf.mxu2 }
 0x861   : > { %v2438_v9 = vadd.f32 %v2437_v1, %v2408_v12  ;;  %2875 = vmatmul.bf16.gmra.mxu3 %v3551_v41 }
 0x863   : > { %2817 = vmatmul.bf16.gmra.mxu1 %v3551_v41  ;;  %2696 = vrot.lane.b32.xlu1 %v2438_v9, %s5598_s17 }
 0x864   : > { %v2466_v39 = vpop.f32.mrf.mxu3  ;;  %v2500_v16 = vpop.f32.mrf.mxu0 }
 0x865   : > { %v2496_v44 = vadd.f32 %v2495_v14, %v2466_v39  ;;  %3574 = vmatmul.msk.bf16.gmra.mxu2 %vm1609_vm9, %v3563_v50 }
 0x867   : > { %2712 = vrot.lane.b32.xlu2 %v2496_v44, %s5598_s17  ;;  %3578 = vmatmul.msk.bf16.gmra.mxu0 %vm1609_vm9, %v3563_v50 }
 0x868   : > { %v2410_v61 = vpop.f32.mrf.mxu1  ;;  %v2442_v19 = vpop.f32.mrf.mxu2 }
 0x869   : > { %v2440_v58 = vadd.f32 %v2439_v5, %v2410_v61 }
 0x86b   : > { %2698 = vrot.lane.b32.xlu0 %v2440_v58, %s5598_s17 }
 0x86c   : > { %v2468_v6 = vpop.f32.mrf.mxu3  ;;  %v2502_v55 = vpop.f32.mrf.mxu0 }
 0x86d   : > { %v2498_v62 = vadd.f32 %v2497_v48, %v2468_v6  ;;  %v5290_v6 = vpop.permute.xlu1 %3010 }
 0x86f   : > { %2714 = vrot.lane.b32.xlu1 %v2498_v62, %s5598_s17 }
 0x870   : > { %v2413_v13 = vpop.f32.mrf.mxu1  ;;  %v2444_v31 = vpop.f32.mrf.mxu2 }
 0x871   : > { %v2443_v28 = vadd.f32 %v2442_v19, %v2413_v13  ;;  %2880 = vmatmul.bf16.gmra.mxu3 %v3559_v57 }
 0x873   : > { %2822 = vmatmul.bf16.gmra.mxu1 %v3559_v57  ;;  %2700 = vrot.lane.b32.xlu2 %v2443_v28, %s5598_s17  ;;  %v3647_v28 = vld [vmem:[%s5588_s13 + $0x18] sm:$0xff] }
 0x874   : > { %v2471_v56 = vpop.f32.mrf.mxu3  ;;  %v2505_v21 = vpop.f32.mrf.mxu0 }
 0x875   : > { %3575 = vmatmul.msk.bf16.gmra.mxu2 %vm1609_vm9, %v3571_v26  ;;  %v2501_v2 = vadd.f32 %v2500_v16, %v2471_v56  ;;  %v3646_v16 = vld [vmem:[%s5588_s13 + $0x10] sm:$0xff]  ;;  %v5301_v17 = vpop.permute.xlu1 %3025 }
 0x877   : > { %2716 = vrot.lane.b32.xlu0 %v2501_v2, %s5598_s17  ;;  %3579 = vmatmul.msk.bf16.gmra.mxu0 %vm1609_vm9, %v3571_v26  ;;  %v5297_v26 = vpop.permute.xlu2 %3020 }
 0x878   : > { %v2415_v40 = vpop.f32.mrf.mxu1  ;;  %v2447_v25 = vpop.f32.mrf.mxu2 }
 0x879   : > { %v2445_v18 = vadd.f32 %v2444_v31, %v2415_v40 }
 0x87b   : > { %2702 = vrot.lane.b32.xlu1 %v2445_v18, %s5598_s17 }
 0x87c   : > { %v2473_v34 = vpop.f32.mrf.mxu3  ;;  %v2507_v15 = vpop.f32.mrf.mxu0 }
 0x87d   : > { %v2503_v63 = vadd.f32 %v2502_v55, %v2473_v34  ;;  %v5312_v10 = vpop.permute.xlu1 %3040 }
 0x87e   : > { %5601 = vst [vmem:[#allocation3_spill] sm:$0xff] %v5312_v10 }
 0x87f   : > { %2718 = vrot.lane.b32.xlu2 %v2503_v63, %s5598_s17  ;;  %v5308_v18 = vpop.permute.xlu2 %3035 }
 0x880   : > { %v2418_v47 = vpop.f32.mrf.mxu1  ;;  %v2449_v49 = vpop.f32.mrf.mxu2  ;;  %5600 = vst [vmem:[#allocation2_spill] sm:$0xff] %v5308_v18 }
 0x881   : > { %v2448_v53 = vadd.f32 %v2447_v25, %v2418_v47  ;;  %2885 = vmatmul.bf16.gmra.mxu3 %v3567_v22 }
 0x883   : > { %2827 = vmatmul.bf16.gmra.mxu1 %v3567_v22  ;;  %2704 = vrot.lane.b32.xlu0 %v2448_v53, %s5598_s17 }
 0x884   : > { %v2476_v3 = vpop.f32.mrf.mxu3  ;;  %v2672_v11 = vpop.f32.mrf.mxu0 }
 0x885   : > { %3600 = vmatmul.msk.bf16.vlgmr.msrb.gmra.mxu2 %vm599_vm0, %v3644_v4  ;;  %v2506_v46 = vadd.f32 %v2505_v21, %v2476_v3 }
 0x887   : > { %2720 = vrot.lane.b32.xlu1 %v2506_v46, %s5598_s17  ;;  %v5319_v46 = vpop.permute.xlu0 %3045  ;;  %v5606_v30 = vld [vmem:[#allocation2_spill] sm:$0xff] }
 0x888   : > { %v2420_v14 = vpop.f32.mrf.mxu1  ;;  %v2614_v51 = vpop.f32.mrf.mxu2  ;;  %5602 = vst [vmem:[#allocation4_spill] sm:$0xff] %v5319_v46 }
 0x889   : > { %v2450_v1 = vadd.f32 %v2449_v49, %v2420_v14 }
 0x88b   : > { %2706 = vrot.lane.b32.xlu2 %v2450_v1, %s5598_s17 }
 0x88c   : > { %v2478_v8 = vpop.f32.mrf.mxu3  ;;  %v2674_v0 = vpop.f32.mrf.mxu0 }
 0x88d   : > { %v2508_v27 = vadd.f32 %v2507_v15, %v2478_v8 }
 0x88f   : > { %2722 = vrot.lane.b32.xlu0 %v2508_v27, %s5598_s17 }
 0x890   : > { %v2585_v45 = vpop.f32.mrf.mxu1  ;;  %v2616_v60 = vpop.f32.mrf.mxu2 }
 0x891   : > { %v2615_v41 = vadd.f32 %v2614_v51, %v2585_v45 }
 0x893   : > { %3596 = vmatmul.msk.bf16.vlgmr.msra.gmra.mxu1 %vm599_vm0, %v3644_v4  ;;  %2920 = vrot.lane.b32.xlu2 %v2615_v41, %s5599_s25  ;;  %v5317_v4 = vpop.permute.xlu2 %3086 }
 0x894   : > { %v2643_v24 = vpop.f32.mrf.mxu3  ;;  %v2677_v50 = vpop.f32.mrf.mxu0 }
 0x895   : > { %3601 = vmatmul.msk.bf16.gmra.mxu2 %vm599_vm0, %v3645_v59  ;;  %v2673_v48 = vadd.f32 %v2672_v11, %v2643_v24  ;;  %v5321_v11 = vpop.permute.xlu1 %3091 }
 0x897   : > { %2936 = vrot.lane.b32.xlu0 %v2673_v48, %s5599_s25 }
 0x898   : > { %v2587_v12 = vpop.f32.mrf.mxu1  ;;  %v2619_v5 = vpop.f32.mrf.mxu2 }
 0x899   : > { %v2617_v9 = vadd.f32 %v2616_v60, %v2587_v12  ;;  %v5340_v12 = vpop.permute.xlu0 %3096 }
 0x89b   : > { %2922 = vrot.lane.b32.xlu1 %v2617_v9, %s5599_s25  ;;  %v5336_v24 = vpop.permute.xlu2 %3101 }
 0x89c   : > { %v2645_v54 = vpop.f32.mrf.mxu3  ;;  %v2679_v61 = vpop.f32.mrf.mxu0 }
 0x89d   : > { %v2675_v23 = vadd.f32 %v2674_v0, %v2645_v54  ;;  %v3081_v0 = vld [vmem:[%s5589_s14 + $0x28] sm:$0xff]  ;;  %v5338_v48 = vpop.permute.xlu1 %3106 }
 0x89f   : > { %2938 = vrot.lane.b32.xlu2 %v2675_v23, %s5599_s25 }
 0x8a0   : > { %v2590_v42 = vpop.f32.mrf.mxu1  ;;  %v2621_v39 = vpop.f32.mrf.mxu2 }
 0x8a1   : > { %v2620_v44 = vadd.f32 %v2619_v5, %v2590_v42  ;;  %v3082_v5 = vld [vmem:[%s5589_s14 + $0x30] sm:$0xff] }
 0x8a3   : > { %3597 = vmatmul.msk.bf16.gmra.mxu1 %vm599_vm0, %v3645_v59  ;;  %2924 = vrot.lane.b32.xlu0 %v2620_v44, %s5599_s25  ;;  %v3083_v59 = vld [vmem:[%s5589_s14 + $0x38] sm:$0xff] }
 0x8a4   : > { %v2648_v19 = vpop.f32.mrf.mxu3  ;;  %v2682_v33 = vpop.f32.mrf.mxu0 }
 0x8a5   : > { %3602 = vmatmul.msk.bf16.gmra.mxu2 %vm599_vm0, %v3646_v16  ;;  %v2678_v58 = vadd.f32 %v2677_v50, %v2648_v19 }
 0x8a7   : > { %2940 = vrot.lane.b32.xlu1 %v2678_v58, %s5599_s25 }
 0x8a8   : > { %v2592_v32 = vpop.f32.mrf.mxu1  ;;  %v2624_v29 = vpop.f32.mrf.mxu2 }
 0x8a9   : > { %v2622_v62 = vadd.f32 %v2621_v39, %v2592_v32 }
 0x8ab   : > { %2926 = vrot.lane.b32.xlu2 %v2622_v62, %s5599_s25 }
 0x8ac   : > { %v2650_v57 = vpop.f32.mrf.mxu3  ;;  %v2684_v2 = vpop.f32.mrf.mxu0 }
 0x8ad   : > { %v2680_v52 = vadd.f32 %v2679_v61, %v2650_v57 }
 0x8af   : > { %2942 = vrot.lane.b32.xlu0 %v2680_v52, %s5599_s25 }
 0x8b0   : > { %v2595_v55 = vpop.f32.mrf.mxu1  ;;  %v2626_v13 = vpop.f32.mrf.mxu2 }
 0x8b1   : > { %v2625_v31 = vadd.f32 %v2624_v29, %v2595_v55 }
 0x8b3   : > { %3598 = vmatmul.msk.bf16.gmra.mxu1 %vm599_vm0, %v3646_v16  ;;  %2928 = vrot.lane.b32.xlu1 %v2625_v31, %s5599_s25 }
 0x8b4   : > { %v2653_v43 = vpop.f32.mrf.mxu3  ;;  %v2687_v49 = vpop.f32.mrf.mxu0 }
 0x8b5   : > { %3603 = vmatmul.msk.bf16.gmra.mxu2 %vm599_vm0, %v3647_v28  ;;  %v2683_v56 = vadd.f32 %v2682_v33, %v2653_v43  ;;  %v2695_v54 = vpop.permute.xlu2 %2694 }
 0x8b7   : > { %2944 = vrot.lane.b32.xlu2 %v2683_v56, %s5599_s25 }
 0x8b8   : > { %v2597_v21 = vpop.f32.mrf.mxu1  ;;  %v2629_v40 = vpop.f32.mrf.mxu2 }
 0x8b9   : > { %v2627_v25 = vadd.f32 %v2626_v13, %v2597_v21 }
 0x8bb   : > { %2930 = vrot.lane.b32.xlu0 %v2627_v25, %s5599_s25 }
 0x8bc   : > { %v2655_v34 = vpop.f32.mrf.mxu3  ;;  %v2689_v8 = vpop.f32.mrf.mxu0 }
 0x8bd   : > { %v2685_v63 = vadd.f32 %v2684_v2, %v2655_v34 }
 0x8bf   : > { %2946 = vrot.lane.b32.xlu1 %v2685_v63, %s5599_s25 }
 0x8c0   : > { %v2600_v22 = vpop.f32.mrf.mxu1  ;;  %v2631_v15 = vpop.f32.mrf.mxu2 }
 0x8c1   : > { %v2630_v47 = vadd.f32 %v2629_v40, %v2600_v22  ;;  %v5353_v16 = vpop.permute.xlu2 %2712 }
 0x8c3   : > { %3599 = vmatmul.msk.bf16.gmra.mxu1 %vm599_vm0, %v3647_v28  ;;  %2932 = vrot.lane.b32.xlu2 %v2630_v47, %s5599_s25 }
 0x8c4   : > { %v2658_v53 = vpop.f32.mrf.mxu3  ;;  %v2900_v56 = vpop.f32.mrf.mxu0 }
 0x8c5   : > { %v2688_v3 = vadd.f32 %v2687_v49, %v2658_v53  ;;  %v2693_v42 = vpop.permute.xlu0 %2692 }
 0x8c7   : > { %2948 = vrot.lane.b32.xlu0 %v2688_v3, %s5599_s25 }
 0x8c8   : > { %v2602_v14 = vpop.f32.mrf.mxu1  ;;  %v5324_v51 = vpop.f32.mrf.mxu2 }
 0x8c9   : > { %v2632_v1 = vadd.f32 %v2631_v15, %v2602_v14  ;;  %v2709_v23 = vpop.permute.xlu1 %2708 }
 0x8ca   : > { %v2732_v3 = vsel %vm1257_vm7, %v2709_v23, %v2693_v42 }
 0x8cb   : > { %2934 = vrot.lane.b32.xlu1 %v2632_v1, %s5599_s25  ;;  %v2724_v1 = vsel %vm1257_vm7, %v2693_v42, %v2709_v23 }
 0x8cc   : > { %v2660_v27 = vpop.f32.mrf.mxu3  ;;  %v2902_v53 = vpop.f32.mrf.mxu0 }
 0x8cd   : > { %v2690_v45 = vadd.f32 %v2689_v8, %v2660_v27  ;;  %v5365_v57 = vpop.permute.xlu2 %2700  ;;  %v2740_v27 = vmul.f32 %v4095_v35, %v2732_v3 }
 0x8cf   : > { %2950 = vrot.lane.b32.xlu2 %v2690_v45, %s5599_s25  ;;  %3111 = vperm.xlu0 %3684, %v3081_v0   ;;  %s5432_s25 = scalar_lea.vmem %s5590_s15, %s3607_s29 }
 0x8d0   : > { %v2813_v60 = vpop.f32.mrf.mxu1  ;;  %v5331_v41 = vpop.f32.mrf.mxu2 }
 0x8d1   : > { %v2711_v19 = vpop.permute.xlu0 %2710 }
 0x8d2   : > { %v2733_v3 = vsel %vm1257_vm7, %v2711_v19, %v2695_v54 }
 0x8d3   : > { %3121 = vperm.xlu1 %3683, %v3083_v59   ;;  %v2741_v59 = vmul.f32 %v4099_v37, %v2724_v1 }
 0x8d4   : > { %v2871_v31 = vpop.f32.mrf.mxu3  ;;  %v2905_v10 = vpop.f32.mrf.mxu0 }
 0x8d5   : > { %v5355_v61 = vpop.permute.xlu1 %2696  ;;  %v2872_v23 = vadd.f32 %v2871_v31, %v2741_v59 }
 0x8d7   : > { %3116 = vperm.xlu2 %3682, %v3082_v5   ;;  %v2725_v5 = vsel %vm1257_vm7, %v2695_v54, %v2711_v19  ;;  %v2742_v19 = vmul.f32 %v4095_v35, %v2733_v3 }
 0x8d8   : > { %v5345_v9 = vpop.f32.mrf.mxu1  ;;  %v5347_v50 = vpop.f32.mrf.mxu2  ;;  %v2743_v46 = vmul.f32 %v4099_v37, %v2725_v5 }
 0x8d9   : > { %v5373_v28 = vpop.permute.xlu2 %2718 }
 0x8dc   : > { %v2873_v15 = vpop.f32.mrf.mxu3 }
 0x8dd   : > { %v5363_v62 = vpop.permute.xlu0 %2698 }
 0x8e0   : > { %v5349_v39 = vpop.f32.mrf.mxu1  ;;  %v5351_v44 = vpop.f32.mrf.mxu2 }
 0x8e1   : > { %v5361_v29 = vpop.permute.xlu1 %2714 }
 0x8e5   : > { %v5384_v63 = vpop.permute.xlu2 %2706 }
 0x8e8   : > { %v5357_v58 = vpop.f32.mrf.mxu1  ;;  %v5359_v32 = vpop.f32.mrf.mxu2 }
 0x8e9   : > { %v5371_v13 = vpop.permute.xlu0 %2716 }
 0x8ed   : > { %v5369_v55 = vpop.permute.xlu1 %2702  ;;  %v2921_v0 = vpop.permute.xlu2 %2920 }
 0x8ee   : > { %v2737_v43 = vsel %vm1257_vm7, %v5373_v28, %v5369_v55 }
 0x8ef   : > { %v2750_v2 = vmul.f32 %v4095_v35, %v2737_v43  ;;  %v2876_v43 = vpop.f32.mrf.mxu3 }
 0x8f0   : > { %v5367_v33 = vpop.f32.mrf.mxu1  ;;  %v2854_v52 = vpop.f32.mrf.mxu2 }
 0x8f5   : > { %v5382_v34 = vpop.permute.xlu0 %2704 }
 0x8f8   : > { %v2825_v21 = vpop.f32.mrf.mxu1  ;;  %v5380_v40 = vpop.f32.mrf.mxu2 }
 0x8f9   : > { %v2826_v25 = vadd.f32 %v2825_v21, %v2750_v2  ;;  %v5401_v45 = vpop.permute.xlu1 %2720  ;;  %v2939_v5 = vpop.permute.xlu2 %2938 }
 0x8fb   : > { %v5386_v22 = vadd.f32 %v2854_v52, %v2826_v25  ;;  %v2814_v52 = vadd.f32 %v2813_v60, %v2740_v27  ;;  %v2901_v27 = vadd.f32 %v2900_v56, %v2872_v23 }
 0x8fd   : > { %5603 = vst [vmem:[#allocation5_spill] sm:$0xff] %v5386_v22  ;;  %v2843_v22 = vadd.f32 %v5324_v51, %v2814_v52  ;;  %v2816_v52 = vadd.f32 %v5345_v9, %v2742_v19  ;;  %v2878_v9 = vpop.f32.mrf.mxu3 }
 0x900   : > { %v5388_v47 = vpop.f32.mrf.mxu1  ;;  %v2859_v49 = vpop.f32.mrf.mxu2 }
 0x901   : > { %v5392_v14 = vpop.permute.xlu0 %2722 }
 0x902   : > { %v2739_v8 = vsel %vm1257_vm7, %v5392_v14, %v5384_v63 }
 0x903   : > { %v2754_v2 = vmul.f32 %v4095_v35, %v2739_v8  ;;  %v2874_v8 = vadd.f32 %v2873_v15, %v2743_v46 }
 0x905   : > { %v2903_v46 = vadd.f32 %v2902_v53, %v2874_v8  ;;  %v2726_v8 = vsel %vm1257_vm7, %v5355_v61, %v5353_v16 }
 0x908   : > { %v2830_v42 = vpop.f32.mrf.mxu1  ;;  %v3194_v21 = vpop.f32.mrf.mxu2 }
 0x909   : > { %v2831_v25 = vadd.f32 %v2830_v42, %v2754_v2  ;;  %v2937_v18 = vpop.permute.xlu0 %2936  ;;  %v3195_v56 = vadd.f32 %v3194_v21, %v5317_v4 }
 0x90a   : > { %v2952_v60 = vsel %vm1412_vm8, %v2921_v0, %v2937_v18  ;;  %v2960_v31 = vsel %vm1412_vm8, %v2937_v18, %v2921_v0 }
 0x90b   : > { %v5410_v1 = vadd.f32 %v2859_v49, %v2831_v25  ;;  %v2968_v59 = vmul.f32 %v4097_v36, %v2952_v60  ;;  %v2969_v54 = vmul.f32 %v4101_v38, %v2960_v31  ;;  %v2845_v31 = vadd.f32 %v5331_v41, %v2816_v52 }
 0x90d   : > { %v2923_v2 = vpop.permute.xlu1 %2922  ;;  %v2984_v49 = vadd.f32 %v2968_v59, %v2843_v22  ;;  %v2985_v42 = vadd.f32 %v2969_v54, %v2901_v27  ;;  %v2734_v27 = vsel %vm1257_vm7, %v5353_v16, %v5355_v61  ;;  %v2907_v54 = vpop.f32.mrf.mxu0 }
 0x90e   : > { %v2953_v51 = vsel %vm1412_vm8, %v2923_v2, %v2939_v5  ;;  %v2961_v18 = vsel %vm1412_vm8, %v2939_v5, %v2923_v2  ;;  %v2744_v41 = vmul.f32 %v4095_v35, %v2734_v27  ;;  %v2745_v5 = vmul.f32 %v4099_v37, %v2726_v8 }
 0x90f   : > { %v3049_v15 = vadd.f32 %v5290_v6, %v2985_v42  ;;  %v2971_v0 = vmul.f32 %v4101_v38, %v2961_v18  ;;  %v2970_v22 = vmul.f32 %v4097_v36, %v2953_v51  ;;  %v3048_v53 = vadd.f32 %v5290_v6, %v2984_v49 }
 0x910   : > { %v3165_v23 = vpop.f32.mrf.mxu1  ;;  %v3196_v25 = vpop.f32.mrf.mxu2  ;;  %v2819_v49 = vadd.f32 %v5349_v39, %v2744_v41  ;;  %v2877_v42 = vadd.f32 %v2876_v43, %v2745_v5  ;;  %v2735_v18 = vsel %vm1257_vm7, %v5361_v29, %v5363_v62  ;;  %v2727_v39 = vsel %vm1257_vm7, %v5363_v62, %v5361_v29 }
 0x911   : > { %v3166_v21 = vadd.f32 %v3165_v23, %v5317_v4  ;;  %v3215_v3 = vadd.f32 %v3195_v56, %v3049_v15  ;;  %v2987_v60 = vadd.f32 %v2971_v0, %v2903_v46  ;;  %v3197_v4 = vadd.f32 %v3196_v25, %v5321_v11  ;;  %v2881_v43 = vpop.f32.mrf.mxu3  ;;  %v2927_v15 = vpop.permute.xlu2 %2926 }
 0x912   : > { %v2986_v19 = vadd.f32 %v2970_v22, %v2845_v31  ;;  %v2848_v23 = vadd.f32 %v5347_v50, %v2819_v49  ;;  %v2906_v25 = vadd.f32 %v2905_v10, %v2877_v42  ;;  %v2728_v29 = vsel %vm1257_vm7, %v5365_v57, %v5371_v13 }
 0x913   : > { %v3214_v59 = vadd.f32 %v3166_v21, %v3048_v53  ;;  %3231 = vst [vmem:[%s5432_s25 + $0x8] sm:$0xff] %v3215_v3  ;;  %v3051_v6 = vadd.f32 %v5299_v7, %v2987_v60  ;;  %v2746_v21 = vmul.f32 %v4095_v35, %v2735_v18  ;;  %v2747_v62 = vmul.f32 %v4099_v37, %v2727_v39 }
 0x914   : > { %v3050_v61 = vadd.f32 %v5299_v7, %v2986_v19 }
 0x915   : > { %3230 = vst [vmem:[%s5432_s25] sm:$0xff] %v3214_v59  ;;  %v3217_v2 = vadd.f32 %v3197_v4, %v3051_v6  ;;  %v2925_v56 = vpop.permute.xlu0 %2924  ;;  %v2910_v31 = vpop.f32.mrf.mxu0  ;;  %v2821_v50 = vadd.f32 %v5357_v58, %v2746_v21  ;;  %v2879_v10 = vadd.f32 %v2878_v9, %v2747_v62  ;;  %v2749_v4 = vmul.f32 %v4099_v37, %v2728_v29 }
 0x916   : > { %v2736_v58 = vsel %vm1257_vm7, %v5371_v13, %v5365_v57 }
 0x917   : > { %3233 = vst [vmem:[%s5432_s25 + $0x18] sm:$0xff] %v3217_v2  ;;  %v2882_v2 = vadd.f32 %v2881_v43, %v2749_v4  ;;  %v2748_v57 = vmul.f32 %v4095_v35, %v2736_v58 }
 0x918   : > { %v3167_v51 = vpop.f32.mrf.mxu1  ;;  %v3199_v16 = vpop.f32.mrf.mxu2 }
 0x919   : > { %v3168_v52 = vadd.f32 %v3167_v51, %v5321_v11  ;;  %v2941_v46 = vpop.permute.xlu1 %2940  ;;  %v3200_v8 = vadd.f32 %v3199_v16, %v5340_v12  ;;  %v2945_v49 = vpop.permute.xlu2 %2944 }
 0x91a   : > { %v2954_v7 = vsel %vm1412_vm8, %v2925_v56, %v2941_v46  ;;  %v2962_v11 = vsel %vm1412_vm8, %v2941_v46, %v2925_v56  ;;  %v2883_v13 = vpop.f32.mrf.mxu3 }
 0x91b   : > { %v3216_v0 = vadd.f32 %v3168_v52, %v3050_v61  ;;  %v2972_v22 = vmul.f32 %v4097_v36, %v2954_v7  ;;  %v2973_v53 = vmul.f32 %v4101_v38, %v2962_v11 }
 0x91d   : > { %3232 = vst [vmem:[%s5432_s25 + $0x10] sm:$0xff] %v3216_v0  ;;  %v2988_v3 = vadd.f32 %v2972_v22, %v2848_v23  ;;  %v2989_v60 = vadd.f32 %v2973_v53, %v2906_v25  ;;  %v2912_v25 = vpop.f32.mrf.mxu0 }
 0x91f   : > { %v3053_v27 = vadd.f32 %v5297_v26, %v2989_v60  ;;  %v3052_v19 = vadd.f32 %v5297_v26, %v2988_v3  ;;  %v2850_v26 = vadd.f32 %v5351_v44, %v2821_v50  ;;  %v2824_v44 = vadd.f32 %v5367_v33, %v2748_v57 }
 0x920   : > { %v3170_v59 = vpop.f32.mrf.mxu1  ;;  %v3201_v6 = vpop.f32.mrf.mxu2 }
 0x921   : > { %v3171_v41 = vadd.f32 %v3170_v59, %v5340_v12  ;;  %v3219_v9 = vadd.f32 %v3200_v8, %v3053_v27  ;;  %v2943_v5 = vpop.permute.xlu0 %2942  ;;  %v2908_v12 = vadd.f32 %v2907_v54, %v2879_v10  ;;  %v2911_v54 = vadd.f32 %v2910_v31, %v2882_v2  ;;  %v2933_v50 = vpop.permute.xlu2 %2932 }
 0x922   : > { %v2955_v51 = vsel %vm1412_vm8, %v2927_v15, %v2943_v5  ;;  %v2963_v16 = vsel %vm1412_vm8, %v2943_v5, %v2927_v15  ;;  %v3202_v0 = vadd.f32 %v3201_v6, %v5336_v24  ;;  %v2853_v62 = vadd.f32 %v5359_v32, %v2824_v44  ;;  %v2886_v27 = vpop.f32.mrf.mxu3 }
 0x923   : > { %v3218_v42 = vadd.f32 %v3171_v41, %v3052_v19  ;;  %3235 = vst [vmem:[%s5432_s25 + $0x28] sm:$0xff] %v3219_v9  ;;  %v2974_v61 = vmul.f32 %v4097_v36, %v2955_v51  ;;  %v2975_v52 = vmul.f32 %v4101_v38, %v2963_v16  ;;  %v2738_v32 = vsel %vm1257_vm7, %v5401_v45, %v5382_v34 }
 0x924   : > { %v2730_v19 = vsel %vm1257_vm7, %v5382_v34, %v5401_v45  ;;  %v2731_v34 = vsel %vm1257_vm7, %v5384_v63, %v5392_v14 }
 0x925   : > { %3234 = vst [vmem:[%s5432_s25 + $0x20] sm:$0xff] %v3218_v42  ;;  %v2929_v18 = vpop.permute.xlu1 %2928  ;;  %v2990_v46 = vadd.f32 %v2974_v61, %v2850_v26  ;;  %v2991_v56 = vadd.f32 %v2975_v52, %v2908_v12  ;;  %v2915_v41 = vpop.f32.mrf.mxu0  ;;  %v2753_v2 = vmul.f32 %v4099_v37, %v2730_v19  ;;  %v2755_v12 = vmul.f32 %v4099_v37, %v2731_v34 }
 0x926   : > { %v2956_v39 = vsel %vm1412_vm8, %v2929_v18, %v2945_v49  ;;  %v2964_v43 = vsel %vm1412_vm8, %v2945_v49, %v2929_v18 }
 0x927   : > { %v2977_v15 = vmul.f32 %v4101_v38, %v2964_v43  ;;  %v3055_v7 = vadd.f32 %v5301_v17, %v2991_v56  ;;  %v2976_v22 = vmul.f32 %v4097_v36, %v2956_v39  ;;  %v3054_v21 = vadd.f32 %v5301_v17, %v2990_v46  ;;  %v5604_v43 = vld [vmem:[#allocation5_spill] sm:$0xff] }
 0x928   : > { %v3172_v11 = vpop.f32.mrf.mxu1  ;;  %v3204_v23 = vpop.f32.mrf.mxu2  ;;  %v2887_v51 = vadd.f32 %v2886_v27, %v2753_v2 }
 0x929   : > { %v2993_v53 = vadd.f32 %v2977_v15, %v2911_v54  ;;  %v3173_v33 = vadd.f32 %v3172_v11, %v5336_v24  ;;  %v3221_v29 = vadd.f32 %v3202_v0, %v3055_v7  ;;  %v3205_v31 = vadd.f32 %v3204_v23, %v5338_v48  ;;  %v2951_v5 = vpop.permute.xlu2 %2950 }
 0x92a   : > { %v2992_v10 = vadd.f32 %v2976_v22, %v2853_v62  ;;  %v2888_v16 = vpop.f32.mrf.mxu3  ;;  %v2916_v14 = vadd.f32 %v2915_v41, %v2887_v51  ;;  %v5607_v41 = vld [vmem:[#allocation4_spill] sm:$0xff] }
 0x92b   : > { %v3220_v3 = vadd.f32 %v3173_v33, %v3054_v21  ;;  %v3057_v60 = vadd.f32 %v5310_v20, %v2993_v53  ;;  %3237 = vst [vmem:[%s5432_s25 + $0x38] sm:$0xff] %v3221_v29  ;;  %v2889_v46 = vadd.f32 %v2888_v16, %v2755_v12 }
 0x92c   : > { %v3056_v17 = vadd.f32 %v5310_v20, %v2992_v10  ;;  %v2729_v20 = vsel %vm1257_vm7, %v5369_v55, %v5373_v28 }
 0x92d   : > { %3236 = vst [vmem:[%s5432_s25 + $0x30] sm:$0xff] %v3220_v3  ;;  %v3223_v8 = vadd.f32 %v3205_v31, %v3057_v60  ;;  %v2931_v4 = vpop.permute.xlu0 %2930  ;;  %v2751_v42 = vmul.f32 %v4099_v37, %v2729_v20  ;;  %v2917_v37 = vpop.f32.mrf.mxu0 }
 0x92e   : > { %v2918_v53 = vadd.f32 %v2917_v37, %v2889_v46 }
 0x92f   : > { %3239 = vst [vmem:[%s5432_s25 + $0x48] sm:$0xff] %v3223_v8  ;;  %v2884_v28 = vadd.f32 %v2883_v13, %v2751_v42 }
 0x930   : > { %v3175_v59 = vpop.f32.mrf.mxu1  ;;  %v3206_v6 = vpop.f32.mrf.mxu2 }
 0x931   : > { %v3176_v24 = vadd.f32 %v3175_v59, %v5338_v48  ;;  %v2947_v9 = vpop.permute.xlu1 %2946  ;;  %v2752_v48 = vmul.f32 %v4095_v35, %v2738_v32  ;;  %v2913_v39 = vadd.f32 %v2912_v25, %v2884_v28  ;;  %v3117_v11 = vpop.permute.xlu2 %3116  ;;  %v5605_v25 = vld [vmem:[#allocation3_spill] sm:$0xff] }
 0x932   : > { %v2957_v49 = vsel %vm1412_vm8, %v2931_v4, %v2947_v9  ;;  %v2965_v35 = vsel %vm1412_vm8, %v2947_v9, %v2931_v4 }
 0x933   : > { %v3222_v58 = vadd.f32 %v3176_v24, %v3056_v17  ;;  %v2829_v45 = vadd.f32 %v5388_v47, %v2752_v48  ;;  %v2978_v26 = vmul.f32 %v4097_v36, %v2957_v49  ;;  %v2979_v52 = vmul.f32 %v4101_v38, %v2965_v35 }
 0x935   : > { %3238 = vst [vmem:[%s5432_s25 + $0x40] sm:$0xff] %v3222_v58  ;;  %v2858_v18 = vadd.f32 %v5380_v40, %v2829_v45  ;;  %v2994_v44 = vadd.f32 %v2978_v26, %v5604_v43  ;;  %v2995_v23 = vadd.f32 %v2979_v52, %v2913_v39 }
 0x937   : > { %v3058_v10 = vadd.f32 %v5606_v30, %v2994_v44  ;;  %v3059_v27 = vadd.f32 %v5606_v30, %v2995_v23 }
 0x938   : > { %v3177_v55 = vpop.f32.mrf.mxu1  ;;  %v3209_v57 = vpop.f32.mrf.mxu2 }
 0x939   : > { %v2949_v61 = vpop.permute.xlu0 %2948  ;;  %v3210_v21 = vadd.f32 %v3209_v57, %v3117_v11 }
 0x93a   : > { %v2958_v63 = vsel %vm1412_vm8, %v2933_v50, %v2949_v61  ;;  %v2966_v47 = vsel %vm1412_vm8, %v2949_v61, %v2933_v50 }
 0x93b   : > { %v2980_v13 = vmul.f32 %v4097_v36, %v2958_v63  ;;  %v2981_v56 = vmul.f32 %v4101_v38, %v2966_v47 }
 0x93d   : > { %v2935_v54 = vpop.permute.xlu1 %2934  ;;  %v2996_v15 = vadd.f32 %v2980_v13, %v2858_v18  ;;  %v2997_v0 = vadd.f32 %v2981_v56, %v2916_v14 }
 0x93e   : > { %v2959_v40 = vsel %vm1412_vm8, %v2935_v54, %v2951_v5  ;;  %v2967_v7 = vsel %vm1412_vm8, %v2951_v5, %v2935_v54 }
 0x93f   : > { %v2983_v22 = vmul.f32 %v4101_v38, %v2967_v7  ;;  %v3061_v33 = vadd.f32 %v5605_v25, %v2997_v0  ;;  %v2982_v62 = vmul.f32 %v4097_v36, %v2959_v40  ;;  %v3060_v3 = vadd.f32 %v5605_v25, %v2996_v15 }
 0x940   : > { %v3180_v29 = vpop.f32.mrf.mxu1  ;;  %v3211_v4 = vpop.f32.mrf.mxu2 }
 0x941   : > { %v3181_v60 = vadd.f32 %v3180_v29, %v3117_v11  ;;  %v3227_v31 = vadd.f32 %v3210_v21, %v3061_v33  ;;  %v2999_v50 = vadd.f32 %v2983_v22, %v2918_v53  ;;  %v3112_v8 = vpop.permute.xlu0 %3111  ;;  %v2998_v24 = vadd.f32 %v2982_v62, %v5410_v1 }
 0x942   : > { %v3178_v59 = vadd.f32 %v3177_v55, %v3112_v8  ;;  %v3207_v17 = vadd.f32 %v3206_v6, %v3112_v8 }
 0x943   : > { %v3226_v38 = vadd.f32 %v3181_v60, %v3060_v3  ;;  %3243 = vst [vmem:[%s5432_s25 + $0x68] sm:$0xff] %v3227_v31  ;;  %v3063_v58 = vadd.f32 %v5607_v41, %v2999_v50  ;;  %v3062_v5 = vadd.f32 %v5607_v41, %v2998_v24 }
 0x944   : > { %v3224_v36 = vadd.f32 %v3178_v59, %v3058_v10  ;;  %v3225_v32 = vadd.f32 %v3207_v17, %v3059_v27 }
 0x945   : > { %3242 = vst [vmem:[%s5432_s25 + $0x60] sm:$0xff] %v3226_v38  ;;  %v3122_v19 = vpop.permute.xlu1 %3121 }
 0x946   : > { %v3212_v9 = vadd.f32 %v3211_v4, %v3122_v19  ;;  %3240 = vst [vmem:[%s5432_s25 + $0x50] sm:$0xff] %v3224_v36 }
 0x947   : > { %3241 = vst [vmem:[%s5432_s25 + $0x58] sm:$0xff] %v3225_v32 }
 0x948   : > { %v3229_v20 = vadd.f32 %v3212_v9, %v3063_v58  ;;  %v3182_v48 = vpop.f32.mrf.mxu1 }
 0x949   : > { %v3183_v6 = vadd.f32 %v3182_v48, %v3122_v19 }
 0x94a   : > { %3245 = vst [vmem:[%s5432_s25 + $0x78] sm:$0xff] %v3229_v20 }
 0x94b   : > { %v3228_v2 = vadd.f32 %v3183_v6, %v3062_v5 }
 0x94d   : > { %3244 = vst [vmem:[%s5432_s25 + $0x70] sm:$0xff] %v3228_v2 }
 0x94e PF: > { %s25_s18 = sadd.s32 1, %s3819_s18  }
 0x94f   : > { %p22_p4 = scmp.ge.s32.totalorder %s25_s18, 4  }
 0x951   :  { %24 = sbr.rel (!%p22_p4) target bundleno = 1 (0x1), region = 114 }

</bundles_post_ra>
